<compile_context>
chip_gen: v5e
topology: v5e:2x2
jax: 0.10.0
libtpu: 0.0.40
codegen_flags: <defaults>
</compile_context>

<pallas_src>
import jax
import jax.numpy as jnp
from jax import lax
from jax.experimental import pallas as pl
from jax.experimental.pallas import tpu as pltpu

EMB_DIM = 100
# True layer widths of the PyTorch module.
LAYER_DIMS = [EMB_DIM, 128, 512, 1024, 256, 64, 16, 2]
N_LAYERS = len(LAYER_DIMS) - 1                      # 7
# Lane-aligned widths of x and the fc1..fc6 activations.
PAD_DIMS = [128, 128, 512, 1024, 256, 128, 128]
OUT_ROWS = 8                                        # fc7 rows of the transposed output (2 real)
MAX_OUT = max(PAD_DIMS)                             # 1024: lane width of the packed-bias rows


def _round_up(n, m):
    return ((n + m - 1) // m) * m


# ----------------------------------------------------------------------------
# Kernel bodies
# ----------------------------------------------------------------------------
def _mlp_body(x_ref, bias_ref, b7_ref, o_ref, xpad_ref, load_w):
    """Shared 7-layer chain on one (tb, 100) batch tile.

    `load_w(i)` returns layer i's lane-padded bf16 weight value (i == 6 gives
    the transposed fc7 weight).  bf16 x bf16 -> f32 MXU; bias/ReLU in f32.
    """
    # In-kernel zero-pad of the 100 input features to 128 lanes (no host pass).
    xpad_ref[...] = jnp.zeros_like(xpad_ref)
    xpad_ref[:, 0:EMB_DIM] = x_ref[...]
    h = xpad_ref[...].astype(jnp.bfloat16)                  # (tb, 128)

    for i in range(N_LAYERS - 1):                           # fc1 .. fc6 (+ ReLU)
        y = jnp.dot(h, load_w(i), preferred_element_type=jnp.float32)
        y = y + bias_ref[i:i + 1, 0:PAD_DIMS[i + 1]]        # (1, out_d) f32 broadcast
        h = jnp.maximum(y, 0.0).astype(jnp.bfloat16)

    # fc7 emitted transposed: (8, tb) = w7t (8,128) contracted with h (tb,128)
    # on their lane dims (NT matmul).  Output slab is 8 rows instead of a
    # mostly-zero (tb, 128) f32 slab.
    y7 = lax.dot_general(load_w(6), h,
                         dimension_numbers=(((1,), (1,)), ((), ())),
                         preferred_element_type=jnp.float32)
    o_ref[...] = y7 + b7_ref[:, 0:1]                        # (8,1) bias broadcast over batch


def _kernel_resident(x_ref, w1, w2, w3, w4, w5, w6, w7t,
                     bias_ref, b7_ref, o_ref, xpad_ref):
    """Large-batch path: all weights VMEM-resident via BlockSpec."""
    ws = (w1, w2, w3, w4, w5, w6, w7t)
    _mlp_body(x_ref, bias_ref, b7_ref, o_ref, xpad_ref, lambda i: ws[i][...])


def _kernel_stream_w34(x_ref, w1, w2, w3_hbm, w4_hbm, w5, w6, w7t,
                       bias_ref, b7_ref, o_ref, xpad_ref,
                       w3_vmem, w4_vmem, sems):
    """Small-batch latency path: fc3/fc4 weights DMA'd manually so their
    transfer overlaps fc1/fc2 compute instead of gating kernel start."""
    cp3 = pltpu.make_async_copy(w3_hbm, w3_vmem, sems.at[0])
    cp4 = pltpu.make_async_copy(w4_hbm, w4_vmem, sems.at[1])
    cp3.start()
    cp4.start()

    def load_w(i):
        if i == 2:
            cp3.wait()
            return w3_vmem[...]
        if i == 3:
            cp4.wait()
            return w4_vmem[...]
        return {0: w1, 1: w2, 4: w5, 5: w6, 6: w7t}[i][...]

    _mlp_body(x_ref, bias_ref, b7_ref, o_ref, xpad_ref, load_w)


# ----------------------------------------------------------------------------
# Parameters
# ----------------------------------------------------------------------------
def init_params(key):
    """PyTorch-style uniform(-1/sqrt(fan_in), 1/sqrt(fan_in)) init.  Weights are
    stored (in_features, out_features) so the kernel computes h @ W + b."""
    params = []
    for i in range(N_LAYERS):
        fan_in, fan_out = LAYER_DIMS[i], LAYER_DIMS[i + 1]
        key, kw, kb = jax.random.split(key, 3)
        bound = 1.0 / (fan_in ** 0.5)
        w = jax.random.uniform(kw, (fan_in, fan_out), jnp.float32, -bound, bound)
        b = jax.random.uniform(kb, (1, fan_out), jnp.float32, -bound, bound)
        params.append((w, b))
    return params


def _pad_params(params):
    """Lane-pad the weights (bf16) and pack the biases.

    Returns:
      ws        : 6 bf16 weights fc1..fc6, shape (PAD_DIMS[i], PAD_DIMS[i+1]).
      w7t       : fc7 weight, transposed + zero-padded to (8, 128) bf16.
      bias_pack : (8, 1024) f32, row i = fc{i+1} bias (i = 0..5), zero-padded.
      b7_col    : (8, 128) f32, column 0 rows 0..1 = fc7 bias.
    """
    ws, bias_rows = [], []
    for i in range(N_LAYERS - 1):                           # fc1 .. fc6
        w, b = params[i]
        fin, fout = w.shape
        wp = jnp.zeros((PAD_DIMS[i], PAD_DIMS[i + 1]), jnp.float32)
        ws.append(wp.at[:fin, :fout].set(w).astype(jnp.bfloat16))
        bias_rows.append(jnp.zeros((MAX_OUT,), jnp.float32).at[:fout].set(b.reshape(-1)))
    bias_pack = jnp.zeros((8, MAX_OUT), jnp.float32).at[:N_LAYERS - 1].set(
        jnp.stack(bias_rows))

    w7, b7 = params[N_LAYERS - 1]                           # (16, 2), (1, 2)
    w7t = jnp.zeros((OUT_ROWS, PAD_DIMS[6]), jnp.float32)
    w7t = w7t.at[:w7.shape[1], :w7.shape[0]].set(w7.T).astype(jnp.bfloat16)
    b7_col = jnp.zeros((OUT_ROWS, 128), jnp.float32).at[:w7.shape[1], 0].set(b7.reshape(-1))
    return ws, w7t, bias_pack, b7_col


# ----------------------------------------------------------------------------
# Forward
# ----------------------------------------------------------------------------
def _batch_tile(B, block_b):
    """Rows per grid step.  Small batches: a single 8-aligned tile (latency
    mode).  Large batches: 256-aligned tiles (v6e/v7x MXU M granularity),
    capped at block_b and sized so the grid keeps >= 2 steps (v7x megacore)."""
    if B <= 512:
        return _round_up(B, 8)
    tb = max(256, (B // 2) // 256 * 256)
    return min(_round_up(block_b, 256), tb)


def selector2_forward(x, params, *, block_b=1024):
    B, F = x.shape
    assert F == EMB_DIM, F
    assert B >= 1

    ws, w7t, bias_pack, b7_col = _pad_params(params)

    tb = _batch_tile(B, block_b)
    b_pad = _round_up(B, tb)
    n_steps = b_pad // tb
    stream_w34 = n_steps == 1          # single-step grid -> latency mode

    x_in = x.astype(jnp.float32)
    if b_pad != B:                     # row pad only; the 100->128 column pad is in-kernel
        x_in = jnp.pad(x_in, ((0, b_pad - B), (0, 0)))

    const2 = lambda i: (0, 0)
    resident = dict(pipeline_mode=pl.Buffered(1))   # constant index_map -> single-buffer

    in_specs = [pl.BlockSpec((tb, EMB_DIM), lambda i: (i, 0))]
    for li, w in enumerate(ws):
        if stream_w34 and li in (2, 3):             # fc3/fc4 weights fetched manually
            in_specs.append(pl.BlockSpec(memory_space=pl.ANY))
        else:
            in_specs.append(pl.BlockSpec(w.shape, const2, **resident))
    in_specs += [pl.BlockSpec(w7t.shape, const2, **resident),
                 pl.BlockSpec(bias_pack.shape, const2, **resident),
                 pl.BlockSpec(b7_col.shape, const2, **resident)]
    out_spec = pl.BlockSpec((OUT_ROWS, tb), lambda i: (0, i))

    scratch = [pltpu.VMEM((tb, PAD_DIMS[0]), jnp.float32)]   # in-kernel x pad buffer
    if stream_w34:
        scratch += [pltpu.VMEM(ws[2].shape, jnp.bfloat16),
                    pltpu.VMEM(ws[3].shape, jnp.bfloat16),
                    pltpu.SemaphoreType.DMA((2,))]
        kernel = _kernel_stream_w34
    else:
        kernel = _kernel_resident

    # Advisory cost estimate + a VMEM limit derived from actual usage (w/ margin).
    flops = 2 * b_pad * sum(din * dout
                            for din, dout in zip(PAD_DIMS, PAD_DIMS[1:] + [OUT_ROWS]))
    weight_bytes = sum(int(w.size) for w in ws) * 2 + int(w7t.size) * 2
    bias_bytes = int(bias_pack.size) * 4 + int(b7_col.size) * 4
    bytes_accessed = (b_pad * EMB_DIM * 4 + weight_bytes + bias_bytes
                      + OUT_ROWS * b_pad * 4)
    block_bytes = (weight_bytes + bias_bytes
                   + 2 * tb * EMB_DIM * 4            # x tile, double-buffered
                   + 2 * OUT_ROWS * tb * 4           # out tile, double-buffered
                   + tb * PAD_DIMS[0] * 4)           # xpad scratch
    if stream_w34:
        block_bytes += (int(ws[2].size) + int(ws[3].size)) * 2
    temp_bytes = 10 * 1024 * tb                      # live f32/bf16 intermediates (fc3/fc4)
    vmem_limit = int(min(100 << 20, max(16 << 20, 2 * (block_bytes + temp_bytes))))

    out = pl.pallas_call(
        kernel,
        out_shape=jax.ShapeDtypeStruct((OUT_ROWS, b_pad), jnp.float32),
        grid=(n_steps,),
        in_specs=in_specs,
        out_specs=out_spec,
        scratch_shapes=scratch,
        compiler_params=pltpu.CompilerParams(
            dimension_semantics=("parallel",),
            vmem_limit_bytes=vmem_limit),
        cost_estimate=pl.CostEstimate(
            flops=flops, transcendentals=0, bytes_accessed=bytes_accessed),
    )(x_in, *ws, w7t, bias_pack, b7_col)

    return out[:LAYER_DIMS[-1], :B].T                # (B, 2)


def selector2_ref(x, params):
    """Pure-JAX reference matching the kernel numerics (bf16 inputs, f32 acc)."""
    h = x.astype(jnp.bfloat16)
    y = None
    for i, (w, b) in enumerate(params):
        y = jnp.dot(h, w.astype(jnp.bfloat16),
                    preferred_element_type=jnp.float32) + b
        if i < len(params) - 1:
            h = jnp.maximum(y, 0.0).astype(jnp.bfloat16)
    return y


if __name__ == "__main__":
    key = jax.random.PRNGKey(0)
    k_params, k_x1, k_x2 = jax.random.split(key, 3)
    params = init_params(k_params)

    # Small batch: single-tile latency path (manual fc3/fc4 weight DMA overlap).
    x_small = jax.random.normal(k_x1, (8, EMB_DIM), jnp.float32)
    out_small = jax.block_until_ready(selector2_forward(x_small, params))
    ref_small = selector2_ref(x_small, params)
    assert out_small.shape == (8, 2), out_small.shape
    assert jnp.allclose(out_small, ref_small, atol=1e-2, rtol=1e-2), \
        f"small-batch mismatch, max abs diff = {jnp.max(jnp.abs(out_small - ref_small))}"

    # Larger batch: multi-step, 256-aligned, fully weight-resident path.
    x_big = jax.random.normal(k_x2, (520, EMB_DIM), jnp.float32)
    out_big = jax.block_until_ready(selector2_forward(x_big, params))
    ref_big = selector2_ref(x_big, params)
    assert out_big.shape == (520, 2), out_big.shape
    assert jnp.allclose(out_big, ref_big, atol=1e-2, rtol=1e-2), \
        f"large-batch mismatch, max abs diff = {jnp.max(jnp.abs(out_big - ref_big))}"

    print("KERNEL_OK")
</pallas_src>

<mosaic_0001>
module attributes {stable_mosaic.version = 11 : i64} {
  func.func @_kernel_stream_w34(%arg0: i32, %arg1: memref<8x100xf32, #tpu.memory_space<vmem>>, %arg2: memref<128x128xbf16, #tpu.memory_space<vmem>>, %arg3: memref<128x512xbf16, #tpu.memory_space<vmem>>, %arg4: memref<512x1024xbf16, #tpu.memory_space<any>>, %arg5: memref<1024x256xbf16, #tpu.memory_space<any>>, %arg6: memref<256x128xbf16, #tpu.memory_space<vmem>>, %arg7: memref<128x128xbf16, #tpu.memory_space<vmem>>, %arg8: memref<8x128xbf16, #tpu.memory_space<vmem>>, %arg9: memref<8x1024xf32, #tpu.memory_space<vmem>>, %arg10: memref<8x128xf32, #tpu.memory_space<vmem>>, %arg11: memref<8x8xf32, #tpu.memory_space<vmem>>, %arg12: memref<8x128xf32, #tpu.memory_space<vmem>>, %arg13: memref<512x1024xbf16, #tpu.memory_space<vmem>>, %arg14: memref<1024x256xbf16, #tpu.memory_space<vmem>>, %arg15: memref<2x!tpu.dma_semaphore, #tpu.memory_space<semaphore_mem>>) attributes {dimension_semantics = [#tpu.dimension_semantics<parallel>], iteration_bounds = array<i64: 1>, scalar_prefetch = 0 : i64, scratch_operands = 4 : i64, tpu.core_type = #tpu.core_type<tc>, window_params = [{transform_indices = @transform_0, window_bounds = array<i64: 8, 100>}, {pipeline_mode = #tpu.pipeline_mode<synchronous>, transform_indices = @transform_1, window_bounds = array<i64: 128, 128>}, {pipeline_mode = #tpu.pipeline_mode<synchronous>, transform_indices = @transform_2, window_bounds = array<i64: 128, 512>}, {}, {}, {pipeline_mode = #tpu.pipeline_mode<synchronous>, transform_indices = @transform_5, window_bounds = array<i64: 256, 128>}, {pipeline_mode = #tpu.pipeline_mode<synchronous>, transform_indices = @transform_6, window_bounds = array<i64: 128, 128>}, {pipeline_mode = #tpu.pipeline_mode<synchronous>, transform_indices = @transform_7, window_bounds = array<i64: 8, 128>}, {pipeline_mode = #tpu.pipeline_mode<synchronous>, transform_indices = @transform_8, window_bounds = array<i64: 8, 1024>}, {pipeline_mode = #tpu.pipeline_mode<synchronous>, transform_indices = @transform_9, window_bounds = array<i64: 8, 128>}, {transform_indices = @transform_10, window_bounds = array<i64: 8, 8>}]} {
    %c0_i32 = arith.constant 0 : i32
    %0 = tpu.memref_slice %arg15[%c0_i32] : memref<2x!tpu.dma_semaphore, #tpu.memory_space<semaphore_mem>> -> memref<1x!tpu.dma_semaphore, #tpu.memory_space<semaphore_mem>>
    %1 = tpu.memref_squeeze %0 : memref<1x!tpu.dma_semaphore, #tpu.memory_space<semaphore_mem>> -> memref<!tpu.dma_semaphore, #tpu.memory_space<semaphore_mem>>
    tpu.enqueue_dma source(%arg4 : memref<512x1024xbf16, #tpu.memory_space<any>>) target(%arg13 : memref<512x1024xbf16, #tpu.memory_space<vmem>>) target_semaphore(%1 : memref<!tpu.dma_semaphore, #tpu.memory_space<semaphore_mem>>)
    %c1_i32 = arith.constant 1 : i32
    %2 = tpu.memref_slice %arg15[%c1_i32] : memref<2x!tpu.dma_semaphore, #tpu.memory_space<semaphore_mem>> -> memref<1x!tpu.dma_semaphore, #tpu.memory_space<semaphore_mem>>
    %3 = tpu.memref_squeeze %2 : memref<1x!tpu.dma_semaphore, #tpu.memory_space<semaphore_mem>> -> memref<!tpu.dma_semaphore, #tpu.memory_space<semaphore_mem>>
    tpu.enqueue_dma source(%arg5 : memref<1024x256xbf16, #tpu.memory_space<any>>) target(%arg14 : memref<1024x256xbf16, #tpu.memory_space<vmem>>) target_semaphore(%3 : memref<!tpu.dma_semaphore, #tpu.memory_space<semaphore_mem>>)
    %cst = arith.constant 0.000000e+00 : f32
    %4 = vector.broadcast %cst : f32 to vector<8x128xf32>
    %c0 = arith.constant 0 : index
    %c0_0 = arith.constant 0 : index
    %5 = vector.load %arg12[%c0, %c0_0] : memref<8x128xf32, #tpu.memory_space<vmem>>, vector<8x128xf32>
    tpu.vector_store %arg12[%c0, %c0_0], %4 {strides = array<i32>} : memref<8x128xf32, #tpu.memory_space<vmem>>, vector<8x128xf32>,
    %c0_1 = arith.constant 0 : index
    %c0_2 = arith.constant 0 : index
    %6 = vector.load %arg1[%c0_1, %c0_2] : memref<8x100xf32, #tpu.memory_space<vmem>>, vector<8x100xf32>
    %c0_3 = arith.constant 0 : index
    %c0_4 = arith.constant 0 : index
    %7 = vector.load %arg12[%c0_3, %c0_4] : memref<8x128xf32, #tpu.memory_space<vmem>>, vector<8x100xf32>
    tpu.vector_store %arg12[%c0_3, %c0_4], %6 {strides = array<i32>} : memref<8x128xf32, #tpu.memory_space<vmem>>, vector<8x100xf32>,
    %c0_5 = arith.constant 0 : index
    %c0_6 = arith.constant 0 : index
    %8 = vector.load %arg12[%c0_5, %c0_6] : memref<8x128xf32, #tpu.memory_space<vmem>>, vector<8x128xf32>
    %9 = arith.truncf %8 : vector<8x128xf32> to vector<8x128xbf16>
    %c0_7 = arith.constant 0 : index
    %c0_8 = arith.constant 0 : index
    %10 = vector.load %arg2[%c0_7, %c0_8] : memref<128x128xbf16, #tpu.memory_space<vmem>>, vector<128x128xbf16>
    %cst_9 = arith.constant dense<0.000000e+00> : vector<8x128xf32>
    %11 = tpu.matmul %9, %10, %cst_9 {dimension_numbers = #tpu.dot_dimension_numbers<[1], [0], [0], [1], [0, 0, 1, 1], [], []>} : vector<8x128xbf16>, vector<128x128xbf16>, vector<8x128xf32> -> vector<8x128xf32>
    %c0_10 = arith.constant 0 : index
    %c0_11 = arith.constant 0 : index
    %12 = vector.load %arg9[%c0_10, %c0_11] : memref<8x1024xf32, #tpu.memory_space<vmem>>, vector<1x128xf32>
    %13 = vector.broadcast %12 : vector<1x128xf32> to vector<8x128xf32>
    %14 = arith.addf %11, %13 : vector<8x128xf32>
    %cst_12 = arith.constant 0.000000e+00 : f32
    %15 = vector.broadcast %cst_12 : f32 to vector<8x128xf32>
    %16 = arith.maximumf %14, %15 : vector<8x128xf32>
    %17 = arith.truncf %16 : vector<8x128xf32> to vector<8x128xbf16>
    %c0_13 = arith.constant 0 : index
    %c0_14 = arith.constant 0 : index
    %18 = vector.load %arg3[%c0_13, %c0_14] : memref<128x512xbf16, #tpu.memory_space<vmem>>, vector<128x512xbf16>
    %cst_15 = arith.constant dense<0.000000e+00> : vector<8x512xf32>
    %19 = tpu.matmul %17, %18, %cst_15 {dimension_numbers = #tpu.dot_dimension_numbers<[1], [0], [0], [1], [0, 0, 1, 1], [], []>} : vector<8x128xbf16>, vector<128x512xbf16>, vector<8x512xf32> -> vector<8x512xf32>
    %c1 = arith.constant 1 : index
    %c0_16 = arith.constant 0 : index
    %20 = vector.load %arg9[%c1, %c0_16] : memref<8x1024xf32, #tpu.memory_space<vmem>>, vector<1x512xf32>
    %21 = vector.broadcast %20 : vector<1x512xf32> to vector<8x512xf32>
    %22 = arith.addf %19, %21 : vector<8x512xf32>
    %cst_17 = arith.constant 0.000000e+00 : f32
    %23 = vector.broadcast %cst_17 : f32 to vector<8x512xf32>
    %24 = arith.maximumf %22, %23 : vector<8x512xf32>
    %25 = arith.truncf %24 : vector<8x512xf32> to vector<8x512xbf16>
    %c0_i32_18 = arith.constant 0 : i32
    %26 = tpu.memref_slice %arg15[%c0_i32_18] : memref<2x!tpu.dma_semaphore, #tpu.memory_space<semaphore_mem>> -> memref<1x!tpu.dma_semaphore, #tpu.memory_space<semaphore_mem>>
    %27 = tpu.memref_squeeze %26 : memref<1x!tpu.dma_semaphore, #tpu.memory_space<semaphore_mem>> -> memref<!tpu.dma_semaphore, #tpu.memory_space<semaphore_mem>>
    tpu.wait_dma2 semaphore(%27 : memref<!tpu.dma_semaphore, #tpu.memory_space<semaphore_mem>>) src(%arg4 : memref<512x1024xbf16, #tpu.memory_space<any>>) dst(%arg13 : memref<512x1024xbf16, #tpu.memory_space<vmem>>)
    %c0_19 = arith.constant 0 : index
    %c0_20 = arith.constant 0 : index
    %28 = vector.load %arg13[%c0_19, %c0_20] : memref<512x1024xbf16, #tpu.memory_space<vmem>>, vector<512x1024xbf16>
    %cst_21 = arith.constant dense<0.000000e+00> : vector<8x1024xf32>
    %29 = tpu.matmul %25, %28, %cst_21 {dimension_numbers = #tpu.dot_dimension_numbers<[1], [0], [0], [1], [0, 0, 1, 1], [], []>} : vector<8x512xbf16>, vector<512x1024xbf16>, vector<8x1024xf32> -> vector<8x1024xf32>
    %c2 = arith.constant 2 : index
    %c0_22 = arith.constant 0 : index
    %30 = vector.load %arg9[%c2, %c0_22] : memref<8x1024xf32, #tpu.memory_space<vmem>>, vector<1x1024xf32>
    %31 = vector.broadcast %30 : vector<1x1024xf32> to vector<8x1024xf32>
    %32 = arith.addf %29, %31 : vector<8x1024xf32>
    %cst_23 = arith.constant 0.000000e+00 : f32
    %33 = vector.broadcast %cst_23 : f32 to vector<8x1024xf32>
    %34 = arith.maximumf %32, %33 : vector<8x1024xf32>
    %35 = arith.truncf %34 : vector<8x1024xf32> to vector<8x1024xbf16>
    %c1_i32_24 = arith.constant 1 : i32
    %36 = tpu.memref_slice %arg15[%c1_i32_24] : memref<2x!tpu.dma_semaphore, #tpu.memory_space<semaphore_mem>> -> memref<1x!tpu.dma_semaphore, #tpu.memory_space<semaphore_mem>>
    %37 = tpu.memref_squeeze %36 : memref<1x!tpu.dma_semaphore, #tpu.memory_space<semaphore_mem>> -> memref<!tpu.dma_semaphore, #tpu.memory_space<semaphore_mem>>
    tpu.wait_dma2 semaphore(%37 : memref<!tpu.dma_semaphore, #tpu.memory_space<semaphore_mem>>) src(%arg5 : memref<1024x256xbf16, #tpu.memory_space<any>>) dst(%arg14 : memref<1024x256xbf16, #tpu.memory_space<vmem>>)
    %c0_25 = arith.constant 0 : index
    %c0_26 = arith.constant 0 : index
    %38 = vector.load %arg14[%c0_25, %c0_26] : memref<1024x256xbf16, #tpu.memory_space<vmem>>, vector<1024x256xbf16>
    %cst_27 = arith.constant dense<0.000000e+00> : vector<8x256xf32>
    %39 = tpu.matmul %35, %38, %cst_27 {dimension_numbers = #tpu.dot_dimension_numbers<[1], [0], [0], [1], [0, 0, 1, 1], [], []>} : vector<8x1024xbf16>, vector<1024x256xbf16>, vector<8x256xf32> -> vector<8x256xf32>
    %c3 = arith.constant 3 : index
    %c0_28 = arith.constant 0 : index
    %40 = vector.load %arg9[%c3, %c0_28] : memref<8x1024xf32, #tpu.memory_space<vmem>>, vector<1x256xf32>
    %41 = vector.broadcast %40 : vector<1x256xf32> to vector<8x256xf32>
    %42 = arith.addf %39, %41 : vector<8x256xf32>
    %cst_29 = arith.constant 0.000000e+00 : f32
    %43 = vector.broadcast %cst_29 : f32 to vector<8x256xf32>
    %44 = arith.maximumf %42, %43 : vector<8x256xf32>
    %45 = arith.truncf %44 : vector<8x256xf32> to vector<8x256xbf16>
    %c0_30 = arith.constant 0 : index
    %c0_31 = arith.constant 0 : index
    %46 = vector.load %arg6[%c0_30, %c0_31] : memref<256x128xbf16, #tpu.memory_space<vmem>>, vector<256x128xbf16>
    %cst_32 = arith.constant dense<0.000000e+00> : vector<8x128xf32>
    %47 = tpu.matmul %45, %46, %cst_32 {dimension_numbers = #tpu.dot_dimension_numbers<[1], [0], [0], [1], [0, 0, 1, 1], [], []>} : vector<8x256xbf16>, vector<256x128xbf16>, vector<8x128xf32> -> vector<8x128xf32>
    %c4 = arith.constant 4 : index
    %c0_33 = arith.constant 0 : index
    %48 = vector.load %arg9[%c4, %c0_33] : memref<8x1024xf32, #tpu.memory_space<vmem>>, vector<1x128xf32>
    %49 = vector.broadcast %48 : vector<1x128xf32> to vector<8x128xf32>
    %50 = arith.addf %47, %49 : vector<8x128xf32>
    %cst_34 = arith.constant 0.000000e+00 : f32
    %51 = vector.broadcast %cst_34 : f32 to vector<8x128xf32>
    %52 = arith.maximumf %50, %51 : vector<8x128xf32>
    %53 = arith.truncf %52 : vector<8x128xf32> to vector<8x128xbf16>
    %c0_35 = arith.constant 0 : index
    %c0_36 = arith.constant 0 : index
    %54 = vector.load %arg7[%c0_35, %c0_36] : memref<128x128xbf16, #tpu.memory_space<vmem>>, vector<128x128xbf16>
    %cst_37 = arith.constant dense<0.000000e+00> : vector<8x128xf32>
    %55 = tpu.matmul %53, %54, %cst_37 {dimension_numbers = #tpu.dot_dimension_numbers<[1], [0], [0], [1], [0, 0, 1, 1], [], []>} : vector<8x128xbf16>, vector<128x128xbf16>, vector<8x128xf32> -> vector<8x128xf32>
    %c5 = arith.constant 5 : index
    %c0_38 = arith.constant 0 : index
    %56 = vector.load %arg9[%c5, %c0_38] : memref<8x1024xf32, #tpu.memory_space<vmem>>, vector<1x128xf32>
    %57 = vector.broadcast %56 : vector<1x128xf32> to vector<8x128xf32>
    %58 = arith.addf %55, %57 : vector<8x128xf32>
    %cst_39 = arith.constant 0.000000e+00 : f32
    %59 = vector.broadcast %cst_39 : f32 to vector<8x128xf32>
    %60 = arith.maximumf %58, %59 : vector<8x128xf32>
    %61 = arith.truncf %60 : vector<8x128xf32> to vector<8x128xbf16>
    %c0_40 = arith.constant 0 : index
    %c0_41 = arith.constant 0 : index
    %62 = vector.load %arg8[%c0_40, %c0_41] : memref<8x128xbf16, #tpu.memory_space<vmem>>, vector<8x128xbf16>
    %cst_42 = arith.constant dense<0.000000e+00> : vector<8x8xf32>
    %63 = tpu.matmul %62, %61, %cst_42 {dimension_numbers = #tpu.dot_dimension_numbers<[1], [1], [0], [0], [0, 0, 1, 0], [], []>} : vector<8x128xbf16>, vector<8x128xbf16>, vector<8x8xf32> -> vector<8x8xf32>
    %c0_43 = arith.constant 0 : index
    %c0_44 = arith.constant 0 : index
    %64 = vector.load %arg10[%c0_43, %c0_44] : memref<8x128xf32, #tpu.memory_space<vmem>>, vector<8x1xf32>
    %65 = vector.broadcast %64 : vector<8x1xf32> to vector<8x8xf32>
    %66 = arith.addf %63, %65 : vector<8x8xf32>
    %c0_45 = arith.constant 0 : index
    %c0_46 = arith.constant 0 : index
    %67 = vector.load %arg11[%c0_45, %c0_46] : memref<8x8xf32, #tpu.memory_space<vmem>>, vector<8x8xf32>
    tpu.vector_store %arg11[%c0_45, %c0_46], %66 {strides = array<i32>} : memref<8x8xf32, #tpu.memory_space<vmem>>, vector<8x8xf32>,
    return
  }
  func.func @transform_0(%arg0: i32) -> (i32, i32) {
    %c0_i32 = arith.constant 0 : i32
    %c0_i32_0 = arith.constant 0 : i32
    return %arg0, %c0_i32 : i32, i32
  }
  func.func @transform_1(%arg0: i32) -> (i32, i32) {
    %c0_i32 = arith.constant 0 : i32
    %c0_i32_0 = arith.constant 0 : i32
    %c0_i32_1 = arith.constant 0 : i32
    return %c0_i32, %c0_i32_0 : i32, i32
  }
  func.func @transform_2(%arg0: i32) -> (i32, i32) {
    %c0_i32 = arith.constant 0 : i32
    %c0_i32_0 = arith.constant 0 : i32
    %c0_i32_1 = arith.constant 0 : i32
    return %c0_i32, %c0_i32_0 : i32, i32
  }
  func.func @transform_5(%arg0: i32) -> (i32, i32) {
    %c0_i32 = arith.constant 0 : i32
    %c0_i32_0 = arith.constant 0 : i32
    %c0_i32_1 = arith.constant 0 : i32
    return %c0_i32, %c0_i32_0 : i32, i32
  }
  func.func @transform_6(%arg0: i32) -> (i32, i32) {
    %c0_i32 = arith.constant 0 : i32
    %c0_i32_0 = arith.constant 0 : i32
    %c0_i32_1 = arith.constant 0 : i32
    return %c0_i32, %c0_i32_0 : i32, i32
  }
  func.func @transform_7(%arg0: i32) -> (i32, i32) {
    %c0_i32 = arith.constant 0 : i32
    %c0_i32_0 = arith.constant 0 : i32
    %c0_i32_1 = arith.constant 0 : i32
    return %c0_i32, %c0_i32_0 : i32, i32
  }
  func.func @transform_8(%arg0: i32) -> (i32, i32) {
    %c0_i32 = arith.constant 0 : i32
    %c0_i32_0 = arith.constant 0 : i32
    %c0_i32_1 = arith.constant 0 : i32
    return %c0_i32, %c0_i32_0 : i32, i32
  }
  func.func @transform_9(%arg0: i32) -> (i32, i32) {
    %c0_i32 = arith.constant 0 : i32
    %c0_i32_0 = arith.constant 0 : i32
    %c0_i32_1 = arith.constant 0 : i32
    return %c0_i32, %c0_i32_0 : i32, i32
  }
  func.func @transform_10(%arg0: i32) -> (i32, i32) {
    %c0_i32 = arith.constant 0 : i32
    %c0_i32_0 = arith.constant 0 : i32
    return %c0_i32, %arg0 : i32, i32
  }
}

</mosaic_0001>

<bundles_post_ra>
// kernel: tpu_custom_call.1
= control target key start
LH: loop header
LB: loop body
LE: loop exit
PB: predicated region body
PF: predicated region fallthrough
CT: control target
= control target key end

     0   :  { %15 = vsyncpa [#allocation7], 0  ;;  %s6496_s0 = inlined_call_operand.hbm [shape: f32[8,100], index: 0, kind: input, shape index: {}]   ;;  %s6497_s1 = inlined_call_operand.hbm [shape: bf16[128,128], index: 1, kind: input, shape index: {}]   ;;  %s6498_s2 = inlined_call_operand.hbm [shape: bf16[128,512], index: 2, kind: input, shape index: {}]   ;;  %s6499_s3 = inlined_call_operand.hbm [shape: bf16[512,1024], index: 3, kind: input, shape index: {}]   ;;  %s6500_s4 = inlined_call_operand.hbm [shape: bf16[1024,256], index: 4, kind: input, shape index: {}]   ;;  %s6501_s5 = inlined_call_operand.hbm [shape: bf16[256,128], index: 5, kind: input, shape index: {}]   ;;  %s6502_s6 = inlined_call_operand.hbm [shape: bf16[128,128], index: 6, kind: input, shape index: {}]   ;;  %s6503_s7 = inlined_call_operand.hbm [shape: bf16[8,128], index: 7, kind: input, shape index: {}]   ;;  %s6504_s8 = inlined_call_operand.hbm [shape: f32[8,1024], index: 8, kind: input, shape index: {}]   ;;  %s6505_s9 = inlined_call_operand.vmem [shape: f32[8,128], index: 9, kind: input, shape index: {}]   ;;  %s6506_s10 = inlined_call_operand.hbm [shape: f32[8,8], index: 10, kind: output, shape index: {}]  }
   0x1   :  { %16 = vsyncpa [#allocation10], 0 }
   0x2   :  { %17 = vsyncpa [#allocation13], 0 }
   0x3   :  { %18 = vsyncpa [#allocation16], 0  ;;  %s35_s15 = sshll.u32 %s6497_s1, 4  ;;  %s36_s15 = int_to_ptr.hbm [resolvable:$true] %s35_s15 }
   0x4   :  { %19 = vsyncpa [#allocation8], 0  ;;  %s6301_s16 = smov [#allocation9]   ;;  %s61_s20 = sshll.u32 %s6501_s5, 4  ;;  %s62_s20 = int_to_ptr.hbm [resolvable:$true] %s61_s20 }
   0x5   :  { %s37_s17 = sshll.u32 %s6301_s16, 4  ;;  %s6302_s21 = smov 64   ;;  %s38_s17 = int_to_ptr.vmem [resolvable:$true] %s37_s17 }
   0x6   :  { %s6303_s22 = smov 4   ;;  %s6304_s23 = smov [#allocation12]  }
   0x7   :  { %43 = dma.hbm_to_vmem [thread:$0]  %s36_s15, 1024, %s38_s17, [#allocation10], %s6302_s21, %s6302_s21, %s6303_s22  }
   0x8   :  { %s63_s24 = sshll.u32 %s6304_s23, 4  ;;  %s88_s26 = sshll.u32 %s6503_s7, 4  ;;  %s64_s24 = int_to_ptr.vmem [resolvable:$true] %s63_s24  ;;  %s89_s26 = int_to_ptr.hbm [resolvable:$true] %s88_s26 }
   0x9   :  { %69 = dma.hbm_to_vmem [thread:$0]  %s62_s20, 2048, %s64_s24, [#allocation13], %s6302_s21, %s6302_s21, %s6303_s22  }
   0xa   :  { %s25_s28 = sshll.u32 %s6496_s0, 4  ;;  %s6305_s29 = smov [#allocation15]   ;;  %s26_s28 = int_to_ptr.hbm [resolvable:$true] %s25_s28 }
   0xb   :  { %s90_s30 = sshll.u32 %s6305_s29, 4  ;;  %s6306_s11 = smov [#allocation6]   ;;  %s91_s30 = int_to_ptr.vmem [resolvable:$true] %s90_s30 }
   0xc   :  { %93 = dma.hbm_to_vmem [thread:$0]  %s89_s26, 64, %s91_s30, [#allocation16]  }
   0xd   :  { %s27_s12 = sshll.u32 %s6306_s11, 4  ;;  %s48_s7 = sshll.u32 %s6498_s2, 4  ;;  %s28_s12 = int_to_ptr.vmem [resolvable:$true] %s27_s12  ;;  %s49_s7 = int_to_ptr.hbm [resolvable:$true] %s48_s7 }
   0xe   :  { %30 = dma.hbm_to_vmem [thread:$0]  %s26_s28, 128, %s28_s12, [#allocation7]  }
   0xf   :  { %s6307_s15 = smov [#allocation11]   ;;  %s74_s0 = sshll.u32 %s6502_s6, 4  ;;  %s75_s0 = int_to_ptr.hbm [resolvable:$true] %s74_s0 }
  0x10   :  { %s50_s16 = sshll.u32 %s6307_s15, 4  ;;  %s6308_s19 = smov 256   ;;  %s51_s16 = int_to_ptr.vmem [resolvable:$true] %s50_s16 }
  0x11   :  { %s6309_s20 = smov 16   ;;  %s6310_s23 = smov [#allocation14]  }
  0x12   :  { %56 = dma.hbm_to_vmem [thread:$0]  %s49_s7, 4096, %s51_s16, [#allocation10], %s6308_s19, %s6308_s19, %s6309_s20  }
  0x13   :  { %s76_s24 = sshll.u32 %s6310_s23, 4  ;;  %s99_s2 = sshll.u32 %s6504_s8, 4  ;;  %s77_s24 = int_to_ptr.vmem [resolvable:$true] %s76_s24  ;;  %s100_s2 = int_to_ptr.hbm [resolvable:$true] %s99_s2 }
  0x14   :  { %82 = dma.hbm_to_vmem [thread:$0]  %s75_s0, 1024, %s77_s24, [#allocation13], %s6302_s21, %s6302_s21, %s6303_s22  }
  0x15   :  { %s6311_s26 = smov [#allocation17]  }
  0x16   :  { %s101_s5 = sshll.u32 %s6311_s26, 4  ;;  %s102_s5 = int_to_ptr.vmem [resolvable:$true] %s101_s5 }
  0x17   :  { %104 = dma.hbm_to_vmem [thread:$0]  %s100_s2, 1024, %s102_s5, [#allocation16]  }
  0x18   :  { %6287 = dma.done.wait [#allocation7], 128  }
  0x19   :  { %6288 = vsyncadd [#allocation7], 4294967168 }
  0x1a   :  { %6289 = dma.done.wait [#allocation10], 5120  }
  0x1b   :  { %6290 = vsyncadd [#allocation10], 4294962176 }
  0x1c   :  { %6291 = dma.done.wait [#allocation13], 3072  }
  0x1d   :  { %6292 = vsyncadd [#allocation13], 4294964224 }
  0x1e   :  { %6293 = dma.done.wait [#allocation16], 1088  }
  0x1f   :  { %6294 = vsyncadd [#allocation16], 4294966208  ;;  %v6312_v0 = vmov 0.0   ;;  %v5589_v1 = vld [vmem:[#allocation9 + $0x38] sm:$0xff]  ;;  %vm165_vm0 = vcmask 818176   ;;  %v5588_v2 = vld [vmem:[#allocation9 + $0x30] sm:$0xff] }
  0x20   :  { %163 = vst [vmem:[#allocation2] sm:$0xff] %v6312_v0  ;;  %234 = vmatpush.bf16.msra.mxu0 %v5589_v1  ;;  %v164_v3 = vld [vmem:[#allocation6] sm:$0xff]  ;;  %v3934_v4 = vld [vmem:[#allocation11 + $0xe0] sm:$0xf]  ;;  %v5620_v5 = vld [vmem:[#allocation11 + $0xec] sm:$0xf0] }
  0x21   :  { %166 = vst.msk [vmem:[#allocation2] sm:$0xff] %vm165_vm0, %v164_v3  ;;  %v3935_v6 = vor.u32 %v5620_v5, %v3934_v4  ;;  %v5618_v7 = vld [vmem:[#allocation11 + $0xe4] sm:$0xf]  ;;  %v3936_v8 = vld [vmem:[#allocation11 + $0xf0] sm:$0xf0]  ;;  %v5587_v10 = vld [vmem:[#allocation9 + $0x28] sm:$0xff] }
  0x22   :  { %v3942_v9 = vld [vmem:[#allocation11 + $0xe8] sm:$0xf]  ;;  %v3939_v11 = vor.u32 %v5618_v7, %v3936_v8  ;;  %v5621_v12 = vld [vmem:[#allocation11 + $0xf4] sm:$0xf0]  ;;  %v3918_v14 = vld [vmem:[#allocation11 + $0xc0] sm:$0xf] }
  0x23   :  { %452 = vmatpush.bf16.msra.mxu1 %v3935_v6  ;;  %v3943_v13 = vor.u32 %v5621_v12, %v3942_v9  ;;  %v5616_v15 = vld [vmem:[#allocation11 + $0xcc] sm:$0xf0]  ;;  %v5614_v16 = vld [vmem:[#allocation11 + $0xc4] sm:$0xf]  ;;  %v3920_v18 = vld [vmem:[#allocation11 + $0xd0] sm:$0xf0] }
  0x24   :  { %235 = vmatpush.bf16.msra.mxu0 %v5588_v2  ;;  %465 = vmatpush.bf16.msra.mxu2 %v3939_v11  ;;  %v3919_v17 = vor.u32 %v5616_v15, %v3918_v14  ;;  %v3926_v19 = vld [vmem:[#allocation11 + $0xc8] sm:$0xf]  ;;  %v5617_v20 = vld [vmem:[#allocation11 + $0xd4] sm:$0xf0]  ;;  %v3923_v21 = vor.u32 %v5614_v16, %v3920_v18  ;;  %v3902_v23 = vld [vmem:[#allocation11 + $0xa0] sm:$0xf] }
  0x25   :  { %478 = vmatpush.bf16.msra.mxu3 %v3943_v13  ;;  %v3927_v22 = vor.u32 %v5617_v20, %v3926_v19  ;;  %v5612_v24 = vld [vmem:[#allocation11 + $0xac] sm:$0xf0]  ;;  %v5610_v25 = vld [vmem:[#allocation11 + $0xa4] sm:$0xf]  ;;  %v3904_v26 = vld [vmem:[#allocation11 + $0xb0] sm:$0xf0] }
  0x26   :  { %v5586_v27 = vld [vmem:[#allocation9 + $0x20] sm:$0xff]  ;;  %v3903_v28 = vor.u32 %v5612_v24, %v3902_v23  ;;  %v3910_v29 = vld [vmem:[#allocation11 + $0xa8] sm:$0xf]  ;;  %v5613_v30 = vld [vmem:[#allocation11 + $0xb4] sm:$0xf0]  ;;  %v3907_v31 = vor.u32 %v5610_v25, %v3904_v26  ;;  %s143_s21 = sshll.u32 %s6499_s3, 4  ;;  %s144_s21 = int_to_ptr.hbm [resolvable:$true] %s143_s21 }
  0x27   :  { %453 = vmatpush.bf16.msra.mxu1 %v3919_v17  ;;  %v3886_v32 = vld [vmem:[#allocation11 + $0x80] sm:$0xf]  ;;  %v3911_v33 = vor.u32 %v5613_v30, %v3910_v29  ;;  %v5608_v34 = vld [vmem:[#allocation11 + $0x8c] sm:$0xf0]  ;;  %v5606_v35 = vld [vmem:[#allocation11 + $0x84] sm:$0xf] }
  0x28   :  { %236 = vmatpush.bf16.msra.mxu0 %v5587_v10  ;;  %466 = vmatpush.bf16.msra.mxu2 %v3923_v21  ;;  %v3888_v36 = vld [vmem:[#allocation11 + $0x90] sm:$0xf0]  ;;  %v3894_v37 = vld [vmem:[#allocation11 + $0x88] sm:$0xf]  ;;  %v5609_v38 = vld [vmem:[#allocation11 + $0x94] sm:$0xf0]  ;;  %v3887_v40 = vor.u32 %v5608_v34, %v3886_v32 }
  0x29   :  { %479 = vmatpush.bf16.msra.mxu3 %v3927_v22  ;;  %v5585_v39 = vld [vmem:[#allocation9 + $0x18] sm:$0xff]  ;;  %v3891_v41 = vor.u32 %v5606_v35, %v3888_v36  ;;  %v3870_v42 = vld [vmem:[#allocation11 + $0x60] sm:$0xf]  ;;  %v5604_v43 = vld [vmem:[#allocation11 + $0x6c] sm:$0xf0]  ;;  %v3895_v44 = vor.u32 %v5609_v38, %v3894_v37  ;;  %s6313_s22 = smov [#allocation3]  }
  0x2a   :  { %v5602_v45 = vld [vmem:[#allocation11 + $0x64] sm:$0xf]  ;;  %v3872_v46 = vld [vmem:[#allocation11 + $0x70] sm:$0xf0]  ;;  %v3878_v47 = vld [vmem:[#allocation11 + $0x68] sm:$0xf]  ;;  %v3871_v50 = vor.u32 %v5604_v43, %v3870_v42 }
  0x2b   :  { %454 = vmatpush.bf16.msra.mxu1 %v3903_v28  ;;  %v5605_v48 = vld [vmem:[#allocation11 + $0x74] sm:$0xf0]  ;;  %v5584_v49 = vld [vmem:[#allocation9 + $0x10] sm:$0xff]  ;;  %v3875_v51 = vor.u32 %v5602_v45, %v3872_v46  ;;  %v3854_v52 = vld [vmem:[#allocation11 + $0x40] sm:$0xf]  ;;  %s145_s27 = sshll.u32 %s6313_s22, 4  ;;  %s146_s27 = int_to_ptr.vmem [resolvable:$true] %s145_s27 }
  0x2c   :  { %237 = vmatpush.bf16.msra.mxu0 %v5586_v27  ;;  %467 = vmatpush.bf16.msra.mxu2 %v3907_v31  ;;  %v5600_v53 = vld [vmem:[#allocation11 + $0x4c] sm:$0xf0]  ;;  %v3879_v54 = vor.u32 %v5605_v48, %v3878_v47  ;;  %v5598_v55 = vld [vmem:[#allocation11 + $0x44] sm:$0xf]  ;;  %v3856_v56 = vld [vmem:[#allocation11 + $0x50] sm:$0xf0] }
  0x2d   :  { %480 = vmatpush.bf16.msra.mxu3 %v3911_v33  ;;  %v3862_v57 = vld [vmem:[#allocation11 + $0x48] sm:$0xf]  ;;  %v5601_v58 = vld [vmem:[#allocation11 + $0x54] sm:$0xf0]  ;;  %v3855_v60 = vor.u32 %v5600_v53, %v3854_v52  ;;  %v3859_v61 = vor.u32 %v5598_v55, %v3856_v56  ;;  %v5619_v62 = vld [vmem:[#allocation11 + $0xec] sm:$0xf] }
  0x2e   :  { %v5583_v59 = vld [vmem:[#allocation9 + $0x8] sm:$0xff]  ;;  %v3944_v63 = vld [vmem:[#allocation11 + $0xf8] sm:$0xf0]  ;;  %v3863_v0 = vor.u32 %v5601_v58, %v3862_v57  ;;  %v5582_v1 = vld [vmem:[#allocation9] sm:$0xff]  ;;  %148 = dma.hbm_to_vmem [thread:$0]  %s144_s21, 32768, %s146_s27, [#allocation5] }
  0x2f   :  { %455 = vmatpush.bf16.msra.mxu1 %v3887_v40  ;;  %v167_v2 = vld [vmem:[#allocation2] sm:$0xff]  ;;  %v3947_v3 = vor.u32 %v5619_v62, %v3944_v63  ;;  %v5615_v4 = vld [vmem:[#allocation11 + $0xcc] sm:$0xf]  ;;  %v3928_v5 = vld [vmem:[#allocation11 + $0xd8] sm:$0xf0]  ;;  %s157_s30 = sshll.u32 %s6500_s4, 4  ;;  %s158_s30 = int_to_ptr.hbm [resolvable:$true] %s157_s30 }
  0x30   :  { %238 = vmatpush.bf16.msra.mxu0 %v5585_v39  ;;  %468 = vmatpush.bf16.msra.mxu2 %v3891_v41  ;;  %v168_v6 = vpack.c.bf16 %v167_v2, %v167_v2  ;;  %v3931_v7 = vor.u32 %v5615_v4, %v3928_v5  ;;  %v5611_v8 = vld [vmem:[#allocation11 + $0xac] sm:$0xf]  ;;  %v3912_v9 = vld [vmem:[#allocation11 + $0xb8] sm:$0xf0]  ;;  %v3838_v20 = vld [vmem:[#allocation11 + $0x20] sm:$0xf] }
  0x31   :  { %481 = vmatpush.bf16.msra.mxu3 %v3895_v44  ;;  %v3915_v10 = vor.u32 %v5611_v8, %v3912_v9  ;;  %v5607_v11 = vld [vmem:[#allocation11 + $0x8c] sm:$0xf]  ;;  %v3896_v12 = vld [vmem:[#allocation11 + $0x98] sm:$0xf0]  ;;  %v5596_v21 = vld [vmem:[#allocation11 + $0x2c] sm:$0xf0] }
  0x32   :  { %v3899_v13 = vor.u32 %v5607_v11, %v3896_v12  ;;  %v5603_v14 = vld [vmem:[#allocation11 + $0x6c] sm:$0xf]  ;;  %v3880_v15 = vld [vmem:[#allocation11 + $0x78] sm:$0xf0]  ;;  %v5594_v22 = vld [vmem:[#allocation11 + $0x24] sm:$0xf]  ;;  %v3839_v23 = vor.u32 %v5596_v21, %v3838_v20 }
  0x33   :  { %456 = vmatpush.bf16.msra.mxu1 %v3871_v50  ;;  %v3883_v16 = vor.u32 %v5603_v14, %v3880_v15  ;;  %v5599_v17 = vld [vmem:[#allocation11 + $0x4c] sm:$0xf]  ;;  %v3864_v18 = vld [vmem:[#allocation11 + $0x58] sm:$0xf0]  ;;  %v3840_v24 = vld [vmem:[#allocation11 + $0x30] sm:$0xf0] }
  0x34   :  { %239 = vmatpush.bf16.msra.mxu0 %v5584_v49  ;;  %469 = vmatpush.bf16.msra.mxu2 %v3875_v51  ;;  %v3867_v19 = vor.u32 %v5599_v17, %v3864_v18  ;;  %v3846_v25 = vld [vmem:[#allocation11 + $0x28] sm:$0xf]  ;;  %v5597_v26 = vld [vmem:[#allocation11 + $0x34] sm:$0xf0]  ;;  %v3843_v27 = vor.u32 %v5594_v22, %v3840_v24  ;;  %v5595_v29 = vld [vmem:[#allocation11 + $0x2c] sm:$0xf] }
  0x35   :  { %482 = vmatpush.bf16.msra.mxu3 %v3879_v54  ;;  %v3847_v28 = vor.u32 %v5597_v26, %v3846_v25  ;;  %v3848_v30 = vld [vmem:[#allocation11 + $0x38] sm:$0xf0]  ;;  %v3822_v32 = vld [vmem:[#allocation11] sm:$0xf]  ;;  %v5592_v33 = vld [vmem:[#allocation11 + $0xc] sm:$0xf0] }
  0x36   :  { %v3851_v31 = vor.u32 %v5595_v29, %v3848_v30  ;;  %v5590_v34 = vld [vmem:[#allocation11 + $0x4] sm:$0xf]  ;;  %v3823_v35 = vor.u32 %v5592_v33, %v3822_v32  ;;  %v3824_v36 = vld [vmem:[#allocation11 + $0x10] sm:$0xf0]  ;;  %v3830_v37 = vld [vmem:[#allocation11 + $0x8] sm:$0xf] }
  0x37   :  { %457 = vmatpush.bf16.msra.mxu1 %v3855_v60  ;;  %v5593_v38 = vld [vmem:[#allocation11 + $0x14] sm:$0xf0]  ;;  %v3827_v39 = vor.u32 %v5590_v34, %v3824_v36  ;;  %v5591_v41 = vld [vmem:[#allocation11 + $0xc] sm:$0xf]  ;;  %v3832_v42 = vld [vmem:[#allocation11 + $0x18] sm:$0xf0] }
  0x38   :  { %240 = vmatpush.bf16.msra.mxu0 %v5583_v59  ;;  %470 = vmatpush.bf16.msra.mxu2 %v3859_v61  ;;  %v3831_v40 = vor.u32 %v5593_v38, %v3830_v37  ;;  %v3835_v43 = vor.u32 %v5591_v41, %v3832_v42  ;;  %v185_v44 = vld [vmem:[#allocation17] ss:$0 sm:$0xff]  ;;  %s6314_s11 = smov [#allocation4]   ;;  %v282_v50 = vld [vmem:[#allocation17 + $0x1] ss:$8 sm:$0xf] }
  0x39   :  { %483 = vmatpush.bf16.msra.mxu3 %v3863_v0  ;;  %s159_s12 = sshll.u32 %s6314_s11, 4  ;;  %v284_v51 = vperm.slane %v282_v50, 0  ;;  %v287_v52 = vperm.slane %v282_v50, 3  ;;  %v285_v58 = vperm.slane %v282_v50, 1  ;;  %v286_v60 = vperm.slane %v282_v50, 2  ;;  %s160_s12 = int_to_ptr.vmem [resolvable:$true] %s159_s12 }
  0x3a   :  { %162 = dma.hbm_to_vmem [thread:$0]  %s158_s30, 16384, %s160_s12, [#allocation5 + $0x1] }
  0x3b   :  { %458 = vmatpush.bf16.msra.mxu1 %v3839_v23 }
  0x3c   :  { %241 = vmatpush.bf16.msra.mxu0 %v5582_v1  ;;  %471 = vmatpush.bf16.msra.mxu2 %v3843_v27 }
  0x3d   :  { %484 = vmatpush.bf16.msra.mxu3 %v3847_v28 }
  0x3f   :  { %242 = vmatmul.bf16.vlgmr.msra.gmra.mxu0 %v168_v6  ;;  %459 = vmatpush.bf16.msra.mxu1 %v3823_v35 }
  0x40   :  { %491 = vmatpush.bf16.msrb.mxu0 %v3947_v3  ;;  %472 = vmatpush.bf16.msra.mxu2 %v3827_v39 }
  0x41   :  { %485 = vmatpush.bf16.msra.mxu3 %v3831_v40 }
  0x44   :  { %492 = vmatpush.bf16.msrb.mxu0 %v3931_v7 }
  0x48   :  { %493 = vmatpush.bf16.msrb.mxu0 %v3915_v10 }
  0x4c   :  { %494 = vmatpush.bf16.msrb.mxu0 %v3899_v13 }
  0x50   :  { %495 = vmatpush.bf16.msrb.mxu0 %v3883_v16 }
  0x54   :  { %496 = vmatpush.bf16.msrb.mxu0 %v3867_v19 }
  0x58   :  { %497 = vmatpush.bf16.msrb.mxu0 %v3851_v31 }
  0x5c   :  { %498 = vmatpush.bf16.msrb.mxu0 %v3835_v43 }
  0xbc   :  { %v243_v45 = vpop.f32.mrf.mxu0 }
  0xbd   :  { %v244_v46 = vadd.f32 %v243_v45, %v185_v44 }
  0xbf   :  { %v247_v47 = vmax.f32 %v244_v46, 0.0 }
  0xc1   :  { %v248_v48 = vpack.c.bf16 %v247_v47, %v247_v47 }
  0xc3   :  { %460 = vmatmul.bf16.vlgmr.msra.gmra.mxu1 %v248_v48  ;;  %473 = vmatmul.bf16.vlgmr.msra.gmra.mxu2 %v248_v48 }
  0xc4   :  { %486 = vmatmul.bf16.vlgmr.msra.gmra.mxu3 %v248_v48  ;;  %499 = vmatmul.bf16.vlgmr.msrb.gmra.mxu0 %v248_v48  ;;  %v245_v49 = vpop.f32.mrf.mxu0 }
 0x140   :  { %v461_v53 = vpop.f32.mrf.mxu1 }
 0x141   :  { %v462_v54 = vadd.f32 %v461_v53, %v284_v51  ;;  %v500_v55 = vpop.f32.mrf.mxu0 }
 0x142   :  { %v501_v56 = vadd.f32 %v500_v55, %v287_v52 }
 0x143   :  { %v504_v57 = vmax.f32 %v462_v54, 0.0 }
 0x144   :  { %v507_v59 = vmax.f32 %v501_v56, 0.0 }
 0x145   :  { %v6408_v61 = vpack.c.bf16 %v504_v57, %v504_v57 }
 0x146   :  { %v6410_v62 = vpack.c.bf16 %v507_v59, %v507_v59  ;;  %v474_v63 = vpop.f32.mrf.mxu2 }
 0x147   :  { %v475_v0 = vadd.f32 %v474_v63, %v285_v58  ;;  %v487_v1 = vpop.f32.mrf.mxu3 }
 0x148   :  { %v488_v2 = vadd.f32 %v487_v1, %v286_v60  ;;  %v463_v3 = vpop.f32.mrf.mxu1 }
 0x149   :  { %v505_v4 = vmax.f32 %v475_v0, 0.0  ;;  %v502_v5 = vpop.f32.mrf.mxu0 }
 0x14a   :  { %v506_v6 = vmax.f32 %v488_v2, 0.0 }
 0x14b   :  { %v6412_v7 = vpack.c.bf16 %v505_v4, %v505_v4 }
 0x14c   :  { %v6414_v8 = vpack.c.bf16 %v506_v6, %v506_v6 }
 0x14e   :  { %v476_v9 = vpop.f32.mrf.mxu2 }
 0x14f   :  { %v489_v10 = vpop.f32.mrf.mxu3 }
 0x150   :  { %6295 = dma.done.wait [#allocation5], 32768 }
 0x151   :  { %6296 = vsyncadd [#allocation5], 4294934528  ;;  %v4174_v11 = vld [vmem:[#allocation3 + $0x1c0] sm:$0xf] }
 0x152   :  { %v5682_v12 = vld [vmem:[#allocation3 + $0x1dc] sm:$0xf0] }
 0x153   :  { %v4430_v13 = vld [vmem:[#allocation3 + $0x3c0] sm:$0xf]  ;;  %v4175_v14 = vor.u32 %v5682_v12, %v4174_v11 }
 0x154   :  { %v5746_v15 = vld [vmem:[#allocation3 + $0x3dc] sm:$0xf0] }
 0x155   :  { %v4686_v16 = vld [vmem:[#allocation3 + $0x5c0] sm:$0xf]  ;;  %v4431_v18 = vor.u32 %v5746_v15, %v4430_v13  ;;  %2073 = vmatpush.bf16.msrb.mxu1 %v4175_v14 }
 0x156   :  { %v5810_v17 = vld [vmem:[#allocation3 + $0x5dc] sm:$0xf0] }
 0x157   :  { %v4687_v19 = vor.u32 %v5810_v17, %v4686_v16  ;;  %v4942_v20 = vld [vmem:[#allocation3 + $0x7c0] sm:$0xf]  ;;  %2086 = vmatpush.bf16.msrb.mxu2 %v4431_v18 }
 0x158   :  { %v5874_v21 = vld [vmem:[#allocation3 + $0x7dc] sm:$0xf0] }
 0x159   :  { %v4142_v22 = vld [vmem:[#allocation3 + $0x180] sm:$0xf]  ;;  %v4943_v23 = vor.u32 %v5874_v21, %v4942_v20  ;;  %2099 = vmatpush.bf16.msrb.mxu3 %v4687_v19 }
 0x15a   :  { %v5674_v24 = vld [vmem:[#allocation3 + $0x19c] sm:$0xf0] }
 0x15b   :  { %v4398_v25 = vld [vmem:[#allocation3 + $0x380] sm:$0xf]  ;;  %v4143_v27 = vor.u32 %v5674_v24, %v4142_v22  ;;  %2112 = vmatpush.bf16.msra.mxu0 %v4943_v23 }
 0x15c   :  { %v5738_v26 = vld [vmem:[#allocation3 + $0x39c] sm:$0xf0] }
 0x15d   :  { %v4399_v28 = vor.u32 %v5738_v26, %v4398_v25  ;;  %v4654_v29 = vld [vmem:[#allocation3 + $0x580] sm:$0xf]  ;;  %2074 = vmatpush.bf16.msrb.mxu1 %v4143_v27 }
 0x15e   :  { %v5802_v30 = vld [vmem:[#allocation3 + $0x59c] sm:$0xf0] }
 0x15f   :  { %v4910_v31 = vld [vmem:[#allocation3 + $0x780] sm:$0xf]  ;;  %v4655_v32 = vor.u32 %v5802_v30, %v4654_v29  ;;  %2087 = vmatpush.bf16.msrb.mxu2 %v4399_v28 }
 0x160   :  { %v5866_v33 = vld [vmem:[#allocation3 + $0x79c] sm:$0xf0] }
 0x161   :  { %v4110_v34 = vld [vmem:[#allocation3 + $0x140] sm:$0xf]  ;;  %v4911_v36 = vor.u32 %v5866_v33, %v4910_v31  ;;  %2100 = vmatpush.bf16.msrb.mxu3 %v4655_v32 }
 0x162   :  { %v5666_v35 = vld [vmem:[#allocation3 + $0x15c] sm:$0xf0] }
 0x163   :  { %v4366_v37 = vld [vmem:[#allocation3 + $0x340] sm:$0xf]  ;;  %v4111_v40 = vor.u32 %v5666_v35, %v4110_v34  ;;  %2113 = vmatpush.bf16.msra.mxu0 %v4911_v36 }
 0x164   :  { %v5730_v38 = vld [vmem:[#allocation3 + $0x35c] sm:$0xf0] }
 0x165   :  { %v4622_v39 = vld [vmem:[#allocation3 + $0x540] sm:$0xf]  ;;  %v4367_v44 = vor.u32 %v5730_v38, %v4366_v37  ;;  %2075 = vmatpush.bf16.msrb.mxu1 %v4111_v40 }
 0x166   :  { %v5794_v41 = vld [vmem:[#allocation3 + $0x55c] sm:$0xf0] }
 0x167   :  { %v4878_v42 = vld [vmem:[#allocation3 + $0x740] sm:$0xf]  ;;  %v4623_v45 = vor.u32 %v5794_v41, %v4622_v39  ;;  %2088 = vmatpush.bf16.msrb.mxu2 %v4367_v44  ;;  %v4176_v44 = vld [vmem:[#allocation3 + $0x1e0] sm:$0xf0] }
 0x168   :  { %v5858_v43 = vld [vmem:[#allocation3 + $0x75c] sm:$0xf0] }
 0x169   :  { %v4078_v46 = vld [vmem:[#allocation3 + $0x100] sm:$0xf]  ;;  %v4879_v49 = vor.u32 %v5858_v43, %v4878_v42  ;;  %2101 = vmatpush.bf16.msrb.mxu3 %v4623_v45  ;;  %v5678_v43 = vld [vmem:[#allocation3 + $0x1c4] sm:$0xf] }
 0x16a   :  { %v5658_v47 = vld [vmem:[#allocation3 + $0x11c] sm:$0xf0]  ;;  %v5742_v45 = vld [vmem:[#allocation3 + $0x3c4] sm:$0xf] }
 0x16b   :  { %v4334_v48 = vld [vmem:[#allocation3 + $0x300] sm:$0xf]  ;;  %v4079_v55 = vor.u32 %v5658_v47, %v4078_v46  ;;  %2114 = vmatpush.bf16.msra.mxu0 %v4879_v49  ;;  %v4432_v47 = vld [vmem:[#allocation3 + $0x3e0] sm:$0xf0] }
 0x16c   :  { %v5722_v50 = vld [vmem:[#allocation3 + $0x31c] sm:$0xf0]  ;;  %v4688_v49 = vld [vmem:[#allocation3 + $0x5e0] sm:$0xf0] }
 0x16d   :  { %v4590_v51 = vld [vmem:[#allocation3 + $0x500] sm:$0xf]  ;;  %v4335_v56 = vor.u32 %v5722_v50, %v4334_v48  ;;  %2076 = vmatpush.bf16.msrb.mxu1 %v4079_v55  ;;  %v5806_v48 = vld [vmem:[#allocation3 + $0x5c4] sm:$0xf]  ;;  %v4179_v55 = vor.u32 %v5678_v43, %v4176_v44 }
 0x16e   :  { %v5786_v52 = vld [vmem:[#allocation3 + $0x51c] sm:$0xf0] }
 0x16f   :  { %v4846_v53 = vld [vmem:[#allocation3 + $0x700] sm:$0xf]  ;;  %v4591_v57 = vor.u32 %v5786_v52, %v4590_v51  ;;  %2089 = vmatpush.bf16.msrb.mxu2 %v4335_v56  ;;  %v5870_v52 = vld [vmem:[#allocation3 + $0x7c4] sm:$0xf]  ;;  %v4435_v56 = vor.u32 %v5742_v45, %v4432_v47 }
 0x170   :  { %v5850_v54 = vld [vmem:[#allocation3 + $0x71c] sm:$0xf0]  ;;  %v4016_v47 = vld [vmem:[#allocation3 + $0xa0] sm:$0xf0] }
 0x171   :  { %v4046_v58 = vld [vmem:[#allocation3 + $0xc0] sm:$0xf]  ;;  %v4847_v63 = vor.u32 %v5850_v54, %v4846_v53  ;;  %2102 = vmatpush.bf16.msrb.mxu3 %v4591_v57  ;;  %v4944_v53 = vld [vmem:[#allocation3 + $0x7e0] sm:$0xf0]  ;;  %v4691_v57 = vor.u32 %v5806_v48, %v4688_v49 }
 0x172   :  { %v5650_v59 = vld [vmem:[#allocation3 + $0xdc] sm:$0xf0]  ;;  %v5702_v48 = vld [vmem:[#allocation3 + $0x284] sm:$0xf] }
 0x173   :  { %v4302_v60 = vld [vmem:[#allocation3 + $0x2c0] sm:$0xf]  ;;  %v4047_v5 = vor.u32 %v5650_v59, %v4046_v58  ;;  %2115 = vmatpush.bf16.msra.mxu0 %v4847_v63  ;;  %v5670_v58 = vld [vmem:[#allocation3 + $0x184] sm:$0xf]  ;;  %v4947_v63 = vor.u32 %v5870_v52, %v4944_v53 }
 0x174   :  { %v5714_v0 = vld [vmem:[#allocation3 + $0x2dc] sm:$0xf0]  ;;  %v4144_v59 = vld [vmem:[#allocation3 + $0x1a0] sm:$0xf0] }
 0x175   :  { %v4558_v1 = vld [vmem:[#allocation3 + $0x4c0] sm:$0xf]  ;;  %v4303_v6 = vor.u32 %v5714_v0, %v4302_v60  ;;  %2077 = vmatpush.bf16.msrb.mxu1 %v4047_v5  ;;  %v5734_v60 = vld [vmem:[#allocation3 + $0x384] sm:$0xf]  ;;  %v4147_v5 = vor.u32 %v5670_v58, %v4144_v59 }
 0x176   :  { %v5778_v2 = vld [vmem:[#allocation3 + $0x4dc] sm:$0xf0]  ;;  %v4400_v0 = vld [vmem:[#allocation3 + $0x3a0] sm:$0xf0] }
 0x177   :  { %v4814_v3 = vld [vmem:[#allocation3 + $0x6c0] sm:$0xf]  ;;  %v4559_v9 = vor.u32 %v5778_v2, %v4558_v1  ;;  %2090 = vmatpush.bf16.msrb.mxu2 %v4303_v6  ;;  %v5798_v1 = vld [vmem:[#allocation3 + $0x584] sm:$0xf]  ;;  %v4403_v6 = vor.u32 %v5734_v60, %v4400_v0 }
 0x178   :  { %v5842_v4 = vld [vmem:[#allocation3 + $0x6dc] sm:$0xf0]  ;;  %v4656_v2 = vld [vmem:[#allocation3 + $0x5a0] sm:$0xf0] }
 0x179   :  { %v4014_v10 = vld [vmem:[#allocation3 + $0x80] sm:$0xf]  ;;  %v4815_v13 = vor.u32 %v5842_v4, %v4814_v3  ;;  %2103 = vmatpush.bf16.msrb.mxu3 %v4559_v9  ;;  %v5862_v3 = vld [vmem:[#allocation3 + $0x784] sm:$0xf]  ;;  %v4659_v9 = vor.u32 %v5798_v1, %v4656_v2 }
 0x17a   :  { %v5642_v11 = vld [vmem:[#allocation3 + $0x9c] sm:$0xf0]  ;;  %v4912_v4 = vld [vmem:[#allocation3 + $0x7a0] sm:$0xf0] }
 0x17b   :  { %v4270_v12 = vld [vmem:[#allocation3 + $0x280] sm:$0xf]  ;;  %v4015_v19 = vor.u32 %v5642_v11, %v4014_v10  ;;  %2116 = vmatpush.bf16.msra.mxu0 %v4815_v13  ;;  %v5662_v10 = vld [vmem:[#allocation3 + $0x144] sm:$0xf]  ;;  %v4915_v13 = vor.u32 %v5862_v3, %v4912_v4 }
 0x17c   :  { %v5706_v14 = vld [vmem:[#allocation3 + $0x29c] sm:$0xf0]  ;;  %v4112_v11 = vld [vmem:[#allocation3 + $0x160] sm:$0xf0] }
 0x17d   :  { %v4526_v15 = vld [vmem:[#allocation3 + $0x480] sm:$0xf]  ;;  %v4271_v20 = vor.u32 %v5706_v14, %v4270_v12  ;;  %2078 = vmatpush.bf16.msrb.mxu1 %v4015_v19  ;;  %v5726_v12 = vld [vmem:[#allocation3 + $0x344] sm:$0xf]  ;;  %v4115_v19 = vor.u32 %v5662_v10, %v4112_v11 }
 0x17e   :  { %v5770_v16 = vld [vmem:[#allocation3 + $0x49c] sm:$0xf0]  ;;  %v4368_v14 = vld [vmem:[#allocation3 + $0x360] sm:$0xf0] }
 0x17f   :  { %v4782_v17 = vld [vmem:[#allocation3 + $0x680] sm:$0xf]  ;;  %v4527_v21 = vor.u32 %v5770_v16, %v4526_v15  ;;  %2091 = vmatpush.bf16.msrb.mxu2 %v4271_v20  ;;  %v5790_v15 = vld [vmem:[#allocation3 + $0x544] sm:$0xf]  ;;  %v4371_v20 = vor.u32 %v5726_v12, %v4368_v14 }
 0x180   :  { %v5834_v18 = vld [vmem:[#allocation3 + $0x69c] sm:$0xf0]  ;;  %v4624_v16 = vld [vmem:[#allocation3 + $0x560] sm:$0xf0] }
 0x181   :  { %v3982_v22 = vld [vmem:[#allocation3 + $0x40] sm:$0xf]  ;;  %v4783_v25 = vor.u32 %v5834_v18, %v4782_v17  ;;  %2104 = vmatpush.bf16.msrb.mxu3 %v4527_v21  ;;  %v5854_v17 = vld [vmem:[#allocation3 + $0x744] sm:$0xf]  ;;  %v4627_v21 = vor.u32 %v5790_v15, %v4624_v16 }
 0x182   :  { %v5634_v23 = vld [vmem:[#allocation3 + $0x5c] sm:$0xf0]  ;;  %v4880_v18 = vld [vmem:[#allocation3 + $0x760] sm:$0xf0] }
 0x183   :  { %v4238_v24 = vld [vmem:[#allocation3 + $0x240] sm:$0xf]  ;;  %v3983_v31 = vor.u32 %v5634_v23, %v3982_v22  ;;  %2117 = vmatpush.bf16.msra.mxu0 %v4783_v25  ;;  %v5654_v22 = vld [vmem:[#allocation3 + $0x104] sm:$0xf]  ;;  %v4883_v25 = vor.u32 %v5854_v17, %v4880_v18 }
 0x184   :  { %v5698_v26 = vld [vmem:[#allocation3 + $0x25c] sm:$0xf0]  ;;  %v4080_v23 = vld [vmem:[#allocation3 + $0x120] sm:$0xf0] }
 0x185   :  { %v4494_v27 = vld [vmem:[#allocation3 + $0x440] sm:$0xf]  ;;  %v4239_v34 = vor.u32 %v5698_v26, %v4238_v24  ;;  %2079 = vmatpush.bf16.msrb.mxu1 %v3983_v31  ;;  %v5718_v24 = vld [vmem:[#allocation3 + $0x304] sm:$0xf]  ;;  %v4083_v31 = vor.u32 %v5654_v22, %v4080_v23  ;;  %v5747_v23 = vld [vmem:[#allocation3 + $0x3e4] sm:$0xf0] }
 0x186   :  { %v5762_v28 = vld [vmem:[#allocation3 + $0x45c] sm:$0xf0]  ;;  %v4336_v26 = vld [vmem:[#allocation3 + $0x320] sm:$0xf0] }
 0x187   :  { %v4750_v29 = vld [vmem:[#allocation3 + $0x640] sm:$0xf]  ;;  %v4495_v35 = vor.u32 %v5762_v28, %v4494_v27  ;;  %2092 = vmatpush.bf16.msrb.mxu2 %v4239_v34  ;;  %v5782_v27 = vld [vmem:[#allocation3 + $0x504] sm:$0xf] }
 0x188   :  { %v5826_v30 = vld [vmem:[#allocation3 + $0x65c] sm:$0xf0]  ;;  %v4592_v28 = vld [vmem:[#allocation3 + $0x520] sm:$0xf0] }
 0x189   :  { %v3950_v32 = vld [vmem:[#allocation3] sm:$0xf]  ;;  %v4751_v39 = vor.u32 %v5826_v30, %v4750_v29  ;;  %2105 = vmatpush.bf16.msrb.mxu3 %v4495_v35  ;;  %v5846_v29 = vld [vmem:[#allocation3 + $0x704] sm:$0xf] }
 0x18a   :  { %v5626_v33 = vld [vmem:[#allocation3 + $0x1c] sm:$0xf0]  ;;  %v4848_v30 = vld [vmem:[#allocation3 + $0x720] sm:$0xf0] }
 0x18b   :  { %v4206_v36 = vld [vmem:[#allocation3 + $0x200] sm:$0xf]  ;;  %v3951_v46 = vor.u32 %v5626_v33, %v3950_v32  ;;  %2118 = vmatpush.bf16.msra.mxu0 %v4751_v39  ;;  %v4339_v32 = vor.u32 %v5718_v24, %v4336_v26  ;;  %v4595_v33 = vor.u32 %v5782_v27, %v4592_v28  ;;  %v5646_v34 = vld [vmem:[#allocation3 + $0xc4] sm:$0xf]  ;;  %v4694_v24 = vld [vmem:[#allocation3 + $0x5c8] sm:$0xf] }
 0x18c   :  { %v5690_v37 = vld [vmem:[#allocation3 + $0x21c] sm:$0xf0]  ;;  %v4048_v35 = vld [vmem:[#allocation3 + $0xe0] sm:$0xf0]  ;;  %v4950_v28 = vld [vmem:[#allocation3 + $0x7c8] sm:$0xf] }
 0x18d   :  { %v4462_v38 = vld [vmem:[#allocation3 + $0x400] sm:$0xf]  ;;  %v4207_v50 = vor.u32 %v5690_v37, %v4206_v36  ;;  %2080 = vmatpush.bf16.msrb.mxu1 %v3951_v46  ;;  %v5710_v36 = vld [vmem:[#allocation3 + $0x2c4] sm:$0xf]  ;;  %v4851_v37 = vor.u32 %v5846_v29, %v4848_v30  ;;  %v4051_v43 = vor.u32 %v5646_v34, %v4048_v35  ;;  %v5875_v29 = vld [vmem:[#allocation3 + $0x7e4] sm:$0xf0] }
 0x18e   :  { %v5754_v40 = vld [vmem:[#allocation3 + $0x41c] sm:$0xf0]  ;;  %v5774_v39 = vld [vmem:[#allocation3 + $0x4c4] sm:$0xf]  ;;  %v4150_v34 = vld [vmem:[#allocation3 + $0x188] sm:$0xf] }
 0x18f   :  { %v4718_v41 = vld [vmem:[#allocation3 + $0x600] sm:$0xf]  ;;  %v4463_v51 = vor.u32 %v5754_v40, %v4462_v38  ;;  %2093 = vmatpush.bf16.msrb.mxu2 %v4207_v50  ;;  %v4304_v38 = vld [vmem:[#allocation3 + $0x2e0] sm:$0xf0]  ;;  %v5675_v35 = vld [vmem:[#allocation3 + $0x1a4] sm:$0xf0] }
 0x190   :  { %v5818_v42 = vld [vmem:[#allocation3 + $0x61c] sm:$0xf0]  ;;  %2081 = vmatmul.bf16.vlgmr.msrb.gmra.mxu1 %v6408_v61  ;;  %v4560_v40 = vld [vmem:[#allocation3 + $0x4e0] sm:$0xf0]  ;;  %v4307_v44 = vor.u32 %v5710_v36, %v4304_v38  ;;  %v4406_v36 = vld [vmem:[#allocation3 + $0x388] sm:$0xf] }
 0x191   :  { %v4719_v54 = vor.u32 %v5818_v42, %v4718_v41  ;;  %2106 = vmatpush.bf16.msrb.mxu3 %v4463_v51  ;;  %2125 = vmatpush.bf16.msra.mxu1 %v4179_v55  ;;  %v5838_v41 = vld [vmem:[#allocation3 + $0x6c4] sm:$0xf]  ;;  %v4563_v45 = vor.u32 %v5774_v39, %v4560_v40  ;;  %v5739_v38 = vld [vmem:[#allocation3 + $0x3a4] sm:$0xf0] }
 0x192   :  { %2094 = vmatmul.bf16.vlgmr.msrb.gmra.mxu2 %v6412_v7  ;;  %v4816_v42 = vld [vmem:[#allocation3 + $0x6e0] sm:$0xf0]  ;;  %v4662_v39 = vld [vmem:[#allocation3 + $0x588] sm:$0xf] }
 0x193   :  { %2119 = vmatpush.bf16.msra.mxu0 %v4719_v54  ;;  %2138 = vmatpush.bf16.msra.mxu2 %v4435_v56  ;;  %v5638_v46 = vld [vmem:[#allocation3 + $0x84] sm:$0xf]  ;;  %v4819_v49 = vor.u32 %v5838_v41, %v4816_v42  ;;  %v5803_v40 = vld [vmem:[#allocation3 + $0x5a4] sm:$0xf0] }
 0x194   :  { %2107 = vmatmul.bf16.vlgmr.msrb.gmra.mxu3 %v6414_v8  ;;  %v4272_v50 = vld [vmem:[#allocation3 + $0x2a0] sm:$0xf0]  ;;  %v4019_v55 = vor.u32 %v5638_v46, %v4016_v47  ;;  %v4918_v41 = vld [vmem:[#allocation3 + $0x788] sm:$0xf] }
 0x195   :  { %2151 = vmatpush.bf16.msra.mxu3 %v4691_v57  ;;  %2126 = vmatpush.bf16.msra.mxu1 %v4147_v5  ;;  %v5766_v51 = vld [vmem:[#allocation3 + $0x484] sm:$0xf]  ;;  %v4275_v56 = vor.u32 %v5702_v48, %v4272_v50  ;;  %v5867_v42 = vld [vmem:[#allocation3 + $0x7a4] sm:$0xf0] }
 0x196   :  { %2120 = vmatmul.bf16.vlgmr.msra.gmra.mxu0 %v6410_v62  ;;  %v4528_v52 = vld [vmem:[#allocation3 + $0x4a0] sm:$0xf0]  ;;  %v4118_v46 = vld [vmem:[#allocation3 + $0x148] sm:$0xf] }
 0x197   :  { %2164 = vmatpush.bf16.msrb.mxu0 %v4947_v63  ;;  %2139 = vmatpush.bf16.msra.mxu2 %v4403_v6  ;;  %v5830_v53 = vld [vmem:[#allocation3 + $0x684] sm:$0xf]  ;;  %v4531_v57 = vor.u32 %v5766_v51, %v4528_v52  ;;  %v5667_v47 = vld [vmem:[#allocation3 + $0x164] sm:$0xf0] }
 0x198   :  { %v4784_v54 = vld [vmem:[#allocation3 + $0x6a0] sm:$0xf0]  ;;  %v4374_v48 = vld [vmem:[#allocation3 + $0x348] sm:$0xf] }
 0x199   :  { %2152 = vmatpush.bf16.msra.mxu3 %v4659_v9  ;;  %2127 = vmatpush.bf16.msra.mxu1 %v4115_v19  ;;  %v5630_v58 = vld [vmem:[#allocation3 + $0x44] sm:$0xf]  ;;  %v4787_v63 = vor.u32 %v5830_v53, %v4784_v54  ;;  %v4182_v19 = vld [vmem:[#allocation3 + $0x1c8] sm:$0xf] }
 0x19a   :  { %v3984_v59 = vld [vmem:[#allocation3 + $0x60] sm:$0xf0]  ;;  %v5731_v50 = vld [vmem:[#allocation3 + $0x364] sm:$0xf0] }
 0x19b   :  { %2165 = vmatpush.bf16.msrb.mxu0 %v4915_v13  ;;  %2140 = vmatpush.bf16.msra.mxu2 %v4371_v20  ;;  %v5694_v60 = vld [vmem:[#allocation3 + $0x244] sm:$0xf]  ;;  %v3987_v5 = vor.u32 %v5630_v58, %v3984_v59  ;;  %v5683_v20 = vld [vmem:[#allocation3 + $0x1e4] sm:$0xf0] }
 0x19c   :  { %v4240_v0 = vld [vmem:[#allocation3 + $0x260] sm:$0xf0]  ;;  %v4630_v51 = vld [vmem:[#allocation3 + $0x548] sm:$0xf] }
 0x19d   :  { %2153 = vmatpush.bf16.msra.mxu3 %v4627_v21  ;;  %2128 = vmatpush.bf16.msra.mxu1 %v4083_v31  ;;  %v5758_v1 = vld [vmem:[#allocation3 + $0x444] sm:$0xf]  ;;  %v4243_v10 = vor.u32 %v5694_v60, %v4240_v0  ;;  %v4438_v21 = vld [vmem:[#allocation3 + $0x3c8] sm:$0xf]  ;;  %v4183_v31 = vor.u32 %v5683_v20, %v4182_v19 }
 0x19e   :  { %v4496_v2 = vld [vmem:[#allocation3 + $0x460] sm:$0xf0]  ;;  %v5795_v52 = vld [vmem:[#allocation3 + $0x564] sm:$0xf0] }
 0x19f   :  { %2166 = vmatpush.bf16.msrb.mxu0 %v4883_v25  ;;  %2141 = vmatpush.bf16.msra.mxu2 %v4339_v32  ;;  %v5822_v3 = vld [vmem:[#allocation3 + $0x644] sm:$0xf]  ;;  %v4499_v11 = vor.u32 %v5758_v1, %v4496_v2  ;;  %v5811_v25 = vld [vmem:[#allocation3 + $0x5e4] sm:$0xf0]  ;;  %v4439_v32 = vor.u32 %v5747_v23, %v4438_v21 }
 0x1a0   :  { %v4752_v4 = vld [vmem:[#allocation3 + $0x660] sm:$0xf0]  ;;  %v4886_v53 = vld [vmem:[#allocation3 + $0x748] sm:$0xf] }
 0x1a1   :  { %2154 = vmatpush.bf16.msra.mxu3 %v4595_v33  ;;  %2129 = vmatpush.bf16.msra.mxu1 %v4051_v43  ;;  %v5622_v6 = vld [vmem:[#allocation3 + $0x4] sm:$0xf]  ;;  %v4755_v15 = vor.u32 %v5822_v3, %v4752_v4  ;;  %v4695_v33 = vor.u32 %v5811_v25, %v4694_v24  ;;  %v4151_v43 = vor.u32 %v5675_v35, %v4150_v34  ;;  %v5859_v54 = vld [vmem:[#allocation3 + $0x764] sm:$0xf0] }
 0x1a2   :  { %v3952_v9 = vld [vmem:[#allocation3 + $0x20] sm:$0xf0]  ;;  %v4086_v58 = vld [vmem:[#allocation3 + $0x108] sm:$0xf] }
 0x1a3   :  { %2167 = vmatpush.bf16.msrb.mxu0 %v4851_v37  ;;  %2142 = vmatpush.bf16.msra.mxu2 %v4307_v44  ;;  %v5686_v12 = vld [vmem:[#allocation3 + $0x204] sm:$0xf]  ;;  %v3955_v22 = vor.u32 %v5622_v6, %v3952_v9  ;;  %v4951_v37 = vor.u32 %v5875_v29, %v4950_v28  ;;  %v4407_v44 = vor.u32 %v5739_v38, %v4406_v36  ;;  %v5659_v59 = vld [vmem:[#allocation3 + $0x124] sm:$0xf0] }
 0x1a4   :  { %v4208_v13 = vld [vmem:[#allocation3 + $0x220] sm:$0xf0]  ;;  %v4342_v60 = vld [vmem:[#allocation3 + $0x308] sm:$0xf] }
 0x1a5   :  { %2155 = vmatpush.bf16.msra.mxu3 %v4563_v45  ;;  %2130 = vmatpush.bf16.msra.mxu1 %v4019_v55  ;;  %v5750_v14 = vld [vmem:[#allocation3 + $0x404] sm:$0xf]  ;;  %v4211_v26 = vor.u32 %v5686_v12, %v4208_v13  ;;  %v4663_v45 = vor.u32 %v5803_v40, %v4662_v39  ;;  %v4119_v55 = vor.u32 %v5667_v47, %v4118_v46  ;;  %v5723_v0 = vld [vmem:[#allocation3 + $0x324] sm:$0xf0] }
 0x1a6   :  { %v4464_v16 = vld [vmem:[#allocation3 + $0x420] sm:$0xf0]  ;;  %v4598_v1 = vld [vmem:[#allocation3 + $0x508] sm:$0xf]  ;;  %v4343_v6 = vor.u32 %v5723_v0, %v4342_v60  ;;  %v5807_v60 = vld [vmem:[#allocation3 + $0x5cc] sm:$0xf] }
 0x1a7   :  { %2168 = vmatpush.bf16.msrb.mxu0 %v4819_v49  ;;  %2143 = vmatpush.bf16.msra.mxu2 %v4275_v56  ;;  %v5814_v17 = vld [vmem:[#allocation3 + $0x604] sm:$0xf]  ;;  %v4467_v27 = vor.u32 %v5750_v14, %v4464_v16  ;;  %v4919_v49 = vor.u32 %v5867_v42, %v4918_v41  ;;  %v4375_v56 = vor.u32 %v5731_v50, %v4374_v48  ;;  %v5787_v2 = vld [vmem:[#allocation3 + $0x524] sm:$0xf0] }
 0x1a8   :  { %v4720_v18 = vld [vmem:[#allocation3 + $0x620] sm:$0xf0]  ;;  %v4854_v3 = vld [vmem:[#allocation3 + $0x708] sm:$0xf]  ;;  %v4599_v9 = vor.u32 %v5787_v2, %v4598_v1  ;;  %v5871_v2 = vld [vmem:[#allocation3 + $0x7cc] sm:$0xf] }
 0x1a9   :  { %2156 = vmatpush.bf16.msra.mxu3 %v4531_v57  ;;  %2131 = vmatpush.bf16.msra.mxu1 %v3987_v5  ;;  %v4723_v30 = vor.u32 %v5814_v17, %v4720_v18  ;;  %v4631_v57 = vor.u32 %v5795_v52, %v4630_v51  ;;  %v5851_v4 = vld [vmem:[#allocation3 + $0x724] sm:$0xf0]  ;;  %v4087_v5 = vor.u32 %v5659_v59, %v4086_v58  ;;  %v4440_v59 = vld [vmem:[#allocation3 + $0x3e8] sm:$0xf0] }
 0x1aa   :  { %v4310_v12 = vld [vmem:[#allocation3 + $0x2c8] sm:$0xf]  ;;  %v4855_v13 = vor.u32 %v5851_v4, %v4854_v3  ;;  %v4952_v3 = vld [vmem:[#allocation3 + $0x7e8] sm:$0xf0] }
 0x1ab   :  { %2169 = vmatpush.bf16.msrb.mxu0 %v4787_v63  ;;  %2144 = vmatpush.bf16.msra.mxu2 %v4243_v10  ;;  %v4887_v63 = vor.u32 %v5859_v54, %v4886_v53  ;;  %v4054_v10 = vld [vmem:[#allocation3 + $0xc8] sm:$0xf] }
 0x1ac   :  { %v5715_v14 = vld [vmem:[#allocation3 + $0x2e4] sm:$0xf0] }
 0x1ad   :  { %2157 = vmatpush.bf16.msra.mxu3 %v4499_v11  ;;  %2132 = vmatpush.bf16.msra.mxu1 %v3955_v22  ;;  %v5651_v11 = vld [vmem:[#allocation3 + $0xe4] sm:$0xf0]  ;;  %v4311_v20 = vor.u32 %v5715_v14, %v4310_v12  ;;  %v5735_v12 = vld [vmem:[#allocation3 + $0x38c] sm:$0xf] }
 0x1ae   :  { %v5779_v16 = vld [vmem:[#allocation3 + $0x4e4] sm:$0xf0]  ;;  %v4055_v19 = vor.u32 %v5651_v11, %v4054_v10  ;;  %v5671_v10 = vld [vmem:[#allocation3 + $0x18c] sm:$0xf] }
 0x1af   :  { %2170 = vmatpush.bf16.msrb.mxu0 %v4755_v15  ;;  %2145 = vmatpush.bf16.msra.mxu2 %v4211_v26  ;;  %v4566_v15 = vld [vmem:[#allocation3 + $0x4c8] sm:$0xf]  ;;  %v4152_v11 = vld [vmem:[#allocation3 + $0x1a8] sm:$0xf0] }
 0x1b0   :  { %2133 = vmatmul.bf16.vlgmr.msra.gmra.mxu1 %v6408_v61  ;;  %v4822_v17 = vld [vmem:[#allocation3 + $0x6c8] sm:$0xf]  ;;  %v4567_v21 = vor.u32 %v5779_v16, %v4566_v15  ;;  %v4408_v14 = vld [vmem:[#allocation3 + $0x3a8] sm:$0xf0] }
 0x1b1   :  { %2158 = vmatpush.bf16.msra.mxu3 %v4467_v27  ;;  %2177 = vmatpush.bf16.msrb.mxu1 %v4183_v31  ;;  %v5843_v18 = vld [vmem:[#allocation3 + $0x6e4] sm:$0xf0]  ;;  %v5799_v15 = vld [vmem:[#allocation3 + $0x58c] sm:$0xf] }
 0x1b2   :  { %2146 = vmatmul.bf16.vlgmr.msra.gmra.mxu2 %v6412_v7  ;;  %v4022_v22 = vld [vmem:[#allocation3 + $0x88] sm:$0xf]  ;;  %v4823_v25 = vor.u32 %v5843_v18, %v4822_v17  ;;  %v4664_v16 = vld [vmem:[#allocation3 + $0x5a8] sm:$0xf0] }
 0x1b3   :  { %2171 = vmatpush.bf16.msrb.mxu0 %v4723_v30  ;;  %2190 = vmatpush.bf16.msrb.mxu2 %v4439_v32  ;;  %v5643_v23 = vld [vmem:[#allocation3 + $0xa4] sm:$0xf0]  ;;  %v5863_v17 = vld [vmem:[#allocation3 + $0x78c] sm:$0xf] }
 0x1b4   :  { %2159 = vmatmul.bf16.vlgmr.msra.gmra.mxu3 %v6414_v8  ;;  %v4278_v24 = vld [vmem:[#allocation3 + $0x288] sm:$0xf]  ;;  %v4023_v31 = vor.u32 %v5643_v23, %v4022_v22  ;;  %v4920_v18 = vld [vmem:[#allocation3 + $0x7a8] sm:$0xf0] }
 0x1b5   :  { %2203 = vmatpush.bf16.msrb.mxu3 %v4695_v33  ;;  %2178 = vmatpush.bf16.msrb.mxu1 %v4151_v43  ;;  %v5707_v26 = vld [vmem:[#allocation3 + $0x2a4] sm:$0xf0]  ;;  %v5663_v22 = vld [vmem:[#allocation3 + $0x14c] sm:$0xf] }
 0x1b6   :  { %2172 = vmatmul.bf16.vlgmr.msrb.gmra.mxu0 %v6410_v62  ;;  %v4534_v27 = vld [vmem:[#allocation3 + $0x488] sm:$0xf]  ;;  %v4279_v32 = vor.u32 %v5707_v26, %v4278_v24  ;;  %v4120_v23 = vld [vmem:[#allocation3 + $0x168] sm:$0xf0] }
 0x1b7   :  { %2216 = vmatpush.bf16.msra.mxu0 %v4951_v37  ;;  %2191 = vmatpush.bf16.msrb.mxu2 %v4407_v44  ;;  %v5771_v28 = vld [vmem:[#allocation3 + $0x4a4] sm:$0xf0]  ;;  %v5727_v24 = vld [vmem:[#allocation3 + $0x34c] sm:$0xf] }
 0x1b8   :  { %v4790_v29 = vld [vmem:[#allocation3 + $0x688] sm:$0xf]  ;;  %v4535_v33 = vor.u32 %v5771_v28, %v4534_v27  ;;  %v4376_v26 = vld [vmem:[#allocation3 + $0x368] sm:$0xf0] }
 0x1b9   :  { %2204 = vmatpush.bf16.msrb.mxu3 %v4663_v45  ;;  %2179 = vmatpush.bf16.msrb.mxu1 %v4119_v55  ;;  %v5835_v30 = vld [vmem:[#allocation3 + $0x6a4] sm:$0xf0]  ;;  %v5679_v55 = vld [vmem:[#allocation3 + $0x1cc] sm:$0xf] }
 0x1ba   :  { %v3990_v34 = vld [vmem:[#allocation3 + $0x48] sm:$0xf]  ;;  %v4791_v37 = vor.u32 %v5835_v30, %v4790_v29  ;;  %v5791_v27 = vld [vmem:[#allocation3 + $0x54c] sm:$0xf] }
 0x1bb   :  { %2217 = vmatpush.bf16.msra.mxu0 %v4919_v49  ;;  %2192 = vmatpush.bf16.msrb.mxu2 %v4375_v56  ;;  %v5635_v35 = vld [vmem:[#allocation3 + $0x64] sm:$0xf0]  ;;  %v4184_v56 = vld [vmem:[#allocation3 + $0x1e8] sm:$0xf0] }
 0x1bc   :  { %v4246_v36 = vld [vmem:[#allocation3 + $0x248] sm:$0xf]  ;;  %v3991_v43 = vor.u32 %v5635_v35, %v3990_v34  ;;  %v4632_v28 = vld [vmem:[#allocation3 + $0x568] sm:$0xf0] }
 0x1bd   :  { %2205 = vmatpush.bf16.msrb.mxu3 %v4631_v57  ;;  %2180 = vmatpush.bf16.msrb.mxu1 %v4087_v5  ;;  %v5699_v38 = vld [vmem:[#allocation3 + $0x264] sm:$0xf0]  ;;  %v5743_v57 = vld [vmem:[#allocation3 + $0x3cc] sm:$0xf]  ;;  %v4187_v5 = vor.u32 %v5679_v55, %v4184_v56 }
 0x1be   :  { %v4502_v39 = vld [vmem:[#allocation3 + $0x448] sm:$0xf]  ;;  %v4247_v46 = vor.u32 %v5699_v38, %v4246_v36  ;;  %v5855_v29 = vld [vmem:[#allocation3 + $0x74c] sm:$0xf] }
 0x1bf   :  { %2218 = vmatpush.bf16.msra.mxu0 %v4887_v63  ;;  %2193 = vmatpush.bf16.msrb.mxu2 %v4343_v6  ;;  %v5763_v40 = vld [vmem:[#allocation3 + $0x464] sm:$0xf0]  ;;  %v4696_v63 = vld [vmem:[#allocation3 + $0x5e8] sm:$0xf0]  ;;  %v4443_v6 = vor.u32 %v5743_v57, %v4440_v59 }
 0x1c0   :  { %v4758_v41 = vld [vmem:[#allocation3 + $0x648] sm:$0xf]  ;;  %v4503_v47 = vor.u32 %v5763_v40, %v4502_v39  ;;  %v4888_v30 = vld [vmem:[#allocation3 + $0x768] sm:$0xf0] }
 0x1c1   :  { %2206 = vmatpush.bf16.msrb.mxu3 %v4599_v9  ;;  %2181 = vmatpush.bf16.msrb.mxu1 %v4055_v19  ;;  %v5827_v42 = vld [vmem:[#allocation3 + $0x664] sm:$0xf0]  ;;  %v4699_v9 = vor.u32 %v5807_v60, %v4696_v63  ;;  %v4155_v19 = vor.u32 %v5671_v10, %v4152_v11  ;;  %v5655_v34 = vld [vmem:[#allocation3 + $0x10c] sm:$0xf] }
 0x1c2   :  { %v3958_v44 = vld [vmem:[#allocation3 + $0x8] sm:$0xf]  ;;  %v4759_v51 = vor.u32 %v5827_v42, %v4758_v41  ;;  %v4088_v35 = vld [vmem:[#allocation3 + $0x128] sm:$0xf0] }
 0x1c3   :  { %2219 = vmatpush.bf16.msra.mxu0 %v4855_v13  ;;  %2194 = vmatpush.bf16.msrb.mxu2 %v4311_v20  ;;  %v5627_v45 = vld [vmem:[#allocation3 + $0x24] sm:$0xf0]  ;;  %v4955_v13 = vor.u32 %v5871_v2, %v4952_v3  ;;  %v4411_v20 = vor.u32 %v5735_v12, %v4408_v14  ;;  %v5719_v36 = vld [vmem:[#allocation3 + $0x30c] sm:$0xf] }
 0x1c4   :  { %v4214_v48 = vld [vmem:[#allocation3 + $0x208] sm:$0xf]  ;;  %v3959_v58 = vor.u32 %v5627_v45, %v3958_v44  ;;  %v4344_v38 = vld [vmem:[#allocation3 + $0x328] sm:$0xf0] }
 0x1c5   :  { %2207 = vmatpush.bf16.msrb.mxu3 %v4567_v21  ;;  %2182 = vmatpush.bf16.msrb.mxu1 %v4023_v31  ;;  %v5691_v49 = vld [vmem:[#allocation3 + $0x224] sm:$0xf0]  ;;  %v4667_v21 = vor.u32 %v5799_v15, %v4664_v16  ;;  %v4123_v31 = vor.u32 %v5663_v22, %v4120_v23  ;;  %v5783_v39 = vld [vmem:[#allocation3 + $0x50c] sm:$0xf]  ;;  %v4347_v44 = vor.u32 %v5719_v36, %v4344_v38  ;;  %v4702_v36 = vld [vmem:[#allocation3 + $0x5d0] sm:$0xf] }
 0x1c6   :  { %v4470_v50 = vld [vmem:[#allocation3 + $0x408] sm:$0xf]  ;;  %v4215_v0 = vor.u32 %v5691_v49, %v4214_v48  ;;  %v4600_v40 = vld [vmem:[#allocation3 + $0x528] sm:$0xf0] }
 0x1c7   :  { %2220 = vmatpush.bf16.msra.mxu0 %v4823_v25  ;;  %2195 = vmatpush.bf16.msrb.mxu2 %v4279_v32  ;;  %v5755_v52 = vld [vmem:[#allocation3 + $0x424] sm:$0xf0]  ;;  %v4923_v25 = vor.u32 %v5863_v17, %v4920_v18  ;;  %v4379_v32 = vor.u32 %v5727_v24, %v4376_v26  ;;  %v5847_v41 = vld [vmem:[#allocation3 + $0x70c] sm:$0xf]  ;;  %v4603_v45 = vor.u32 %v5783_v39, %v4600_v40  ;;  %v4958_v40 = vld [vmem:[#allocation3 + $0x7d0] sm:$0xf] }
 0x1c8   :  { %v4726_v53 = vld [vmem:[#allocation3 + $0x608] sm:$0xf]  ;;  %v4471_v1 = vor.u32 %v5755_v52, %v4470_v50  ;;  %v4856_v42 = vld [vmem:[#allocation3 + $0x728] sm:$0xf0] }
 0x1c9   :  { %2208 = vmatpush.bf16.msrb.mxu3 %v4535_v33  ;;  %v5819_v54 = vld [vmem:[#allocation3 + $0x624] sm:$0xf0]  ;;  %2183 = vmatpush.bf16.msrb.mxu1 %v3991_v43  ;;  %v4635_v33 = vor.u32 %v5791_v27, %v4632_v28  ;;  %v4091_v43 = vor.u32 %v5655_v34, %v4088_v35  ;;  %v5711_v48 = vld [vmem:[#allocation3 + $0x2cc] sm:$0xf]  ;;  %v4859_v49 = vor.u32 %v5847_v41, %v4856_v42  ;;  %v5748_v35 = vld [vmem:[#allocation3 + $0x3ec] sm:$0xf0] }
 0x1ca   :  { %v4727_v4 = vor.u32 %v5819_v54, %v4726_v53  ;;  %v4312_v50 = vld [vmem:[#allocation3 + $0x2e8] sm:$0xf0]  ;;  %v5876_v41 = vld [vmem:[#allocation3 + $0x7ec] sm:$0xf0] }
 0x1cb   :  { %2221 = vmatpush.bf16.msra.mxu0 %v4791_v37  ;;  %2196 = vmatpush.bf16.msrb.mxu2 %v4247_v46  ;;  %v4891_v37 = vor.u32 %v5855_v29, %v4888_v30  ;;  %v5647_v46 = vld [vmem:[#allocation3 + $0xcc] sm:$0xf]  ;;  %v4315_v56 = vor.u32 %v5711_v48, %v4312_v50  ;;  %v4414_v48 = vld [vmem:[#allocation3 + $0x390] sm:$0xf] }
 0x1cc   :  { %v4568_v52 = vld [vmem:[#allocation3 + $0x4e8] sm:$0xf0]  ;;  %v5740_v50 = vld [vmem:[#allocation3 + $0x3ac] sm:$0xf0] }
 0x1cd   :  { %2209 = vmatpush.bf16.msrb.mxu3 %v4503_v47  ;;  %2184 = vmatpush.bf16.msrb.mxu1 %v3959_v58  ;;  %v4056_v47 = vld [vmem:[#allocation3 + $0xe8] sm:$0xf0] }
 0x1ce   :  { %v5839_v53 = vld [vmem:[#allocation3 + $0x6cc] sm:$0xf]  ;;  %v4059_v55 = vor.u32 %v5647_v46, %v4056_v47  ;;  %v4158_v46 = vld [vmem:[#allocation3 + $0x190] sm:$0xf] }
 0x1cf   :  { %2222 = vmatpush.bf16.msra.mxu0 %v4759_v51  ;;  %2197 = vmatpush.bf16.msrb.mxu2 %v4215_v0  ;;  %v5775_v51 = vld [vmem:[#allocation3 + $0x4cc] sm:$0xf]  ;;  %v5676_v47 = vld [vmem:[#allocation3 + $0x1ac] sm:$0xf0] }
 0x1d0   :  { %2185 = vmatmul.bf16.vlgmr.msrb.gmra.mxu1 %v6408_v61  ;;  %v4824_v54 = vld [vmem:[#allocation3 + $0x6e8] sm:$0xf0]  ;;  %v4571_v57 = vor.u32 %v5775_v51, %v4568_v52  ;;  %v4670_v51 = vld [vmem:[#allocation3 + $0x590] sm:$0xf] }
 0x1d1   :  { %2210 = vmatpush.bf16.msrb.mxu3 %v4471_v1  ;;  %2229 = vmatpush.bf16.msra.mxu1 %v4187_v5  ;;  %v5639_v58 = vld [vmem:[#allocation3 + $0x8c] sm:$0xf]  ;;  %v4827_v63 = vor.u32 %v5839_v53, %v4824_v54  ;;  %v5804_v52 = vld [vmem:[#allocation3 + $0x5ac] sm:$0xf0] }
 0x1d2   :  { %2198 = vmatmul.bf16.vlgmr.msrb.gmra.mxu2 %v6412_v7  ;;  %v4024_v59 = vld [vmem:[#allocation3 + $0xa8] sm:$0xf0]  ;;  %v4926_v53 = vld [vmem:[#allocation3 + $0x790] sm:$0xf] }
 0x1d3   :  { %2223 = vmatpush.bf16.msra.mxu0 %v4727_v4  ;;  %2242 = vmatpush.bf16.msra.mxu2 %v4443_v6  ;;  %v5703_v60 = vld [vmem:[#allocation3 + $0x28c] sm:$0xf]  ;;  %v4027_v5 = vor.u32 %v5639_v58, %v4024_v59  ;;  %v5868_v54 = vld [vmem:[#allocation3 + $0x7ac] sm:$0xf0] }
 0x1d4   :  { %2211 = vmatmul.bf16.vlgmr.msrb.gmra.mxu3 %v6414_v8  ;;  %v4280_v0 = vld [vmem:[#allocation3 + $0x2a8] sm:$0xf0]  ;;  %v4126_v58 = vld [vmem:[#allocation3 + $0x150] sm:$0xf] }
 0x1d5   :  { %2255 = vmatpush.bf16.msra.mxu3 %v4699_v9  ;;  %2230 = vmatpush.bf16.msra.mxu1 %v4155_v19  ;;  %v5767_v1 = vld [vmem:[#allocation3 + $0x48c] sm:$0xf]  ;;  %v4283_v6 = vor.u32 %v5703_v60, %v4280_v0  ;;  %v5668_v59 = vld [vmem:[#allocation3 + $0x16c] sm:$0xf0] }
 0x1d6   :  { %2224 = vmatmul.bf16.vlgmr.msra.gmra.mxu0 %v6410_v62  ;;  %v4536_v2 = vld [vmem:[#allocation3 + $0x4a8] sm:$0xf0]  ;;  %v4382_v60 = vld [vmem:[#allocation3 + $0x350] sm:$0xf] }
 0x1d7   :  { %2268 = vmatpush.bf16.msrb.mxu0 %v4955_v13  ;;  %2243 = vmatpush.bf16.msra.mxu2 %v4411_v20  ;;  %v5831_v3 = vld [vmem:[#allocation3 + $0x68c] sm:$0xf]  ;;  %v4539_v9 = vor.u32 %v5767_v1, %v4536_v2  ;;  %v5732_v0 = vld [vmem:[#allocation3 + $0x36c] sm:$0xf0] }
 0x1d8   :  { %v4792_v4 = vld [vmem:[#allocation3 + $0x6a8] sm:$0xf0]  ;;  %v4638_v1 = vld [vmem:[#allocation3 + $0x550] sm:$0xf] }
 0x1d9   :  { %2256 = vmatpush.bf16.msra.mxu3 %v4667_v21  ;;  %2231 = vmatpush.bf16.msra.mxu1 %v4123_v31  ;;  %v5631_v10 = vld [vmem:[#allocation3 + $0x4c] sm:$0xf]  ;;  %v4795_v13 = vor.u32 %v5831_v3, %v4792_v4  ;;  %v4190_v31 = vld [vmem:[#allocation3 + $0x1d0] sm:$0xf] }
 0x1da   :  { %v3992_v11 = vld [vmem:[#allocation3 + $0x68] sm:$0xf0]  ;;  %v5796_v2 = vld [vmem:[#allocation3 + $0x56c] sm:$0xf0] }
 0x1db   :  { %2269 = vmatpush.bf16.msrb.mxu0 %v4923_v25  ;;  %2244 = vmatpush.bf16.msra.mxu2 %v4379_v32  ;;  %v5695_v12 = vld [vmem:[#allocation3 + $0x24c] sm:$0xf]  ;;  %v3995_v19 = vor.u32 %v5631_v10, %v3992_v11  ;;  %v5684_v32 = vld [vmem:[#allocation3 + $0x1ec] sm:$0xf0] }
 0x1dc   :  { %v4248_v14 = vld [vmem:[#allocation3 + $0x268] sm:$0xf0]  ;;  %v4894_v3 = vld [vmem:[#allocation3 + $0x750] sm:$0xf] }
 0x1dd   :  { %2257 = vmatpush.bf16.msra.mxu3 %v4635_v33  ;;  %2232 = vmatpush.bf16.msra.mxu1 %v4091_v43  ;;  %v5759_v15 = vld [vmem:[#allocation3 + $0x44c] sm:$0xf]  ;;  %v4251_v22 = vor.u32 %v5695_v12, %v4248_v14  ;;  %v4446_v33 = vld [vmem:[#allocation3 + $0x3d0] sm:$0xf]  ;;  %v4191_v43 = vor.u32 %v5684_v32, %v4190_v31 }
 0x1de   :  { %v4504_v16 = vld [vmem:[#allocation3 + $0x468] sm:$0xf0]  ;;  %v5860_v4 = vld [vmem:[#allocation3 + $0x76c] sm:$0xf0] }
 0x1df   :  { %2270 = vmatpush.bf16.msrb.mxu0 %v4891_v37  ;;  %2245 = vmatpush.bf16.msra.mxu2 %v4347_v44  ;;  %v5823_v17 = vld [vmem:[#allocation3 + $0x64c] sm:$0xf]  ;;  %v4507_v23 = vor.u32 %v5759_v15, %v4504_v16  ;;  %v5812_v37 = vld [vmem:[#allocation3 + $0x5ec] sm:$0xf0]  ;;  %v4447_v44 = vor.u32 %v5748_v35, %v4446_v33 }
 0x1e0   :  { %v4760_v18 = vld [vmem:[#allocation3 + $0x668] sm:$0xf0]  ;;  %v4094_v10 = vld [vmem:[#allocation3 + $0x110] sm:$0xf] }
 0x1e1   :  { %2258 = vmatpush.bf16.msra.mxu3 %v4603_v45  ;;  %2233 = vmatpush.bf16.msra.mxu1 %v4059_v55  ;;  %v5623_v20 = vld [vmem:[#allocation3 + $0xc] sm:$0xf]  ;;  %v4763_v27 = vor.u32 %v5823_v17, %v4760_v18  ;;  %v4703_v45 = vor.u32 %v5812_v37, %v4702_v36  ;;  %v4159_v55 = vor.u32 %v5676_v47, %v4158_v46  ;;  %v5660_v11 = vld [vmem:[#allocation3 + $0x12c] sm:$0xf0] }
 0x1e2   :  { %v3960_v21 = vld [vmem:[#allocation3 + $0x28] sm:$0xf0]  ;;  %v4350_v12 = vld [vmem:[#allocation3 + $0x310] sm:$0xf] }
 0x1e3   :  { %2271 = vmatpush.bf16.msrb.mxu0 %v4859_v49  ;;  %2246 = vmatpush.bf16.msra.mxu2 %v4315_v56  ;;  %v5687_v24 = vld [vmem:[#allocation3 + $0x20c] sm:$0xf]  ;;  %v3963_v34 = vor.u32 %v5623_v20, %v3960_v21  ;;  %v4959_v49 = vor.u32 %v5876_v41, %v4958_v40  ;;  %v4415_v56 = vor.u32 %v5740_v50, %v4414_v48  ;;  %v5724_v14 = vld [vmem:[#allocation3 + $0x32c] sm:$0xf0] }
 0x1e4   :  { %v4216_v25 = vld [vmem:[#allocation3 + $0x228] sm:$0xf0]  ;;  %v4606_v15 = vld [vmem:[#allocation3 + $0x510] sm:$0xf]  ;;  %v4351_v20 = vor.u32 %v5724_v14, %v4350_v12  ;;  %v5808_v12 = vld [vmem:[#allocation3 + $0x5d4] sm:$0xf] }
 0x1e5   :  { %2259 = vmatpush.bf16.msra.mxu3 %v4571_v57  ;;  %2234 = vmatpush.bf16.msra.mxu1 %v4027_v5  ;;  %v5751_v26 = vld [vmem:[#allocation3 + $0x40c] sm:$0xf]  ;;  %v4219_v38 = vor.u32 %v5687_v24, %v4216_v25  ;;  %v4671_v57 = vor.u32 %v5804_v52, %v4670_v51  ;;  %v4127_v5 = vor.u32 %v5668_v59, %v4126_v58  ;;  %v5788_v16 = vld [vmem:[#allocation3 + $0x52c] sm:$0xf0] }
 0x1e6   :  { %v4472_v28 = vld [vmem:[#allocation3 + $0x428] sm:$0xf0]  ;;  %v4862_v17 = vld [vmem:[#allocation3 + $0x710] sm:$0xf]  ;;  %v4607_v21 = vor.u32 %v5788_v16, %v4606_v15  ;;  %v5872_v16 = vld [vmem:[#allocation3 + $0x7d4] sm:$0xf] }
 0x1e7   :  { %2272 = vmatpush.bf16.msrb.mxu0 %v4827_v63  ;;  %2247 = vmatpush.bf16.msra.mxu2 %v4283_v6  ;;  %v5815_v29 = vld [vmem:[#allocation3 + $0x60c] sm:$0xf]  ;;  %v4475_v39 = vor.u32 %v5751_v26, %v4472_v28  ;;  %v4927_v63 = vor.u32 %v5868_v54, %v4926_v53  ;;  %v4383_v6 = vor.u32 %v5732_v0, %v4382_v60  ;;  %v5852_v18 = vld [vmem:[#allocation3 + $0x72c] sm:$0xf0] }
 0x1e8   :  { %v4728_v30 = vld [vmem:[#allocation3 + $0x628] sm:$0xf0]  ;;  %v4318_v24 = vld [vmem:[#allocation3 + $0x2d0] sm:$0xf]  ;;  %v4863_v25 = vor.u32 %v5852_v18, %v4862_v17  ;;  %v4960_v17 = vld [vmem:[#allocation3 + $0x7f0] sm:$0xf0] }
 0x1e9   :  { %2260 = vmatpush.bf16.msra.mxu3 %v4539_v9  ;;  %2235 = vmatpush.bf16.msra.mxu1 %v3995_v19  ;;  %v4731_v42 = vor.u32 %v5815_v29, %v4728_v30  ;;  %v4639_v9 = vor.u32 %v5796_v2, %v4638_v1  ;;  %v4095_v19 = vor.u32 %v5660_v11, %v4094_v10  ;;  %v5716_v26 = vld [vmem:[#allocation3 + $0x2ec] sm:$0xf0]  ;;  %v4448_v11 = vld [vmem:[#allocation3 + $0x3f0] sm:$0xf0] }
 0x1ea   :  { %v5780_v28 = vld [vmem:[#allocation3 + $0x4ec] sm:$0xf0]  ;;  %v4319_v32 = vor.u32 %v5716_v26, %v4318_v24  ;;  %v5736_v24 = vld [vmem:[#allocation3 + $0x394] sm:$0xf] }
 0x1eb   :  { %2273 = vmatpush.bf16.msrb.mxu0 %v4795_v13  ;;  %2248 = vmatpush.bf16.msra.mxu2 %v4251_v22  ;;  %v4895_v13 = vor.u32 %v5860_v4, %v4894_v3  ;;  %v4062_v22 = vld [vmem:[#allocation3 + $0xd0] sm:$0xf]  ;;  %v4416_v26 = vld [vmem:[#allocation3 + $0x3b0] sm:$0xf0] }
 0x1ec   :  { %v4830_v29 = vld [vmem:[#allocation3 + $0x6d0] sm:$0xf] }
 0x1ed   :  { %2261 = vmatpush.bf16.msra.mxu3 %v4507_v23  ;;  %2236 = vmatpush.bf16.msra.mxu1 %v3963_v34  ;;  %v5652_v23 = vld [vmem:[#allocation3 + $0xec] sm:$0xf0] }
 0x1ee   :  { %v5844_v30 = vld [vmem:[#allocation3 + $0x6ec] sm:$0xf0]  ;;  %v4063_v31 = vor.u32 %v5652_v23, %v4062_v22  ;;  %v5672_v22 = vld [vmem:[#allocation3 + $0x194] sm:$0xf] }
 0x1ef   :  { %2274 = vmatpush.bf16.msrb.mxu0 %v4763_v27  ;;  %2249 = vmatpush.bf16.msra.mxu2 %v4219_v38  ;;  %v4574_v27 = vld [vmem:[#allocation3 + $0x4d0] sm:$0xf]  ;;  %v4831_v37 = vor.u32 %v5844_v30, %v4830_v29  ;;  %v4160_v23 = vld [vmem:[#allocation3 + $0x1b0] sm:$0xf0] }
 0x1f0   :  { %2237 = vmatmul.bf16.vlgmr.msra.gmra.mxu1 %v6408_v61  ;;  %v4575_v33 = vor.u32 %v5780_v28, %v4574_v27  ;;  %v4030_v34 = vld [vmem:[#allocation3 + $0x90] sm:$0xf]  ;;  %v5800_v27 = vld [vmem:[#allocation3 + $0x594] sm:$0xf] }
 0x1f1   :  { %2262 = vmatpush.bf16.msra.mxu3 %v4475_v39  ;;  %2281 = vmatpush.bf16.msrb.mxu1 %v4191_v43  ;;  %v5644_v35 = vld [vmem:[#allocation3 + $0xac] sm:$0xf0]  ;;  %v4672_v28 = vld [vmem:[#allocation3 + $0x5b0] sm:$0xf0] }
 0x1f2   :  { %2250 = vmatmul.bf16.vlgmr.msra.gmra.mxu2 %v6412_v7  ;;  %v4286_v36 = vld [vmem:[#allocation3 + $0x290] sm:$0xf]  ;;  %v4031_v43 = vor.u32 %v5644_v35, %v4030_v34  ;;  %v5864_v29 = vld [vmem:[#allocation3 + $0x794] sm:$0xf] }
 0x1f3   :  { %2275 = vmatpush.bf16.msrb.mxu0 %v4731_v42  ;;  %2294 = vmatpush.bf16.msrb.mxu2 %v4447_v44  ;;  %v5708_v38 = vld [vmem:[#allocation3 + $0x2ac] sm:$0xf0]  ;;  %v4928_v30 = vld [vmem:[#allocation3 + $0x7b0] sm:$0xf0] }
 0x1f4   :  { %2263 = vmatmul.bf16.vlgmr.msra.gmra.mxu3 %v6414_v8  ;;  %v4542_v39 = vld [vmem:[#allocation3 + $0x490] sm:$0xf]  ;;  %v4287_v44 = vor.u32 %v5708_v38, %v4286_v36  ;;  %v5664_v34 = vld [vmem:[#allocation3 + $0x154] sm:$0xf] }
 0x1f5   :  { %2307 = vmatpush.bf16.msrb.mxu3 %v4703_v45  ;;  %2282 = vmatpush.bf16.msrb.mxu1 %v4159_v55  ;;  %v5772_v40 = vld [vmem:[#allocation3 + $0x4ac] sm:$0xf0]  ;;  %v4128_v35 = vld [vmem:[#allocation3 + $0x170] sm:$0xf0] }
 0x1f6   :  { %2276 = vmatmul.bf16.vlgmr.msrb.gmra.mxu0 %v6410_v62  ;;  %v4798_v41 = vld [vmem:[#allocation3 + $0x690] sm:$0xf]  ;;  %v4543_v45 = vor.u32 %v5772_v40, %v4542_v39  ;;  %v5728_v36 = vld [vmem:[#allocation3 + $0x354] sm:$0xf] }
 0x1f7   :  { %2320 = vmatpush.bf16.msra.mxu0 %v4959_v49  ;;  %2295 = vmatpush.bf16.msrb.mxu2 %v4415_v56  ;;  %v5836_v42 = vld [vmem:[#allocation3 + $0x6ac] sm:$0xf0]  ;;  %v4384_v38 = vld [vmem:[#allocation3 + $0x370] sm:$0xf0] }
 0x1f8   :  { %v3998_v46 = vld [vmem:[#allocation3 + $0x50] sm:$0xf]  ;;  %v4799_v49 = vor.u32 %v5836_v42, %v4798_v41  ;;  %v5792_v39 = vld [vmem:[#allocation3 + $0x554] sm:$0xf] }
 0x1f9   :  { %2308 = vmatpush.bf16.msrb.mxu3 %v4671_v57  ;;  %2283 = vmatpush.bf16.msrb.mxu1 %v4127_v5  ;;  %v5636_v47 = vld [vmem:[#allocation3 + $0x6c] sm:$0xf0]  ;;  %v5680_v5 = vld [vmem:[#allocation3 + $0x1d4] sm:$0xf] }
 0x1fa   :  { %v4254_v48 = vld [vmem:[#allocation3 + $0x250] sm:$0xf]  ;;  %v3999_v55 = vor.u32 %v5636_v47, %v3998_v46  ;;  %v4640_v40 = vld [vmem:[#allocation3 + $0x570] sm:$0xf0]  ;;  %v4387_v46 = vor.u32 %v5728_v36, %v4384_v38 }
 0x1fb   :  { %2321 = vmatpush.bf16.msra.mxu0 %v4927_v63  ;;  %2296 = vmatpush.bf16.msrb.mxu2 %v4383_v6  ;;  %v5700_v50 = vld [vmem:[#allocation3 + $0x26c] sm:$0xf0]  ;;  %v4192_v6 = vld [vmem:[#allocation3 + $0x1f0] sm:$0xf0]  ;;  %v4643_v47 = vor.u32 %v5792_v39, %v4640_v40 }
 0x1fc   :  { %v4510_v51 = vld [vmem:[#allocation3 + $0x450] sm:$0xf]  ;;  %v4255_v58 = vor.u32 %v5700_v50, %v4254_v48  ;;  %v5856_v41 = vld [vmem:[#allocation3 + $0x754] sm:$0xf] }
 0x1fd   :  { %2309 = vmatpush.bf16.msrb.mxu3 %v4639_v9  ;;  %2284 = vmatpush.bf16.msrb.mxu1 %v4095_v19  ;;  %v5764_v52 = vld [vmem:[#allocation3 + $0x46c] sm:$0xf0]  ;;  %v5744_v9 = vld [vmem:[#allocation3 + $0x3d4] sm:$0xf]  ;;  %v4195_v19 = vor.u32 %v5680_v5, %v4192_v6 }
 0x1fe   :  { %v4766_v53 = vld [vmem:[#allocation3 + $0x650] sm:$0xf]  ;;  %v4511_v59 = vor.u32 %v5764_v52, %v4510_v51  ;;  %v4896_v42 = vld [vmem:[#allocation3 + $0x770] sm:$0xf0] }
 0x1ff   :  { %2322 = vmatpush.bf16.msra.mxu0 %v4895_v13  ;;  %2297 = vmatpush.bf16.msrb.mxu2 %v4351_v20  ;;  %v5828_v54 = vld [vmem:[#allocation3 + $0x66c] sm:$0xf0]  ;;  %v4704_v13 = vld [vmem:[#allocation3 + $0x5f0] sm:$0xf0]  ;;  %v4451_v20 = vor.u32 %v5744_v9, %v4448_v11  ;;  %v4899_v52 = vor.u32 %v5856_v41, %v4896_v42 }
 0x200   :  { %v3966_v56 = vld [vmem:[#allocation3 + $0x10] sm:$0xf]  ;;  %v4767_v1 = vor.u32 %v5828_v54, %v4766_v53  ;;  %v5656_v48 = vld [vmem:[#allocation3 + $0x114] sm:$0xf] }
 0x201   :  { %2310 = vmatpush.bf16.msrb.mxu3 %v4607_v21  ;;  %2285 = vmatpush.bf16.msrb.mxu1 %v4063_v31  ;;  %v5628_v57 = vld [vmem:[#allocation3 + $0x2c] sm:$0xf0]  ;;  %v4707_v21 = vor.u32 %v5808_v12, %v4704_v13  ;;  %v4163_v31 = vor.u32 %v5672_v22, %v4160_v23  ;;  %v5720_v50 = vld [vmem:[#allocation3 + $0x314] sm:$0xf] }
 0x202   :  { %v4222_v60 = vld [vmem:[#allocation3 + $0x210] sm:$0xf]  ;;  %v3967_v10 = vor.u32 %v5628_v57, %v3966_v56  ;;  %v4352_v53 = vld [vmem:[#allocation3 + $0x330] sm:$0xf0] }
 0x203   :  { %2323 = vmatpush.bf16.msra.mxu0 %v4863_v25  ;;  %2298 = vmatpush.bf16.msrb.mxu2 %v4319_v32  ;;  %v5692_v63 = vld [vmem:[#allocation3 + $0x22c] sm:$0xf0]  ;;  %v4963_v25 = vor.u32 %v5872_v16, %v4960_v17  ;;  %v4419_v32 = vor.u32 %v5736_v24, %v4416_v26  ;;  %v5784_v54 = vld [vmem:[#allocation3 + $0x514] sm:$0xf] }
 0x204   :  { %v4478_v0 = vld [vmem:[#allocation3 + $0x410] sm:$0xf]  ;;  %v4223_v14 = vor.u32 %v5692_v63, %v4222_v60  ;;  %v5848_v56 = vld [vmem:[#allocation3 + $0x714] sm:$0xf]  ;;  %v4355_v63 = vor.u32 %v5720_v50, %v4352_v53 }
 0x205   :  { %2311 = vmatpush.bf16.msrb.mxu3 %v4575_v33  ;;  %2286 = vmatpush.bf16.msrb.mxu1 %v4031_v43  ;;  %v5756_v2 = vld [vmem:[#allocation3 + $0x42c] sm:$0xf0]  ;;  %v4675_v33 = vor.u32 %v5800_v27, %v4672_v28  ;;  %v4131_v43 = vor.u32 %v5664_v34, %v4128_v35  ;;  %v4864_v57 = vld [vmem:[#allocation3 + $0x730] sm:$0xf0] }
 0x206   :  { %v4734_v3 = vld [vmem:[#allocation3 + $0x610] sm:$0xf]  ;;  %v4479_v15 = vor.u32 %v5756_v2, %v4478_v0  ;;  %v4064_v2 = vld [vmem:[#allocation3 + $0xf0] sm:$0xf0]  ;;  %v4867_v5 = vor.u32 %v5848_v56, %v4864_v57 }
 0x207   :  { %2324 = vmatpush.bf16.msra.mxu0 %v4831_v37  ;;  %2299 = vmatpush.bf16.msrb.mxu2 %v4287_v44  ;;  %v5820_v4 = vld [vmem:[#allocation3 + $0x62c] sm:$0xf0]  ;;  %v4931_v37 = vor.u32 %v5864_v29, %v4928_v30  ;;  %v773_v44 = vld [vmem:[#allocation17 + $0x2] ss:$8 sm:$0xf] }
 0x208   :  { %v4735_v18 = vor.u32 %v5820_v4, %v4734_v3  ;;  %v5712_v3 = vld [vmem:[#allocation3 + $0x2d4] sm:$0xf] }
 0x209   :  { %2312 = vmatpush.bf16.msrb.mxu3 %v4543_v45  ;;  %2287 = vmatpush.bf16.msrb.mxu1 %v3999_v55  ;;  %v774_v45 = vld [vmem:[#allocation17 + $0x2] ss:$8 sm:$0xf0] }
 0x20a   :  { %v6436_v51 = vor.u32 %v774_v45, %v773_v44  ;;  %v4608_v55 = vld [vmem:[#allocation3 + $0x530] sm:$0xf0] }
 0x20b   :  { %2325 = vmatpush.bf16.msra.mxu0 %v4799_v49  ;;  %2300 = vmatpush.bf16.msrb.mxu2 %v4255_v58  ;;  %v4096_v49 = vld [vmem:[#allocation3 + $0x130] sm:$0xf0]  ;;  %v4611_v0 = vor.u32 %v5784_v54, %v4608_v55 }
 0x20c   :  { %v777_v58 = vperm.slane %v6436_v51, 0  ;;  %v4320_v6 = vld [vmem:[#allocation3 + $0x2f0] sm:$0xf0] }
 0x20d   :  { %2313 = vmatpush.bf16.msrb.mxu3 %v4511_v59  ;;  %2288 = vmatpush.bf16.msrb.mxu1 %v3967_v10  ;;  %v4099_v59 = vor.u32 %v5656_v48, %v4096_v49  ;;  %v2082_v60 = vpop.f32.mrf.mxu1  ;;  %v5776_v9 = vld [vmem:[#allocation3 + $0x4d4] sm:$0xf] }
 0x20e   :  { %v4576_v10 = vld [vmem:[#allocation3 + $0x4f0] sm:$0xf0]  ;;  %v2083_v11 = vadd.f32 %v2082_v60, %v777_v58 }
 0x20f   :  { %2326 = vmatpush.bf16.msra.mxu0 %v4767_v1  ;;  %2301 = vmatpush.bf16.msrb.mxu2 %v4223_v14  ;;  %v5648_v1 = vld [vmem:[#allocation3 + $0xd4] sm:$0xf]  ;;  %v4579_v16 = vor.u32 %v5776_v9, %v4576_v10 }
 0x210   :  { %2289 = vmatmul.bf16.vlgmr.msrb.gmra.mxu1 %v6408_v61  ;;  %v5840_v12 = vld [vmem:[#allocation3 + $0x6d4] sm:$0xf]  ;;  %v4067_v14 = vor.u32 %v5648_v1, %v4064_v2  ;;  %v5685_v1 = vld [vmem:[#allocation3 + $0x1f4] sm:$0xf0] }
 0x211   :  { %2314 = vmatpush.bf16.msrb.mxu3 %v4479_v15  ;;  %2333 = vmatpush.bf16.msra.mxu1 %v4195_v19  ;;  %v4832_v13 = vld [vmem:[#allocation3 + $0x6f0] sm:$0xf0]  ;;  %v4323_v15 = vor.u32 %v5712_v3, %v4320_v6  ;;  %v4454_v2 = vld [vmem:[#allocation3 + $0x3d8] sm:$0xf] }
 0x212   :  { %2302 = vmatmul.bf16.vlgmr.msrb.gmra.mxu2 %v6412_v7  ;;  %v5640_v17 = vld [vmem:[#allocation3 + $0x94] sm:$0xf]  ;;  %v5813_v6 = vld [vmem:[#allocation3 + $0x5f4] sm:$0xf0] }
 0x213   :  { %2327 = vmatpush.bf16.msra.mxu0 %v4735_v18  ;;  %2346 = vmatpush.bf16.msra.mxu2 %v4451_v20  ;;  %v2121_v4 = vpop.f32.mrf.mxu0  ;;  %v4032_v18 = vld [vmem:[#allocation3 + $0xb0] sm:$0xf0] }
 0x214   :  { %2315 = vmatmul.bf16.vlgmr.msrb.gmra.mxu3 %v6414_v8  ;;  %v5704_v19 = vld [vmem:[#allocation3 + $0x294] sm:$0xf]  ;;  %v4035_v29 = vor.u32 %v5640_v17, %v4032_v18  ;;  %v4166_v17 = vld [vmem:[#allocation3 + $0x198] sm:$0xf] }
 0x215   :  { %2359 = vmatpush.bf16.msra.mxu3 %v4707_v21  ;;  %2334 = vmatpush.bf16.msra.mxu1 %v4163_v31  ;;  %v2095_v20 = vpop.f32.mrf.mxu2  ;;  %v4835_v21 = vor.u32 %v5840_v12, %v4832_v13  ;;  %v4288_v22 = vld [vmem:[#allocation3 + $0x2b0] sm:$0xf0]  ;;  %v2084_v31 = vpop.f32.mrf.mxu1  ;;  %v5877_v12 = vld [vmem:[#allocation3 + $0x7f4] sm:$0xf0] }
 0x216   :  { %2328 = vmatmul.bf16.vlgmr.msra.gmra.mxu0 %v6410_v62  ;;  %v5768_v23 = vld [vmem:[#allocation3 + $0x494] sm:$0xf]  ;;  %v5677_v18 = vld [vmem:[#allocation3 + $0x1b4] sm:$0xf0] }
 0x217   :  { %2372 = vmatpush.bf16.msrb.mxu0 %v4963_v25  ;;  %2347 = vmatpush.bf16.msra.mxu2 %v4419_v32  ;;  %v4544_v24 = vld [vmem:[#allocation3 + $0x4b0] sm:$0xf0]  ;;  %v2096_v25 = vadd.f32 %v2095_v20, %v2083_v11  ;;  %v2108_v26 = vpop.f32.mrf.mxu3  ;;  %v4291_v32 = vor.u32 %v5704_v19, %v4288_v22  ;;  %v4966_v11 = vld [vmem:[#allocation3 + $0x7d8] sm:$0xf] }
 0x218   :  { %v5832_v27 = vld [vmem:[#allocation3 + $0x694] sm:$0xf]  ;;  %v4422_v19 = vld [vmem:[#allocation3 + $0x398] sm:$0xf]  ;;  %v4967_v20 = vor.u32 %v5877_v12, %v4966_v11 }
 0x219   :  { %2360 = vmatpush.bf16.msra.mxu3 %v4675_v33  ;;  %2335 = vmatpush.bf16.msra.mxu1 %v4131_v43  ;;  %v4800_v28 = vld [vmem:[#allocation3 + $0x6b0] sm:$0xf0]  ;;  %v2109_v30 = vadd.f32 %v2108_v26, %v2096_v25  ;;  %v4547_v33 = vor.u32 %v5768_v23, %v4544_v24  ;;  %v4678_v22 = vld [vmem:[#allocation3 + $0x598] sm:$0xf]  ;;  %v4167_v26 = vor.u32 %v5677_v18, %v4166_v17 }
 0x21a   :  { %v5632_v34 = vld [vmem:[#allocation3 + $0x54] sm:$0xf]  ;;  %v4803_v38 = vor.u32 %v5832_v27, %v4800_v28  ;;  %v5805_v23 = vld [vmem:[#allocation3 + $0x5b4] sm:$0xf0] }
 0x21b   :  { %2373 = vmatpush.bf16.msrb.mxu0 %v4931_v37  ;;  %2348 = vmatpush.bf16.msra.mxu2 %v4387_v46  ;;  %v4000_v35 = vld [vmem:[#allocation3 + $0x70] sm:$0xf0]  ;;  %v2123_v37 = vpop.f32.mrf.mxu0  ;;  %v2122_v42 = vadd.f32 %v2121_v4, %v2109_v30  ;;  %v5749_v4 = vld [vmem:[#allocation3 + $0x3f4] sm:$0xf0]  ;;  %v4679_v28 = vor.u32 %v5805_v23, %v4678_v22 }
 0x21c   :  { %v5696_v36 = vld [vmem:[#allocation3 + $0x254] sm:$0xf]  ;;  %v4003_v45 = vor.u32 %v5632_v34, %v4000_v35  ;;  %v4934_v24 = vld [vmem:[#allocation3 + $0x798] sm:$0xf] }
 0x21d   :  { %2361 = vmatpush.bf16.msra.mxu3 %v4643_v47  ;;  %2336 = vmatpush.bf16.msra.mxu1 %v4099_v59  ;;  %v4256_v39 = vld [vmem:[#allocation3 + $0x270] sm:$0xf0]  ;;  %v2489_v48 = vmax.f32 %v2122_v42, 0.0  ;;  %v2097_v55 = vpop.f32.mrf.mxu2  ;;  %v5869_v25 = vld [vmem:[#allocation3 + $0x7b4] sm:$0xf0] }
 0x21e   :  { %v5760_v40 = vld [vmem:[#allocation3 + $0x454] sm:$0xf]  ;;  %v4259_v49 = vor.u32 %v5696_v36, %v4256_v39  ;;  %v5669_v30 = vld [vmem:[#allocation3 + $0x174] sm:$0xf0] }
 0x21f   :  { %2374 = vmatpush.bf16.msrb.mxu0 %v4899_v52  ;;  %2349 = vmatpush.bf16.msra.mxu2 %v4355_v63  ;;  %v4512_v41 = vld [vmem:[#allocation3 + $0x470] sm:$0xf0]  ;;  %v6439_v60 = vpack.c.bf16 %v2489_v48, %v2489_v48  ;;  %v2110_v63 = vpop.f32.mrf.mxu3  ;;  %v4390_v31 = vld [vmem:[#allocation3 + $0x358] sm:$0xf]  ;;  %v778_v48 = vperm.slane %v6436_v51, 1 }
 0x220   :  { %v5824_v43 = vld [vmem:[#allocation3 + $0x654] sm:$0xf]  ;;  %v4515_v50 = vor.u32 %v5760_v40, %v4512_v41  ;;  %v4646_v34 = vld [vmem:[#allocation3 + $0x558] sm:$0xf] }
 0x221   :  { %2362 = vmatpush.bf16.msra.mxu3 %v4611_v0  ;;  %2337 = vmatpush.bf16.msra.mxu1 %v4067_v14  ;;  %v4768_v44 = vld [vmem:[#allocation3 + $0x670] sm:$0xf0]  ;;  %v4198_v0 = vld [vmem:[#allocation3 + $0x1d8] sm:$0xf] }
 0x222   :  { %v5624_v46 = vld [vmem:[#allocation3 + $0x14] sm:$0xf]  ;;  %v4771_v56 = vor.u32 %v5824_v43, %v4768_v44  ;;  %v4199_v14 = vor.u32 %v5685_v1, %v4198_v0  ;;  %v5797_v35 = vld [vmem:[#allocation3 + $0x574] sm:$0xf0] }
 0x223   :  { %2375 = vmatpush.bf16.msrb.mxu0 %v4867_v5  ;;  %2350 = vmatpush.bf16.msra.mxu2 %v4323_v15  ;;  %v3968_v47 = vld [vmem:[#allocation3 + $0x30] sm:$0xf0]  ;;  %v4710_v5 = vld [vmem:[#allocation3 + $0x5d8] sm:$0xf]  ;;  %v4455_v15 = vor.u32 %v5749_v4, %v4454_v2  ;;  %v4647_v41 = vor.u32 %v5797_v35, %v4646_v34 }
 0x224   :  { %v5688_v52 = vld [vmem:[#allocation3 + $0x214] sm:$0xf]  ;;  %v3971_v3 = vor.u32 %v5624_v46, %v3968_v47  ;;  %v4902_v36 = vld [vmem:[#allocation3 + $0x758] sm:$0xf] }
 0x225   :  { %2363 = vmatpush.bf16.msra.mxu3 %v4579_v16  ;;  %2338 = vmatpush.bf16.msra.mxu1 %v4035_v29  ;;  %v4224_v53 = vld [vmem:[#allocation3 + $0x230] sm:$0xf0]  ;;  %v4711_v16 = vor.u32 %v5813_v6, %v4710_v5  ;;  %v4134_v29 = vld [vmem:[#allocation3 + $0x158] sm:$0xf] }
 0x226   :  { %v5752_v54 = vld [vmem:[#allocation3 + $0x414] sm:$0xf]  ;;  %v4227_v9 = vor.u32 %v5688_v52, %v4224_v53  ;;  %v5861_v37 = vld [vmem:[#allocation3 + $0x774] sm:$0xf0] }
 0x227   :  { %2376 = vmatpush.bf16.msrb.mxu0 %v4835_v21  ;;  %2351 = vmatpush.bf16.msra.mxu2 %v4291_v32  ;;  %v4480_v57 = vld [vmem:[#allocation3 + $0x430] sm:$0xf0]  ;;  %v5741_v21 = vld [vmem:[#allocation3 + $0x3b4] sm:$0xf0]  ;;  %v4935_v32 = vor.u32 %v5869_v25, %v4934_v24 }
 0x228   :  { %v5816_v58 = vld [vmem:[#allocation3 + $0x614] sm:$0xf]  ;;  %v4483_v10 = vor.u32 %v5752_v54, %v4480_v57  ;;  %v4423_v27 = vor.u32 %v5741_v21, %v4422_v19  ;;  %v4102_v39 = vld [vmem:[#allocation3 + $0x118] sm:$0xf] }
 0x229   :  { %2364 = vmatpush.bf16.msra.mxu3 %v4547_v33  ;;  %v4736_v59 = vld [vmem:[#allocation3 + $0x630] sm:$0xf0]  ;;  %2339 = vmatpush.bf16.msra.mxu1 %v4003_v45  ;;  %v5733_v33 = vld [vmem:[#allocation3 + $0x374] sm:$0xf0]  ;;  %v4903_v45 = vor.u32 %v5861_v37, %v4902_v36 }
 0x22a   :  { %v4739_v13 = vor.u32 %v5816_v58, %v4736_v59  ;;  %v4391_v40 = vor.u32 %v5733_v33, %v4390_v31  ;;  %v5661_v42 = vld [vmem:[#allocation3 + $0x134] sm:$0xf0] }
 0x22b   :  { %2377 = vmatpush.bf16.msrb.mxu0 %v4803_v38  ;;  %2352 = vmatpush.bf16.msra.mxu2 %v4259_v49  ;;  %v4135_v38 = vor.u32 %v5669_v30, %v4134_v29  ;;  %v4358_v43 = vld [vmem:[#allocation3 + $0x318] sm:$0xf]  ;;  %v4103_v52 = vor.u32 %v5661_v42, %v4102_v39 }
 0x22c   :  { %v5725_v44 = vld [vmem:[#allocation3 + $0x334] sm:$0xf0] }
 0x22d   :  { %2365 = vmatpush.bf16.msra.mxu3 %v4515_v50  ;;  %2340 = vmatpush.bf16.msra.mxu1 %v3971_v3  ;;  %v4614_v46 = vld [vmem:[#allocation3 + $0x518] sm:$0xf]  ;;  %v2134_v53 = vpop.f32.mrf.mxu1  ;;  %v4359_v54 = vor.u32 %v5725_v44, %v4358_v43 }
 0x22e   :  { %v5789_v47 = vld [vmem:[#allocation3 + $0x534] sm:$0xf0]  ;;  %v2135_v3 = vadd.f32 %v2134_v53, %v778_v48 }
 0x22f   :  { %2378 = vmatpush.bf16.msrb.mxu0 %v4771_v56  ;;  %2353 = vmatpush.bf16.msra.mxu2 %v4227_v9  ;;  %v4870_v49 = vld [vmem:[#allocation3 + $0x718] sm:$0xf]  ;;  %v4615_v55 = vor.u32 %v5789_v47, %v4614_v46 }
 0x230   :  { %2341 = vmatmul.bf16.vlgmr.msra.gmra.mxu1 %v6408_v61  ;;  %v5853_v50 = vld [vmem:[#allocation3 + $0x734] sm:$0xf0] }
 0x231   :  { %2366 = vmatpush.bf16.msra.mxu3 %v4483_v10  ;;  %2385 = vmatpush.bf16.msrb.mxu1 %v4199_v14  ;;  %v4070_v56 = vld [vmem:[#allocation3 + $0xd8] sm:$0xf]  ;;  %v4871_v63 = vor.u32 %v5853_v50, %v4870_v49 }
 0x232   :  { %2354 = vmatmul.bf16.vlgmr.msra.gmra.mxu2 %v6412_v7  ;;  %v5653_v57 = vld [vmem:[#allocation3 + $0xf4] sm:$0xf0] }
 0x233   :  { %2379 = vmatpush.bf16.msrb.mxu0 %v4739_v13  ;;  %2398 = vmatpush.bf16.msrb.mxu2 %v4455_v15  ;;  %v4326_v58 = vld [vmem:[#allocation3 + $0x2d8] sm:$0xf]  ;;  %v2173_v59 = vpop.f32.mrf.mxu0  ;;  %v4071_v6 = vor.u32 %v5653_v57, %v4070_v56  ;;  %v5681_v56 = vld [vmem:[#allocation3 + $0x1dc] sm:$0xf] }
 0x234   :  { %2367 = vmatmul.bf16.vlgmr.msra.gmra.mxu3 %v6414_v8  ;;  %v5717_v0 = vld [vmem:[#allocation3 + $0x2f4] sm:$0xf0]  ;;  %v4200_v57 = vld [vmem:[#allocation3 + $0x1f8] sm:$0xf0] }
 0x235   :  { %2411 = vmatpush.bf16.msrb.mxu3 %v4711_v16  ;;  %2386 = vmatpush.bf16.msrb.mxu1 %v4167_v26  ;;  %v4582_v1 = vld [vmem:[#allocation3 + $0x4d8] sm:$0xf]  ;;  %v4327_v9 = vor.u32 %v5717_v0, %v4326_v58  ;;  %v2147_v14 = vpop.f32.mrf.mxu2  ;;  %v2136_v25 = vpop.f32.mrf.mxu1  ;;  %v5745_v58 = vld [vmem:[#allocation3 + $0x3dc] sm:$0xf] }
 0x236   :  { %2380 = vmatmul.bf16.vlgmr.msrb.gmra.mxu0 %v6410_v62  ;;  %v5781_v2 = vld [vmem:[#allocation3 + $0x4f4] sm:$0xf0]  ;;  %v2148_v19 = vadd.f32 %v2147_v14, %v2135_v3  ;;  %v5809_v0 = vld [vmem:[#allocation3 + $0x5dc] sm:$0xf] }
 0x237   :  { %2424 = vmatpush.bf16.msra.mxu0 %v4967_v20  ;;  %2399 = vmatpush.bf16.msrb.mxu2 %v4423_v27  ;;  %v4838_v4 = vld [vmem:[#allocation3 + $0x6d8] sm:$0xf]  ;;  %v4583_v10 = vor.u32 %v5781_v2, %v4582_v1  ;;  %v2160_v20 = vpop.f32.mrf.mxu3  ;;  %v4712_v1 = vld [vmem:[#allocation3 + $0x5f8] sm:$0xf0] }
 0x238   :  { %v5845_v5 = vld [vmem:[#allocation3 + $0x6f4] sm:$0xf0]  ;;  %v2161_v24 = vadd.f32 %v2160_v20, %v2148_v19  ;;  %v5737_v14 = vld [vmem:[#allocation3 + $0x39c] sm:$0xf] }
 0x239   :  { %2412 = vmatpush.bf16.msrb.mxu3 %v4679_v28  ;;  %2387 = vmatpush.bf16.msrb.mxu1 %v4135_v38  ;;  %v4038_v11 = vld [vmem:[#allocation3 + $0x98] sm:$0xf]  ;;  %v4839_v15 = vor.u32 %v5845_v5, %v4838_v4  ;;  %v5873_v4 = vld [vmem:[#allocation3 + $0x7dc] sm:$0xf] }
 0x23a   :  { %v5645_v12 = vld [vmem:[#allocation3 + $0xb4] sm:$0xf0]  ;;  %v2174_v36 = vadd.f32 %v2173_v59, %v2161_v24  ;;  %v4968_v5 = vld [vmem:[#allocation3 + $0x7f8] sm:$0xf0] }
 0x23b   :  { %2425 = vmatpush.bf16.msra.mxu0 %v4935_v32  ;;  %2400 = vmatpush.bf16.msrb.mxu2 %v4391_v40  ;;  %v4294_v13 = vld [vmem:[#allocation3 + $0x298] sm:$0xf]  ;;  %v4039_v23 = vor.u32 %v5645_v12, %v4038_v11  ;;  %v2175_v31 = vpop.f32.mrf.mxu0  ;;  %v4715_v11 = vor.u32 %v5809_v0, %v4712_v1  ;;  %v5673_v12 = vld [vmem:[#allocation3 + $0x19c] sm:$0xf] }
 0x23c   :  { %v5709_v16 = vld [vmem:[#allocation3 + $0x2b4] sm:$0xf0]  ;;  %v2490_v42 = vmax.f32 %v2174_v36, 0.0  ;;  %v5865_v19 = vld [vmem:[#allocation3 + $0x79c] sm:$0xf] }
 0x23d   :  { %2413 = vmatpush.bf16.msrb.mxu3 %v4647_v41  ;;  %2388 = vmatpush.bf16.msrb.mxu1 %v4103_v52  ;;  %v4550_v17 = vld [vmem:[#allocation3 + $0x498] sm:$0xf]  ;;  %v4295_v26 = vor.u32 %v5709_v16, %v4294_v13  ;;  %v2149_v48 = vpop.f32.mrf.mxu2  ;;  %v4168_v13 = vld [vmem:[#allocation3 + $0x1b8] sm:$0xf0] }
 0x23e   :  { %v5773_v18 = vld [vmem:[#allocation3 + $0x4b4] sm:$0xf0]  ;;  %v4424_v16 = vld [vmem:[#allocation3 + $0x3b8] sm:$0xf0] }
 0x23f   :  { %2426 = vmatpush.bf16.msra.mxu0 %v4903_v45  ;;  %2401 = vmatpush.bf16.msrb.mxu2 %v4359_v54  ;;  %v4806_v21 = vld [vmem:[#allocation3 + $0x698] sm:$0xf]  ;;  %v4551_v27 = vor.u32 %v5773_v18, %v4550_v17  ;;  %v6446_v54 = vpack.c.bf16 %v2490_v42, %v2490_v42  ;;  %v5801_v17 = vld [vmem:[#allocation3 + $0x59c] sm:$0xf] }
 0x240   :  { %v5837_v22 = vld [vmem:[#allocation3 + $0x6b4] sm:$0xf0]  ;;  %v4680_v18 = vld [vmem:[#allocation3 + $0x5b8] sm:$0xf0] }
 0x241   :  { %2414 = vmatpush.bf16.msrb.mxu3 %v4615_v55  ;;  %2389 = vmatpush.bf16.msrb.mxu1 %v4071_v6  ;;  %v4006_v28 = vld [vmem:[#allocation3 + $0x58] sm:$0xf]  ;;  %v4807_v32 = vor.u32 %v5837_v22, %v4806_v21  ;;  %v2162_v55 = vpop.f32.mrf.mxu3  ;;  %v4936_v20 = vld [vmem:[#allocation3 + $0x7b8] sm:$0xf0]  ;;  %v4171_v21 = vor.u32 %v5673_v12, %v4168_v13  ;;  %v4427_v22 = vor.u32 %v5737_v14, %v4424_v16 }
 0x242   :  { %v5637_v29 = vld [vmem:[#allocation3 + $0x74] sm:$0xf0]  ;;  %v5665_v24 = vld [vmem:[#allocation3 + $0x15c] sm:$0xf] }
 0x243   :  { %2427 = vmatpush.bf16.msra.mxu0 %v4871_v63  ;;  %2402 = vmatpush.bf16.msrb.mxu2 %v4327_v9  ;;  %v4262_v30 = vld [vmem:[#allocation3 + $0x258] sm:$0xf]  ;;  %v4007_v39 = vor.u32 %v5637_v29, %v4006_v28  ;;  %v4456_v63 = vld [vmem:[#allocation3 + $0x3f8] sm:$0xf0]  ;;  %v4203_v9 = vor.u32 %v5681_v56, %v4200_v57 }
 0x244   :  { %v5701_v33 = vld [vmem:[#allocation3 + $0x274] sm:$0xf0]  ;;  %v4136_v25 = vld [vmem:[#allocation3 + $0x178] sm:$0xf0] }
 0x245   :  { %2415 = vmatpush.bf16.msrb.mxu3 %v4583_v10  ;;  %v4518_v34 = vld [vmem:[#allocation3 + $0x458] sm:$0xf]  ;;  %2390 = vmatpush.bf16.msrb.mxu1 %v4039_v23  ;;  %v4263_v43 = vor.u32 %v5701_v33, %v4262_v30  ;;  %v4459_v10 = vor.u32 %v5745_v58, %v4456_v63  ;;  %v4683_v23 = vor.u32 %v5801_v17, %v4680_v18  ;;  %v4392_v28 = vld [vmem:[#allocation3 + $0x378] sm:$0xf0] }
 0x246   :  { %v5765_v35 = vld [vmem:[#allocation3 + $0x474] sm:$0xf0]  ;;  %v5793_v29 = vld [vmem:[#allocation3 + $0x55c] sm:$0xf]  ;;  %v4139_v33 = vor.u32 %v5665_v24, %v4136_v25 }
 0x247   :  { %2428 = vmatpush.bf16.msra.mxu0 %v4839_v15  ;;  %v4774_v37 = vld [vmem:[#allocation3 + $0x658] sm:$0xf]  ;;  %2403 = vmatpush.bf16.msrb.mxu2 %v4295_v26  ;;  %v4519_v44 = vor.u32 %v5765_v35, %v4518_v34  ;;  %v4971_v15 = vor.u32 %v5873_v4, %v4968_v5  ;;  %v5729_v26 = vld [vmem:[#allocation3 + $0x35c] sm:$0xf] }
 0x248   :  { %v5829_v38 = vld [vmem:[#allocation3 + $0x674] sm:$0xf0]  ;;  %v4648_v30 = vld [vmem:[#allocation3 + $0x578] sm:$0xf0]  ;;  %v4395_v35 = vor.u32 %v5729_v26, %v4392_v28 }
 0x249   :  { %v3974_v40 = vld [vmem:[#allocation3 + $0x18] sm:$0xf]  ;;  %2416 = vmatpush.bf16.msrb.mxu3 %v4551_v27  ;;  %v4775_v49 = vor.u32 %v5829_v38, %v4774_v37  ;;  %2391 = vmatpush.bf16.msrb.mxu1 %v4007_v39  ;;  %v4939_v27 = vor.u32 %v5865_v19, %v4936_v20  ;;  %v5857_v31 = vld [vmem:[#allocation3 + $0x75c] sm:$0xf]  ;;  %v4651_v36 = vor.u32 %v5793_v29, %v4648_v30 }
 0x24a   :  { %v5629_v41 = vld [vmem:[#allocation3 + $0x34] sm:$0xf0]  ;;  %v5657_v34 = vld [vmem:[#allocation3 + $0x11c] sm:$0xf] }
 0x24b   :  { %v4230_v45 = vld [vmem:[#allocation3 + $0x218] sm:$0xf]  ;;  %2429 = vmatpush.bf16.msra.mxu0 %v4807_v32  ;;  %v3975_v59 = vor.u32 %v5629_v41, %v3974_v40  ;;  %2404 = vmatpush.bf16.msrb.mxu2 %v4263_v43  ;;  %v4904_v32 = vld [vmem:[#allocation3 + $0x778] sm:$0xf0]  ;;  %v779_v43 = vperm.slane %v6436_v51, 2 }
 0x24c   :  { %v5693_v46 = vld [vmem:[#allocation3 + $0x234] sm:$0xf0]  ;;  %v4104_v37 = vld [vmem:[#allocation3 + $0x138] sm:$0xf0]  ;;  %v4907_v40 = vor.u32 %v5857_v31, %v4904_v32 }
 0x24d   :  { %v4486_v47 = vld [vmem:[#allocation3 + $0x418] sm:$0xf]  ;;  %2417 = vmatpush.bf16.msrb.mxu3 %v4519_v44  ;;  %v4231_v2 = vor.u32 %v5693_v46, %v4230_v45  ;;  %2392 = vmatpush.bf16.msrb.mxu1 %v3975_v59  ;;  %v5721_v38 = vld [vmem:[#allocation3 + $0x31c] sm:$0xf]  ;;  %v4107_v46 = vor.u32 %v5657_v34, %v4104_v37 }
 0x24e   :  { %v5757_v50 = vld [vmem:[#allocation3 + $0x434] sm:$0xf0]  ;;  %v4360_v39 = vld [vmem:[#allocation3 + $0x338] sm:$0xf0] }
 0x24f   :  { %v4742_v52 = vld [vmem:[#allocation3 + $0x618] sm:$0xf]  ;;  %v4487_v3 = vor.u32 %v5757_v50, %v4486_v47  ;;  %2430 = vmatpush.bf16.msra.mxu0 %v4775_v49  ;;  %2405 = vmatpush.bf16.msrb.mxu2 %v4231_v2  ;;  %v5785_v41 = vld [vmem:[#allocation3 + $0x51c] sm:$0xf]  ;;  %v2186_v47 = vpop.f32.mrf.mxu1  ;;  %v4363_v48 = vor.u32 %v5721_v38, %v4360_v39 }
 0x250   :  { %v5821_v53 = vld [vmem:[#allocation3 + $0x634] sm:$0xf0]  ;;  %2393 = vmatmul.bf16.vlgmr.msrb.gmra.mxu1 %v6408_v61  ;;  %v4616_v42 = vld [vmem:[#allocation3 + $0x538] sm:$0xf0]  ;;  %v2187_v63 = vadd.f32 %v2186_v47, %v779_v43 }
 0x251   :  { %v4743_v6 = vor.u32 %v5821_v53, %v4742_v52  ;;  %2418 = vmatpush.bf16.msrb.mxu3 %v4487_v3  ;;  %2437 = vmatpush.bf16.msra.mxu1 %v4203_v9  ;;  %v5849_v44 = vld [vmem:[#allocation3 + $0x71c] sm:$0xf]  ;;  %v4619_v49 = vor.u32 %v5785_v41, %v4616_v42 }
 0x252   :  { %2406 = vmatmul.bf16.vlgmr.msrb.gmra.mxu2 %v6412_v7  ;;  %v4872_v45 = vld [vmem:[#allocation3 + $0x738] sm:$0xf0] }
 0x253   :  { %2431 = vmatpush.bf16.msra.mxu0 %v4743_v6  ;;  %2450 = vmatpush.bf16.msra.mxu2 %v4459_v10  ;;  %v5649_v50 = vld [vmem:[#allocation3 + $0xdc] sm:$0xf]  ;;  %v2225_v55 = vpop.f32.mrf.mxu0  ;;  %v4875_v56 = vor.u32 %v5849_v44, %v4872_v45 }
 0x254   :  { %2419 = vmatmul.bf16.vlgmr.msrb.gmra.mxu3 %v6414_v8  ;;  %v4072_v52 = vld [vmem:[#allocation3 + $0xf8] sm:$0xf0] }
 0x255   :  { %2463 = vmatpush.bf16.msra.mxu3 %v4715_v11  ;;  %2438 = vmatpush.bf16.msra.mxu1 %v4171_v21  ;;  %v5713_v53 = vld [vmem:[#allocation3 + $0x2dc] sm:$0xf]  ;;  %v4075_v2 = vor.u32 %v5649_v50, %v4072_v52  ;;  %v2199_v10 = vpop.f32.mrf.mxu2 }
 0x256   :  { %2432 = vmatmul.bf16.vlgmr.msra.gmra.mxu0 %v6410_v62  ;;  %v4328_v57 = vld [vmem:[#allocation3 + $0x2f8] sm:$0xf0] }
 0x257   :  { %2476 = vmatpush.bf16.msrb.mxu0 %v4971_v15  ;;  %2451 = vmatpush.bf16.msra.mxu2 %v4427_v22  ;;  %v5777_v58 = vld [vmem:[#allocation3 + $0x4dc] sm:$0xf]  ;;  %v4331_v3 = vor.u32 %v5713_v53, %v4328_v57  ;;  %v2200_v15 = vadd.f32 %v2199_v10, %v2187_v63  ;;  %v2212_v16 = vpop.f32.mrf.mxu3  ;;  %v2188_v21 = vpop.f32.mrf.mxu1  ;;  %v780_v57 = vperm.slane %v6436_v51, 3 }
 0x258   :  { %v4584_v59 = vld [vmem:[#allocation3 + $0x4f8] sm:$0xf0] }
 0x259   :  { %2464 = vmatpush.bf16.msra.mxu3 %v4683_v23  ;;  %2439 = vmatpush.bf16.msra.mxu1 %v4139_v33  ;;  %v5841_v0 = vld [vmem:[#allocation3 + $0x6dc] sm:$0xf]  ;;  %v4587_v4 = vor.u32 %v5777_v58, %v4584_v59  ;;  %v2213_v20 = vadd.f32 %v2212_v16, %v2200_v15 }
 0x25a   :  { %v4840_v1 = vld [vmem:[#allocation3 + $0x6f8] sm:$0xf0] }
 0x25b   :  { %2477 = vmatpush.bf16.msrb.mxu0 %v4939_v27  ;;  %2452 = vmatpush.bf16.msra.mxu2 %v4395_v35  ;;  %v5641_v5 = vld [vmem:[#allocation3 + $0x9c] sm:$0xf]  ;;  %v4843_v11 = vor.u32 %v5841_v0, %v4840_v1  ;;  %v2227_v27 = vpop.f32.mrf.mxu0  ;;  %v2226_v32 = vadd.f32 %v2225_v55, %v2213_v20 }
 0x25c   :  { %v4040_v6 = vld [vmem:[#allocation3 + $0xb8] sm:$0xf0] }
 0x25d   :  { %2465 = vmatpush.bf16.msra.mxu3 %v4651_v36  ;;  %2440 = vmatpush.bf16.msra.mxu1 %v4107_v46  ;;  %v5705_v9 = vld [vmem:[#allocation3 + $0x29c] sm:$0xf]  ;;  %v4043_v19 = vor.u32 %v5641_v5, %v4040_v6  ;;  %v2491_v36 = vmax.f32 %v2226_v32, 0.0  ;;  %v2201_v42 = vpop.f32.mrf.mxu2 }
 0x25e   :  { %v4296_v12 = vld [vmem:[#allocation3 + $0x2b8] sm:$0xf0] }
 0x25f   :  { %2478 = vmatpush.bf16.msrb.mxu0 %v4907_v40  ;;  %2453 = vmatpush.bf16.msra.mxu2 %v4363_v48  ;;  %v5769_v13 = vld [vmem:[#allocation3 + $0x49c] sm:$0xf]  ;;  %v4299_v22 = vor.u32 %v5705_v9, %v4296_v12  ;;  %v6453_v47 = vpack.c.bf16 %v2491_v36, %v2491_v36  ;;  %v2214_v48 = vpop.f32.mrf.mxu3 }
 0x260   :  { %v4552_v14 = vld [vmem:[#allocation3 + $0x4b8] sm:$0xf0] }
 0x261   :  { %2466 = vmatpush.bf16.msra.mxu3 %v4619_v49  ;;  %v5833_v17 = vld [vmem:[#allocation3 + $0x69c] sm:$0xf]  ;;  %2441 = vmatpush.bf16.msra.mxu1 %v4075_v2  ;;  %v4555_v23 = vor.u32 %v5769_v13, %v4552_v14 }
 0x262   :  { %v4808_v18 = vld [vmem:[#allocation3 + $0x6b8] sm:$0xf0] }
 0x263   :  { %2479 = vmatpush.bf16.msrb.mxu0 %v4875_v56  ;;  %2454 = vmatpush.bf16.msra.mxu2 %v4331_v3  ;;  %v5633_v24 = vld [vmem:[#allocation3 + $0x5c] sm:$0xf]  ;;  %v4811_v28 = vor.u32 %v5833_v17, %v4808_v18 }
 0x264   :  { %v4008_v25 = vld [vmem:[#allocation3 + $0x78] sm:$0xf0] }
 0x265   :  { %2467 = vmatpush.bf16.msra.mxu3 %v4587_v4  ;;  %v5697_v26 = vld [vmem:[#allocation3 + $0x25c] sm:$0xf]  ;;  %2442 = vmatpush.bf16.msra.mxu1 %v4043_v19  ;;  %v4011_v35 = vor.u32 %v5633_v24, %v4008_v25  ;;  %v782_v24 = vperm.slane %v6436_v51, 5 }
 0x266   :  { %v4264_v29 = vld [vmem:[#allocation3 + $0x278] sm:$0xf0] }
 0x267   :  { %2480 = vmatpush.bf16.msrb.mxu0 %v4843_v11  ;;  %v5761_v30 = vld [vmem:[#allocation3 + $0x45c] sm:$0xf]  ;;  %2455 = vmatpush.bf16.msra.mxu2 %v4299_v22  ;;  %v4267_v37 = vor.u32 %v5697_v26, %v4264_v29 }
 0x268   :  { %v4520_v31 = vld [vmem:[#allocation3 + $0x478] sm:$0xf0] }
 0x269   :  { %v5825_v33 = vld [vmem:[#allocation3 + $0x65c] sm:$0xf]  ;;  %2468 = vmatpush.bf16.msra.mxu3 %v4555_v23  ;;  %v4523_v38 = vor.u32 %v5761_v30, %v4520_v31  ;;  %2443 = vmatpush.bf16.msra.mxu1 %v4011_v35 }
 0x26a   :  { %v4776_v34 = vld [vmem:[#allocation3 + $0x678] sm:$0xf0] }
 0x26b   :  { %v5625_v39 = vld [vmem:[#allocation3 + $0x1c] sm:$0xf]  ;;  %2481 = vmatpush.bf16.msrb.mxu0 %v4811_v28  ;;  %v4779_v43 = vor.u32 %v5825_v33, %v4776_v34  ;;  %2456 = vmatpush.bf16.msra.mxu2 %v4267_v37 }
 0x26c   :  { %v3976_v40 = vld [vmem:[#allocation3 + $0x38] sm:$0xf0] }
 0x26d   :  { %v5689_v41 = vld [vmem:[#allocation3 + $0x21c] sm:$0xf]  ;;  %v3979_v52 = vor.u32 %v5625_v39, %v3976_v40  ;;  %2469 = vmatpush.bf16.msra.mxu3 %v4523_v38  ;;  %v2238_v58 = vpop.f32.mrf.mxu1  ;;  %v783_v39 = vperm.slane %v6436_v51, 6 }
 0x26e   :  { %v4232_v44 = vld [vmem:[#allocation3 + $0x238] sm:$0xf0]  ;;  %v2239_v63 = vadd.f32 %v2238_v58, %v780_v57  ;;  %v784_v57 = vperm.slane %v6436_v51, 7 }
 0x26f   :  { %v5753_v45 = vld [vmem:[#allocation3 + $0x41c] sm:$0xf]  ;;  %v4235_v53 = vor.u32 %v5689_v41, %v4232_v44  ;;  %2482 = vmatpush.bf16.msrb.mxu0 %v4779_v43  ;;  %2444 = vmatpush.bf16.msra.mxu1 %v3979_v52 }
 0x270   :  { %v4488_v46 = vld [vmem:[#allocation3 + $0x438] sm:$0xf0] }
 0x271   :  { %v5817_v49 = vld [vmem:[#allocation3 + $0x61c] sm:$0xf]  ;;  %v4491_v55 = vor.u32 %v5753_v45, %v4488_v46  ;;  %2457 = vmatpush.bf16.msra.mxu2 %v4235_v53 }
 0x272   :  { %v4744_v50 = vld [vmem:[#allocation3 + $0x638] sm:$0xf0]  ;;  %2445 = vmatmul.bf16.vlgmr.msra.gmra.mxu1 %v6408_v61 }
 0x273   :  { %v4747_v56 = vor.u32 %v5817_v49, %v4744_v50  ;;  %2470 = vmatpush.bf16.msra.mxu3 %v4491_v55  ;;  %v2277_v59 = vpop.f32.mrf.mxu0 }
 0x274   :  { %2458 = vmatmul.bf16.vlgmr.msra.gmra.mxu2 %v6412_v7 }
 0x275   :  { %2483 = vmatpush.bf16.msrb.mxu0 %v4747_v56  ;;  %v2251_v0 = vpop.f32.mrf.mxu2  ;;  %v2240_v4 = vpop.f32.mrf.mxu1 }
 0x276   :  { %2471 = vmatmul.bf16.vlgmr.msra.gmra.mxu3 %v6414_v8  ;;  %v2252_v1 = vadd.f32 %v2251_v0, %v2239_v63  ;;  %v781_v8 = vperm.slane %v6436_v51, 4 }
 0x277   :  { %v2264_v2 = vpop.f32.mrf.mxu3 }
 0x278   :  { %2484 = vmatmul.bf16.vlgmr.msrb.gmra.mxu0 %v6410_v62  ;;  %v2265_v3 = vadd.f32 %v2264_v2, %v2252_v1 }
 0x27a   :  { %v2278_v6 = vadd.f32 %v2277_v59, %v2265_v3 }
 0x27b   :  { %v2279_v5 = vpop.f32.mrf.mxu0 }
 0x27c   :  { %v2492_v9 = vmax.f32 %v2278_v6, 0.0 }
 0x27d   :  { %v2253_v61 = vpop.f32.mrf.mxu2 }
 0x27e   :  { %v6460_v10 = vpack.c.bf16 %v2492_v9, %v2492_v9 }
 0x27f   :  { %v2266_v7 = vpop.f32.mrf.mxu3 }
 0x28d   :  { %v2290_v62 = vpop.f32.mrf.mxu1 }
 0x28e   :  { %v2291_v12 = vadd.f32 %v2290_v62, %v781_v8 }
 0x293   :  { %v2329_v11 = vpop.f32.mrf.mxu0 }
 0x295   :  { %v2303_v13 = vpop.f32.mrf.mxu2  ;;  %v2292_v17 = vpop.f32.mrf.mxu1 }
 0x296   :  { %v2304_v14 = vadd.f32 %v2303_v13, %v2291_v12 }
 0x297   :  { %v2316_v15 = vpop.f32.mrf.mxu3 }
 0x298   :  { %v2317_v16 = vadd.f32 %v2316_v15, %v2304_v14 }
 0x29a   :  { %v2330_v19 = vadd.f32 %v2329_v11, %v2317_v16 }
 0x29b   :  { %v2331_v18 = vpop.f32.mrf.mxu0 }
 0x29c   :  { %v2493_v20 = vmax.f32 %v2330_v19, 0.0 }
 0x29d   :  { %v2305_v21 = vpop.f32.mrf.mxu2 }
 0x29e   :  { %v6463_v22 = vpack.c.bf16 %v2493_v20, %v2493_v20 }
 0x29f   :  { %v2318_v23 = vpop.f32.mrf.mxu3 }
 0x2ad   :  { %v2342_v25 = vpop.f32.mrf.mxu1 }
 0x2ae   :  { %v2343_v27 = vadd.f32 %v2342_v25, %v782_v24 }
 0x2b3   :  { %v2381_v26 = vpop.f32.mrf.mxu0 }
 0x2b5   :  { %v2355_v28 = vpop.f32.mrf.mxu2  ;;  %v2344_v32 = vpop.f32.mrf.mxu1 }
 0x2b6   :  { %v2356_v29 = vadd.f32 %v2355_v28, %v2343_v27 }
 0x2b7   :  { %v2368_v30 = vpop.f32.mrf.mxu3 }
 0x2b8   :  { %v2369_v31 = vadd.f32 %v2368_v30, %v2356_v29 }
 0x2ba   :  { %v2382_v34 = vadd.f32 %v2381_v26, %v2369_v31 }
 0x2bb   :  { %v2383_v33 = vpop.f32.mrf.mxu0 }
 0x2bc   :  { %v2494_v35 = vmax.f32 %v2382_v34, 0.0 }
 0x2bd   :  { %v2357_v36 = vpop.f32.mrf.mxu2 }
 0x2be   :  { %v6466_v37 = vpack.c.bf16 %v2494_v35, %v2494_v35 }
 0x2bf   :  { %v2370_v38 = vpop.f32.mrf.mxu3 }
 0x2cd   :  { %v2394_v40 = vpop.f32.mrf.mxu1 }
 0x2ce   :  { %v2395_v42 = vadd.f32 %v2394_v40, %v783_v39 }
 0x2d3   :  { %v2433_v41 = vpop.f32.mrf.mxu0 }
 0x2d5   :  { %v2407_v43 = vpop.f32.mrf.mxu2  ;;  %v2396_v48 = vpop.f32.mrf.mxu1 }
 0x2d6   :  { %v2408_v44 = vadd.f32 %v2407_v43, %v2395_v42 }
 0x2d7   :  { %v2420_v45 = vpop.f32.mrf.mxu3 }
 0x2d8   :  { %v2421_v46 = vadd.f32 %v2420_v45, %v2408_v44 }
 0x2da   :  { %v2434_v50 = vadd.f32 %v2433_v41, %v2421_v46 }
 0x2db   :  { %v2435_v49 = vpop.f32.mrf.mxu0 }
 0x2dc   :  { %v2495_v52 = vmax.f32 %v2434_v50, 0.0 }
 0x2dd   :  { %v2409_v53 = vpop.f32.mrf.mxu2 }
 0x2de   :  { %v6469_v55 = vpack.c.bf16 %v2495_v52, %v2495_v52 }
 0x2df   :  { %v2422_v56 = vpop.f32.mrf.mxu3 }
 0x2ef   :  { %v2446_v58 = vpop.f32.mrf.mxu1 }
 0x2f0   :  { %v2447_v63 = vadd.f32 %v2446_v58, %v784_v57 }
 0x2f5   :  { %v2485_v59 = vpop.f32.mrf.mxu0 }
 0x2f7   :  { %v2459_v0 = vpop.f32.mrf.mxu2  ;;  %v2448_v3 = vpop.f32.mrf.mxu1 }
 0x2f8   :  { %v2460_v2 = vadd.f32 %v2459_v0, %v2447_v63 }
 0x2f9   :  { %v2472_v1 = vpop.f32.mrf.mxu3 }
 0x2fa   :  { %v2473_v4 = vadd.f32 %v2472_v1, %v2460_v2 }
 0x2fc   :  { %v2486_v6 = vadd.f32 %v2485_v59, %v2473_v4 }
 0x2fd   :  { %v2487_v5 = vpop.f32.mrf.mxu0 }
 0x2fe   :  { %v2496_v9 = vmax.f32 %v2486_v6, 0.0 }
 0x2ff   :  { %v2461_v61 = vpop.f32.mrf.mxu2 }
 0x300   :  { %v6472_v8 = vpack.c.bf16 %v2496_v9, %v2496_v9 }
 0x301   :  { %v2474_v7 = vpop.f32.mrf.mxu3 }
 0x302   :  { %6297 = dma.done.wait [#allocation5 + $0x1], 16384 }
 0x303   :  { %6298 = vsyncadd [#allocation5 + $0x1], 4294950912  ;;  %v5030_v62 = vld [vmem:[#allocation4 + $0x70] sm:$0xf]  ;;  %v5893_v11 = vld [vmem:[#allocation4 + $0x74] sm:$0xf0] }
 0x304   :  { %v5094_v51 = vld [vmem:[#allocation4 + $0xf0] sm:$0xf]  ;;  %v5031_v12 = vor.u32 %v5893_v11, %v5030_v62  ;;  %v5909_v13 = vld [vmem:[#allocation4 + $0xf4] sm:$0xf0]  ;;  %v5022_v20 = vld [vmem:[#allocation4 + $0x60] sm:$0xf] }
 0x305   :  { %v5158_v14 = vld [vmem:[#allocation4 + $0x170] sm:$0xf]  ;;  %v5925_v15 = vld [vmem:[#allocation4 + $0x174] sm:$0xf0]  ;;  %v5095_v16 = vor.u32 %v5909_v13, %v5094_v51  ;;  %v5891_v23 = vld [vmem:[#allocation4 + $0x64] sm:$0xf0] }
 0x306   :  { %v5159_v17 = vor.u32 %v5925_v15, %v5158_v14  ;;  %v5222_v18 = vld [vmem:[#allocation4 + $0x1f0] sm:$0xf]  ;;  %v5941_v19 = vld [vmem:[#allocation4 + $0x1f4] sm:$0xf0]  ;;  %3284 = vmatpush.bf16.msrb.mxu1 %v5031_v12  ;;  %v5086_v24 = vld [vmem:[#allocation4 + $0xe0] sm:$0xf]  ;;  %v5023_v26 = vor.u32 %v5891_v23, %v5022_v20 }
 0x307   :  { %v5223_v21 = vor.u32 %v5941_v19, %v5222_v18  ;;  %v5907_v25 = vld [vmem:[#allocation4 + $0xe4] sm:$0xf0]  ;;  %3297 = vmatpush.bf16.msrb.mxu2 %v5095_v16  ;;  %v5150_v28 = vld [vmem:[#allocation4 + $0x160] sm:$0xf]  ;;  %v5014_v33 = vld [vmem:[#allocation4 + $0x50] sm:$0xf] }
 0x308   :  { %3310 = vmatpush.bf16.msrb.mxu3 %v5159_v17  ;;  %v5087_v27 = vor.u32 %v5907_v25, %v5086_v24  ;;  %v5923_v29 = vld [vmem:[#allocation4 + $0x164] sm:$0xf0]  ;;  %v5214_v30 = vld [vmem:[#allocation4 + $0x1e0] sm:$0xf]  ;;  %v5889_v34 = vld [vmem:[#allocation4 + $0x54] sm:$0xf0] }
 0x309   :  { %3323 = vmatpush.bf16.msra.mxu0 %v5223_v21  ;;  %v5151_v31 = vor.u32 %v5923_v29, %v5150_v28  ;;  %v5939_v32 = vld [vmem:[#allocation4 + $0x1e4] sm:$0xf0]  ;;  %v5078_v36 = vld [vmem:[#allocation4 + $0xd0] sm:$0xf]  ;;  %v5905_v38 = vld [vmem:[#allocation4 + $0xd4] sm:$0xf0]  ;;  %v5015_v40 = vor.u32 %v5889_v34, %v5014_v33 }
 0x30a   :  { %v5215_v35 = vor.u32 %v5939_v32, %v5214_v30  ;;  %v5142_v39 = vld [vmem:[#allocation4 + $0x150] sm:$0xf]  ;;  %3285 = vmatpush.bf16.msrb.mxu1 %v5023_v26  ;;  %v5921_v41 = vld [vmem:[#allocation4 + $0x154] sm:$0xf0]  ;;  %v5079_v44 = vor.u32 %v5905_v38, %v5078_v36  ;;  %v5006_v46 = vld [vmem:[#allocation4 + $0x40] sm:$0xf] }
 0x30b   :  { %v5206_v42 = vld [vmem:[#allocation4 + $0x1d0] sm:$0xf]  ;;  %v5937_v43 = vld [vmem:[#allocation4 + $0x1d4] sm:$0xf0]  ;;  %3298 = vmatpush.bf16.msrb.mxu2 %v5087_v27  ;;  %v5143_v45 = vor.u32 %v5921_v41, %v5142_v39  ;;  %v5887_v48 = vld [vmem:[#allocation4 + $0x44] sm:$0xf0] }
 0x30c   :  { %3311 = vmatpush.bf16.msrb.mxu3 %v5151_v31  ;;  %v5070_v49 = vld [vmem:[#allocation4 + $0xc0] sm:$0xf]  ;;  %v5207_v50 = vor.u32 %v5937_v43, %v5206_v42  ;;  %v5903_v52 = vld [vmem:[#allocation4 + $0xc4] sm:$0xf0]  ;;  %v5007_v59 = vor.u32 %v5887_v48, %v5006_v46  ;;  %v4998_v1 = vld [vmem:[#allocation4 + $0x30] sm:$0xf] }
 0x30d   :  { %3324 = vmatpush.bf16.msra.mxu0 %v5215_v35  ;;  %v5134_v53 = vld [vmem:[#allocation4 + $0x140] sm:$0xf]  ;;  %v5919_v56 = vld [vmem:[#allocation4 + $0x144] sm:$0xf0]  ;;  %v5071_v63 = vor.u32 %v5903_v52, %v5070_v49  ;;  %v5885_v2 = vld [vmem:[#allocation4 + $0x34] sm:$0xf0] }
 0x30e   :  { %v5198_v57 = vld [vmem:[#allocation4 + $0x1c0] sm:$0xf]  ;;  %v5935_v58 = vld [vmem:[#allocation4 + $0x1c4] sm:$0xf0]  ;;  %3286 = vmatpush.bf16.msrb.mxu1 %v5015_v40  ;;  %v5135_v0 = vor.u32 %v5919_v56, %v5134_v53  ;;  %v5062_v3 = vld [vmem:[#allocation4 + $0xb0] sm:$0xf]  ;;  %v4999_v62 = vor.u32 %v5885_v2, %v4998_v1 }
 0x30f   :  { %3299 = vmatpush.bf16.msrb.mxu2 %v5079_v44  ;;  %v5199_v4 = vor.u32 %v5935_v58, %v5198_v57  ;;  %v5901_v5 = vld [vmem:[#allocation4 + $0xb4] sm:$0xf0]  ;;  %v5126_v6 = vld [vmem:[#allocation4 + $0x130] sm:$0xf]  ;;  %v4990_v12 = vld [vmem:[#allocation4 + $0x20] sm:$0xf] }
 0x310   :  { %3312 = vmatpush.bf16.msrb.mxu3 %v5143_v45  ;;  %v5917_v9 = vld [vmem:[#allocation4 + $0x134] sm:$0xf0]  ;;  %v5190_v61 = vld [vmem:[#allocation4 + $0x1b0] sm:$0xf]  ;;  %v5063_v11 = vor.u32 %v5901_v5, %v5062_v3  ;;  %v5883_v13 = vld [vmem:[#allocation4 + $0x24] sm:$0xf0] }
 0x311   :  { %3325 = vmatpush.bf16.msra.mxu0 %v5207_v50  ;;  %v5933_v7 = vld [vmem:[#allocation4 + $0x1b4] sm:$0xf0]  ;;  %v5127_v51 = vor.u32 %v5917_v9, %v5126_v6  ;;  %v5054_v14 = vld [vmem:[#allocation4 + $0xa0] sm:$0xf]  ;;  %v5899_v16 = vld [vmem:[#allocation4 + $0xa4] sm:$0xf0]  ;;  %v4991_v21 = vor.u32 %v5883_v13, %v4990_v12 }
 0x312   :  { %3287 = vmatpush.bf16.msrb.mxu1 %v5007_v59  ;;  %v5191_v15 = vor.u32 %v5933_v7, %v5190_v61  ;;  %v5118_v17 = vld [vmem:[#allocation4 + $0x120] sm:$0xf]  ;;  %v5915_v18 = vld [vmem:[#allocation4 + $0x124] sm:$0xf0]  ;;  %v5055_v23 = vor.u32 %v5899_v16, %v5054_v14  ;;  %v4982_v25 = vld [vmem:[#allocation4 + $0x10] sm:$0xf] }
 0x313   :  { %3300 = vmatpush.bf16.msrb.mxu2 %v5071_v63  ;;  %v5182_v19 = vld [vmem:[#allocation4 + $0x1a0] sm:$0xf]  ;;  %v5931_v20 = vld [vmem:[#allocation4 + $0x1a4] sm:$0xf0]  ;;  %v5119_v24 = vor.u32 %v5915_v18, %v5118_v17  ;;  %v5881_v26 = vld [vmem:[#allocation4 + $0x14] sm:$0xf0] }
 0x314   :  { %3313 = vmatpush.bf16.msrb.mxu3 %v5135_v0  ;;  %v5046_v27 = vld [vmem:[#allocation4 + $0x90] sm:$0xf]  ;;  %v5183_v28 = vor.u32 %v5931_v20, %v5182_v19  ;;  %v5897_v29 = vld [vmem:[#allocation4 + $0x94] sm:$0xf0]  ;;  %v4983_v34 = vor.u32 %v5881_v26, %v4982_v25  ;;  %v4974_v35 = vld [vmem:[#allocation4] sm:$0xf] }
 0x315   :  { %3326 = vmatpush.bf16.msra.mxu0 %v5199_v4  ;;  %v5110_v30 = vld [vmem:[#allocation4 + $0x110] sm:$0xf]  ;;  %v5913_v31 = vld [vmem:[#allocation4 + $0x114] sm:$0xf0]  ;;  %v5879_v36 = vld [vmem:[#allocation4 + $0x4] sm:$0xf0]  ;;  %v5047_v38 = vor.u32 %v5897_v29, %v5046_v27 }
 0x316   :  { %3288 = vmatpush.bf16.msrb.mxu1 %v4999_v62  ;;  %v5174_v32 = vld [vmem:[#allocation4 + $0x190] sm:$0xf]  ;;  %v5929_v33 = vld [vmem:[#allocation4 + $0x194] sm:$0xf0]  ;;  %v5111_v39 = vor.u32 %v5913_v31, %v5110_v30  ;;  %v5038_v40 = vld [vmem:[#allocation4 + $0x80] sm:$0xf]  ;;  %v4975_v52 = vor.u32 %v5879_v36, %v4974_v35 }
 0x317   :  { %3301 = vmatpush.bf16.msrb.mxu2 %v5063_v11  ;;  %v5895_v41 = vld [vmem:[#allocation4 + $0x84] sm:$0xf0]  ;;  %v5102_v42 = vld [vmem:[#allocation4 + $0x100] sm:$0xf]  ;;  %v5175_v43 = vor.u32 %v5929_v33, %v5174_v32  ;;  %v5286_v45 = vld [vmem:[#allocation4 + $0x270] sm:$0xf] }
 0x318   :  { %3314 = vmatpush.bf16.msrb.mxu3 %v5127_v51  ;;  %v5911_v44 = vld [vmem:[#allocation4 + $0x104] sm:$0xf0]  ;;  %v5957_v46 = vld [vmem:[#allocation4 + $0x274] sm:$0xf0]  ;;  %v5350_v48 = vld [vmem:[#allocation4 + $0x2f0] sm:$0xf]  ;;  %v5039_v58 = vor.u32 %v5895_v41, %v5038_v40 }
 0x319   :  { %3327 = vmatpush.bf16.msra.mxu0 %v5191_v15  ;;  %v5973_v49 = vld [vmem:[#allocation4 + $0x2f4] sm:$0xf0]  ;;  %v5414_v50 = vld [vmem:[#allocation4 + $0x370] sm:$0xf]  ;;  %v5166_v56 = vld [vmem:[#allocation4 + $0x180] sm:$0xf]  ;;  %v5103_v59 = vor.u32 %v5911_v44, %v5102_v42  ;;  %v5287_v1 = vor.u32 %v5957_v46, %v5286_v45 }
 0x31a   :  { %3289 = vmatpush.bf16.msrb.mxu1 %v4991_v21  ;;  %v5989_v53 = vld [vmem:[#allocation4 + $0x374] sm:$0xf0]  ;;  %v5927_v57 = vld [vmem:[#allocation4 + $0x184] sm:$0xf0]  ;;  %v5478_v63 = vld [vmem:[#allocation4 + $0x3f0] sm:$0xf]  ;;  %v5351_v2 = vor.u32 %v5973_v49, %v5350_v48 }
 0x31b   :  { %3302 = vmatpush.bf16.msrb.mxu2 %v5055_v23  ;;  %v6005_v0 = vld [vmem:[#allocation4 + $0x3f4] sm:$0xf0]  ;;  %v5278_v3 = vld [vmem:[#allocation4 + $0x260] sm:$0xf]  ;;  %v5415_v4 = vor.u32 %v5989_v53, %v5414_v50  ;;  %v5167_v5 = vor.u32 %v5927_v57, %v5166_v56  ;;  %v5955_v6 = vld [vmem:[#allocation4 + $0x264] sm:$0xf0] }
 0x31c   :  { %3315 = vmatpush.bf16.msrb.mxu3 %v5119_v24  ;;  %v5342_v9 = vld [vmem:[#allocation4 + $0x2e0] sm:$0xf]  ;;  %v5971_v61 = vld [vmem:[#allocation4 + $0x2e4] sm:$0xf0]  ;;  %v5479_v7 = vor.u32 %v6005_v0, %v5478_v63  ;;  %v5279_v13 = vor.u32 %v5955_v6, %v5278_v3  ;;  %v5270_v15 = vld [vmem:[#allocation4 + $0x250] sm:$0xf] }
 0x31d   :  { %3328 = vmatpush.bf16.msra.mxu0 %v5183_v28  ;;  %v5406_v62 = vld [vmem:[#allocation4 + $0x360] sm:$0xf]  ;;  %v5987_v11 = vld [vmem:[#allocation4 + $0x364] sm:$0xf0]  ;;  %v5343_v14 = vor.u32 %v5971_v61, %v5342_v9  ;;  %v5953_v17 = vld [vmem:[#allocation4 + $0x254] sm:$0xf0] }
 0x31e   :  { %3290 = vmatpush.bf16.msrb.mxu1 %v4983_v34  ;;  %v5470_v51 = vld [vmem:[#allocation4 + $0x3e0] sm:$0xf]  ;;  %v6003_v12 = vld [vmem:[#allocation4 + $0x3e4] sm:$0xf0]  ;;  %v5407_v16 = vor.u32 %v5987_v11, %v5406_v62  ;;  %v5334_v18 = vld [vmem:[#allocation4 + $0x2d0] sm:$0xf]  ;;  %v5271_v26 = vor.u32 %v5953_v17, %v5270_v15 }
 0x31f   :  { %3303 = vmatpush.bf16.msrb.mxu2 %v5047_v38  ;;  %v5969_v19 = vld [vmem:[#allocation4 + $0x2d4] sm:$0xf0]  ;;  %v5471_v20 = vor.u32 %v6003_v12, %v5470_v51  ;;  %v5398_v21 = vld [vmem:[#allocation4 + $0x350] sm:$0xf]  ;;  %v5262_v28 = vld [vmem:[#allocation4 + $0x240] sm:$0xf] }
 0x320   :  { %3316 = vmatpush.bf16.msrb.mxu3 %v5111_v39  ;;  %v5985_v23 = vld [vmem:[#allocation4 + $0x354] sm:$0xf0]  ;;  %v5462_v24 = vld [vmem:[#allocation4 + $0x3d0] sm:$0xf]  ;;  %v5335_v27 = vor.u32 %v5969_v19, %v5334_v18  ;;  %v5951_v30 = vld [vmem:[#allocation4 + $0x244] sm:$0xf0] }
 0x321   :  { %3329 = vmatpush.bf16.msra.mxu0 %v5175_v43  ;;  %v6001_v25 = vld [vmem:[#allocation4 + $0x3d4] sm:$0xf0]  ;;  %v5399_v29 = vor.u32 %v5985_v23, %v5398_v21  ;;  %v5326_v31 = vld [vmem:[#allocation4 + $0x2c0] sm:$0xf]  ;;  %v5967_v32 = vld [vmem:[#allocation4 + $0x2c4] sm:$0xf0]  ;;  %v5263_v39 = vor.u32 %v5951_v30, %v5262_v28 }
 0x322   :  { %3291 = vmatpush.bf16.msrb.mxu1 %v4975_v52  ;;  %v5463_v33 = vor.u32 %v6001_v25, %v5462_v24  ;;  %v5390_v34 = vld [vmem:[#allocation4 + $0x340] sm:$0xf]  ;;  %v5983_v35 = vld [vmem:[#allocation4 + $0x344] sm:$0xf0]  ;;  %v5327_v40 = vor.u32 %v5967_v32, %v5326_v31  ;;  %v5254_v41 = vld [vmem:[#allocation4 + $0x230] sm:$0xf] }
 0x323   :  { %3304 = vmatpush.bf16.msrb.mxu2 %v5039_v58  ;;  %v5454_v36 = vld [vmem:[#allocation4 + $0x3c0] sm:$0xf]  ;;  %v5999_v38 = vld [vmem:[#allocation4 + $0x3c4] sm:$0xf0]  ;;  %v5391_v42 = vor.u32 %v5983_v35, %v5390_v34  ;;  %v5949_v43 = vld [vmem:[#allocation4 + $0x234] sm:$0xf0] }
 0x324   :  { %3317 = vmatpush.bf16.msrb.mxu3 %v5103_v59  ;;  %v5318_v44 = vld [vmem:[#allocation4 + $0x2b0] sm:$0xf]  ;;  %v5965_v45 = vld [vmem:[#allocation4 + $0x2b4] sm:$0xf0]  ;;  %v5455_v46 = vor.u32 %v5999_v38, %v5454_v36  ;;  %v5255_v53 = vor.u32 %v5949_v43, %v5254_v41  ;;  %v5246_v57 = vld [vmem:[#allocation4 + $0x220] sm:$0xf] }
 0x325   :  { %3330 = vmatpush.bf16.msra.mxu0 %v5167_v5  ;;  %3292 = vmatmul.bf16.vlgmr.msrb.gmra.mxu1 %v6439_v60  ;;  %v5382_v48 = vld [vmem:[#allocation4 + $0x330] sm:$0xf]  ;;  %v5981_v49 = vld [vmem:[#allocation4 + $0x334] sm:$0xf0]  ;;  %v5319_v56 = vor.u32 %v5965_v45, %v5318_v44  ;;  %v5947_v59 = vld [vmem:[#allocation4 + $0x224] sm:$0xf0] }
 0x326   :  { %3336 = vmatpush.bf16.msra.mxu1 %v5287_v1  ;;  %3305 = vmatmul.bf16.vlgmr.msrb.gmra.mxu2 %v6446_v54  ;;  %v5446_v50 = vld [vmem:[#allocation4 + $0x3b0] sm:$0xf]  ;;  %v5997_v52 = vld [vmem:[#allocation4 + $0x3b4] sm:$0xf0]  ;;  %v5383_v58 = vor.u32 %v5981_v49, %v5382_v48  ;;  %v5310_v63 = vld [vmem:[#allocation4 + $0x2a0] sm:$0xf]  ;;  %v5247_v6 = vor.u32 %v5947_v59, %v5246_v57 }
 0x327   :  { %3349 = vmatpush.bf16.msra.mxu2 %v5351_v2  ;;  %3318 = vmatmul.bf16.vlgmr.msrb.gmra.mxu3 %v6453_v47  ;;  %v5963_v0 = vld [vmem:[#allocation4 + $0x2a4] sm:$0xf0]  ;;  %v5447_v1 = vor.u32 %v5997_v52, %v5446_v50  ;;  %v5374_v2 = vld [vmem:[#allocation4 + $0x320] sm:$0xf]  ;;  %v5238_v61 = vld [vmem:[#allocation4 + $0x210] sm:$0xf] }
 0x328   :  { %3362 = vmatpush.bf16.msra.mxu3 %v5415_v4  ;;  %3331 = vmatmul.bf16.vlgmr.msra.gmra.mxu0 %v6460_v10  ;;  %v5979_v3 = vld [vmem:[#allocation4 + $0x324] sm:$0xf0]  ;;  %v5438_v4 = vld [vmem:[#allocation4 + $0x3a0] sm:$0xf]  ;;  %v5311_v9 = vor.u32 %v5963_v0, %v5310_v63  ;;  %v5945_v62 = vld [vmem:[#allocation4 + $0x214] sm:$0xf0] }
 0x329   :  { %3375 = vmatpush.bf16.msrb.mxu0 %v5479_v7  ;;  %v5995_v5 = vld [vmem:[#allocation4 + $0x3a4] sm:$0xf0]  ;;  %v5375_v7 = vor.u32 %v5979_v3, %v5374_v2  ;;  %v5302_v11 = vld [vmem:[#allocation4 + $0x290] sm:$0xf]  ;;  %v5961_v51 = vld [vmem:[#allocation4 + $0x294] sm:$0xf0]  ;;  %v5239_v17 = vor.u32 %v5945_v62, %v5238_v61 }
 0x32a   :  { %3337 = vmatpush.bf16.msra.mxu1 %v5279_v13  ;;  %v5439_v12 = vor.u32 %v5995_v5, %v5438_v4  ;;  %v5366_v13 = vld [vmem:[#allocation4 + $0x310] sm:$0xf]  ;;  %v5303_v18 = vor.u32 %v5961_v51, %v5302_v11  ;;  %v5230_v19 = vld [vmem:[#allocation4 + $0x200] sm:$0xf]  ;;  %v5959_v24 = vld [vmem:[#allocation4 + $0x284] sm:$0xf0] }
 0x32b   :  { %3350 = vmatpush.bf16.msra.mxu2 %v5343_v14  ;;  %v5977_v14 = vld [vmem:[#allocation4 + $0x314] sm:$0xf0]  ;;  %v5430_v15 = vld [vmem:[#allocation4 + $0x390] sm:$0xf]  ;;  %v5294_v21 = vld [vmem:[#allocation4 + $0x280] sm:$0xf] }
 0x32c   :  { %3363 = vmatpush.bf16.msra.mxu3 %v5407_v16  ;;  %v5993_v16 = vld [vmem:[#allocation4 + $0x394] sm:$0xf0]  ;;  %v5367_v23 = vor.u32 %v5977_v14, %v5366_v13  ;;  %v5358_v25 = vld [vmem:[#allocation4 + $0x300] sm:$0xf]  ;;  %v5892_v28 = vld [vmem:[#allocation4 + $0x74] sm:$0xf]  ;;  %v5295_v35 = vor.u32 %v5959_v24, %v5294_v21 }
 0x32d   :  { %3376 = vmatpush.bf16.msrb.mxu0 %v5471_v20  ;;  %v5943_v20 = vld [vmem:[#allocation4 + $0x204] sm:$0xf0]  ;;  %v5908_v30 = vld [vmem:[#allocation4 + $0xf4] sm:$0xf]  ;;  %v5096_v31 = vld [vmem:[#allocation4 + $0xf8] sm:$0xf0] }
 0x32e   :  { %3338 = vmatpush.bf16.msra.mxu1 %v5271_v26  ;;  %v5975_v26 = vld [vmem:[#allocation4 + $0x304] sm:$0xf0]  ;;  %v5924_v32 = vld [vmem:[#allocation4 + $0x174] sm:$0xf]  ;;  %v5231_v34 = vor.u32 %v5943_v20, %v5230_v19  ;;  %v5422_v36 = vld [vmem:[#allocation4 + $0x380] sm:$0xf]  ;;  %v5099_v43 = vor.u32 %v5908_v30, %v5096_v31 }
 0x32f   :  { %3351 = vmatpush.bf16.msra.mxu2 %v5335_v27  ;;  %v5431_v27 = vor.u32 %v5993_v16, %v5430_v15  ;;  %v5991_v38 = vld [vmem:[#allocation4 + $0x384] sm:$0xf0]  ;;  %v5940_v41 = vld [vmem:[#allocation4 + $0x1f4] sm:$0xf]  ;;  %v5890_v45 = vld [vmem:[#allocation4 + $0x64] sm:$0xf] }
 0x330   :  { %3364 = vmatpush.bf16.msra.mxu3 %v5399_v29  ;;  %v5032_v29 = vld [vmem:[#allocation4 + $0x78] sm:$0xf0]  ;;  %v5906_v48 = vld [vmem:[#allocation4 + $0xe4] sm:$0xf]  ;;  %v5423_v49 = vor.u32 %v5991_v38, %v5422_v36  ;;  %v5088_v50 = vld [vmem:[#allocation4 + $0xe8] sm:$0xf0] }
 0x331   :  { %3377 = vmatpush.bf16.msrb.mxu0 %v5463_v33  ;;  %v5160_v33 = vld [vmem:[#allocation4 + $0x178] sm:$0xf0]  ;;  %v5922_v52 = vld [vmem:[#allocation4 + $0x164] sm:$0xf]  ;;  %v5216_v59 = vld [vmem:[#allocation4 + $0x1e8] sm:$0xf0]  ;;  %v5091_v63 = vor.u32 %v5906_v48, %v5088_v50 }
 0x332   :  { %3339 = vmatpush.bf16.msra.mxu1 %v5263_v39  ;;  %v5359_v39 = vor.u32 %v5975_v26, %v5358_v25  ;;  %v5163_v44 = vor.u32 %v5924_v32, %v5160_v33  ;;  %v5016_v2 = vld [vmem:[#allocation4 + $0x58] sm:$0xf0]  ;;  %v5904_v3 = vld [vmem:[#allocation4 + $0xd4] sm:$0xf]  ;;  %v5008_v13 = vld [vmem:[#allocation4 + $0x48] sm:$0xf0] }
 0x333   :  { %3352 = vmatpush.bf16.msra.mxu2 %v5327_v40  ;;  %v5035_v40 = vor.u32 %v5892_v28, %v5032_v29  ;;  %v5080_v4 = vld [vmem:[#allocation4 + $0xd8] sm:$0xf0]  ;;  %v5920_v5 = vld [vmem:[#allocation4 + $0x154] sm:$0xf]  ;;  %v5902_v14 = vld [vmem:[#allocation4 + $0xc4] sm:$0xf] }
 0x334   :  { %3365 = vmatpush.bf16.msra.mxu3 %v5391_v42  ;;  %v5224_v42 = vld [vmem:[#allocation4 + $0x1f8] sm:$0xf0]  ;;  %v5083_v11 = vor.u32 %v5904_v3, %v5080_v4  ;;  %v5072_v15 = vld [vmem:[#allocation4 + $0xc8] sm:$0xf0]  ;;  %v5918_v16 = vld [vmem:[#allocation4 + $0x144] sm:$0xf] }
 0x335   :  { %3378 = vmatpush.bf16.msrb.mxu0 %v5455_v46  ;;  %v5024_v46 = vld [vmem:[#allocation4 + $0x68] sm:$0xf0]  ;;  %v5208_v62 = vld [vmem:[#allocation4 + $0x1d8] sm:$0xf0]  ;;  %v5934_v20 = vld [vmem:[#allocation4 + $0x1c4] sm:$0xf] }
 0x336   :  { %3340 = vmatpush.bf16.msra.mxu1 %v5255_v53  ;;  %v5152_v53 = vld [vmem:[#allocation4 + $0x168] sm:$0xf0]  ;;  %v5027_v57 = vor.u32 %v5890_v45, %v5024_v46  ;;  %v5884_v25 = vld [vmem:[#allocation4 + $0x34] sm:$0xf]  ;;  %v5000_v26 = vld [vmem:[#allocation4 + $0x38] sm:$0xf0] }
 0x337   :  { %3353 = vmatpush.bf16.msra.mxu2 %v5319_v56  ;;  %v5227_v56 = vor.u32 %v5940_v41, %v5224_v42  ;;  %v5155_v0 = vor.u32 %v5922_v52, %v5152_v53  ;;  %v5200_v21 = vld [vmem:[#allocation4 + $0x1c8] sm:$0xf0]  ;;  %v5064_v28 = vld [vmem:[#allocation4 + $0xb8] sm:$0xf0]  ;;  %v5916_v29 = vld [vmem:[#allocation4 + $0x134] sm:$0xf]  ;;  %v5003_v32 = vor.u32 %v5884_v25, %v5000_v26 }
 0x338   :  { %3366 = vmatpush.bf16.msra.mxu3 %v5383_v58  ;;  %v5938_v58 = vld [vmem:[#allocation4 + $0x1e4] sm:$0xf]  ;;  %v5128_v30 = vld [vmem:[#allocation4 + $0x138] sm:$0xf0]  ;;  %v5203_v31 = vor.u32 %v5934_v20, %v5200_v21  ;;  %v5932_v33 = vld [vmem:[#allocation4 + $0x1b4] sm:$0xf] }
 0x339   :  { %3379 = vmatpush.bf16.msrb.mxu0 %v5447_v1  ;;  %v5888_v1 = vld [vmem:[#allocation4 + $0x54] sm:$0xf]  ;;  %v5131_v36 = vor.u32 %v5916_v29, %v5128_v30  ;;  %v5882_v38 = vld [vmem:[#allocation4 + $0x24] sm:$0xf]  ;;  %v5056_v41 = vld [vmem:[#allocation4 + $0xa8] sm:$0xf0] }
 0x33a   :  { %3341 = vmatpush.bf16.msra.mxu1 %v5247_v6  ;;  %v5144_v6 = vld [vmem:[#allocation4 + $0x158] sm:$0xf0]  ;;  %v5019_v61 = vor.u32 %v5888_v1, %v5016_v2  ;;  %v5914_v42 = vld [vmem:[#allocation4 + $0x124] sm:$0xf]  ;;  %v5184_v48 = vld [vmem:[#allocation4 + $0x1a8] sm:$0xf0] }
 0x33b   :  { %3354 = vmatpush.bf16.msra.mxu2 %v5311_v9  ;;  %v5219_v9 = vor.u32 %v5938_v58, %v5216_v59  ;;  %v5147_v51 = vor.u32 %v5920_v5, %v5144_v6  ;;  %v5930_v46 = vld [vmem:[#allocation4 + $0x1a4] sm:$0xf]  ;;  %v5880_v52 = vld [vmem:[#allocation4 + $0x14] sm:$0xf]  ;;  %v4984_v53 = vld [vmem:[#allocation4 + $0x18] sm:$0xf0] }
 0x33c   :  { %3367 = vmatpush.bf16.msra.mxu3 %v5375_v7  ;;  %v5936_v7 = vld [vmem:[#allocation4 + $0x1d4] sm:$0xf]  ;;  %v5112_v59 = vld [vmem:[#allocation4 + $0x118] sm:$0xf0]  ;;  %v4987_v1 = vor.u32 %v5880_v52, %v4984_v53  ;;  %v5878_v3 = vld [vmem:[#allocation4 + $0x4] sm:$0xf] }
 0x33d   :  { %3380 = vmatpush.bf16.msrb.mxu0 %v5439_v12  ;;  %v5886_v12 = vld [vmem:[#allocation4 + $0x44] sm:$0xf]  ;;  %v5912_v58 = vld [vmem:[#allocation4 + $0x114] sm:$0xf]  ;;  %v5176_v2 = vld [vmem:[#allocation4 + $0x198] sm:$0xf0] }
 0x33e   :  { %3342 = vmatpush.bf16.msra.mxu1 %v5239_v17  ;;  %v5136_v17 = vld [vmem:[#allocation4 + $0x148] sm:$0xf0]  ;;  %v5011_v19 = vor.u32 %v5886_v12, %v5008_v13  ;;  %v5115_v6 = vor.u32 %v5912_v58, %v5112_v59  ;;  %v5972_v13 = vld [vmem:[#allocation4 + $0x2f4] sm:$0xf]  ;;  %v5464_v52 = vld [vmem:[#allocation4 + $0x3d8] sm:$0xf0] }
 0x33f   :  { %3355 = vmatpush.bf16.msra.mxu2 %v5303_v18  ;;  %v5211_v18 = vor.u32 %v5936_v7, %v5208_v62  ;;  %v5139_v24 = vor.u32 %v5918_v16, %v5136_v17  ;;  %v4976_v4 = vld [vmem:[#allocation4 + $0x8] sm:$0xf0]  ;;  %v5910_v7 = vld [vmem:[#allocation4 + $0x104] sm:$0xf]  ;;  %v5416_v17 = vld [vmem:[#allocation4 + $0x378] sm:$0xf0] }
 0x340   :  { %3368 = vmatpush.bf16.msra.mxu3 %v5367_v23  ;;  %v5075_v23 = vor.u32 %v5902_v14, %v5072_v15  ;;  %v5104_v62 = vld [vmem:[#allocation4 + $0x108] sm:$0xf0]  ;;  %v5352_v14 = vld [vmem:[#allocation4 + $0x2f8] sm:$0xf0]  ;;  %v5988_v15 = vld [vmem:[#allocation4 + $0x374] sm:$0xf]  ;;  %v4979_v16 = vor.u32 %v5878_v3, %v4976_v4 }
 0x341   :  { %3381 = vmatpush.bf16.msrb.mxu0 %v5431_v27  ;;  %v5900_v27 = vld [vmem:[#allocation4 + $0xb4] sm:$0xf]  ;;  %v5107_v21 = vor.u32 %v5910_v7, %v5104_v62  ;;  %v5355_v26 = vor.u32 %v5972_v13, %v5352_v14  ;;  %v5280_v30 = vld [vmem:[#allocation4 + $0x268] sm:$0xf0]  ;;  %v5320_v7 = vld [vmem:[#allocation4 + $0x2b8] sm:$0xf0] }
 0x342   :  { %3343 = vmatpush.bf16.msra.mxu1 %v5231_v34  ;;  %v5192_v34 = vld [vmem:[#allocation4 + $0x1b8] sm:$0xf0]  ;;  %v5264_v59 = vld [vmem:[#allocation4 + $0x248] sm:$0xf0]  ;;  %s6316_s13 = smov [#allocation18]   ;;  %s3762_s16 = sshll.u32 %s6506_s10, 4  ;;  %s3763_s16 = int_to_ptr.hbm [resolvable:$true] %s3762_s16 }
 0x343   :  { %3356 = vmatpush.bf16.msra.mxu2 %v5295_v35  ;;  %v5067_v35 = vor.u32 %v5900_v27, %v5064_v28  ;;  %v5954_v27 = vld [vmem:[#allocation4 + $0x264] sm:$0xf]  ;;  %v5419_v28 = vor.u32 %v5988_v15, %v5416_v17  ;;  %v5456_v3 = vld [vmem:[#allocation4 + $0x3c8] sm:$0xf0]  ;;  %s3760_s14 = sshll.u32 %s6316_s13, 4  ;;  %vm3753_vm1 = vcmask 64512   ;;  %s3761_s14 = int_to_ptr.vmem [resolvable:$true] %s3760_s14 }
 0x344   :  { %3369 = vmatpush.bf16.msra.mxu3 %v5359_v39  ;;  %v4992_v39 = vld [vmem:[#allocation4 + $0x28] sm:$0xf0]  ;;  %v5946_v15 = vld [vmem:[#allocation4 + $0x224] sm:$0xf] }
 0x345   :  { %3382 = vmatpush.bf16.msrb.mxu0 %v5423_v49  ;;  %3344 = vmatmul.bf16.vlgmr.msra.gmra.mxu1 %v6463_v22  ;;  %v4995_v45 = vor.u32 %v5882_v38, %v4992_v39  ;;  %v5472_v38 = vld [vmem:[#allocation4 + $0x3e8] sm:$0xf0]  ;;  %v5283_v39 = vor.u32 %v5954_v27, %v5280_v30  ;;  %v5240_v30 = vld [vmem:[#allocation4 + $0x218] sm:$0xf0] }
 0x346   :  { %3388 = vmatpush.bf16.msrb.mxu1 %v5035_v40  ;;  %3357 = vmatmul.bf16.vlgmr.msra.gmra.mxu2 %v6466_v37  ;;  %v5898_v40 = vld [vmem:[#allocation4 + $0xa4] sm:$0xf]  ;;  %v5248_v17 = vld [vmem:[#allocation4 + $0x228] sm:$0xf0] }
 0x347   :  { %3401 = vmatpush.bf16.msrb.mxu2 %v5099_v43  ;;  %3370 = vmatmul.bf16.vlgmr.msra.gmra.mxu3 %v6469_v55  ;;  %v5120_v43 = vld [vmem:[#allocation4 + $0x128] sm:$0xf0]  ;;  %v5059_v49 = vor.u32 %v5898_v40, %v5056_v41  ;;  %v5952_v41 = vld [vmem:[#allocation4 + $0x254] sm:$0xf] }
 0x348   :  { %3414 = vmatpush.bf16.msrb.mxu3 %v5163_v44  ;;  %3383 = vmatmul.bf16.vlgmr.msrb.gmra.mxu0 %v6472_v8  ;;  %v5195_v44 = vor.u32 %v5932_v33, %v5192_v34  ;;  %v5123_v50 = vor.u32 %v5914_v42, %v5120_v43  ;;  %v5986_v34 = vld [vmem:[#allocation4 + $0x364] sm:$0xf]  ;;  %v5272_v43 = vld [vmem:[#allocation4 + $0x258] sm:$0xf0] }
 0x349   :  { %3427 = vmatpush.bf16.msra.mxu0 %v5227_v56  ;;  %v5896_v56 = vld [vmem:[#allocation4 + $0x94] sm:$0xf]  ;;  %v5275_v53 = vor.u32 %v5952_v41, %v5272_v43  ;;  %v5942_v41 = vld [vmem:[#allocation4 + $0x204] sm:$0xf]  ;;  %v5232_v43 = vld [vmem:[#allocation4 + $0x208] sm:$0xf0] }
 0x34a   :  { %3389 = vmatpush.bf16.msrb.mxu1 %v5027_v57  ;;  %v5048_v57 = vld [vmem:[#allocation4 + $0x98] sm:$0xf0] }
 0x34b   :  { %3402 = vmatpush.bf16.msrb.mxu2 %v5091_v63  ;;  %v5187_v63 = vor.u32 %v5930_v46, %v5184_v48  ;;  %v5051_v5 = vor.u32 %v5896_v56, %v5048_v57  ;;  %v5984_v48 = vld [vmem:[#allocation4 + $0x354] sm:$0xf]  ;;  %v5950_v57 = vld [vmem:[#allocation4 + $0x244] sm:$0xf] }
 0x34c   :  { %3415 = vmatpush.bf16.msrb.mxu3 %v5155_v0  ;;  %v5928_v0 = vld [vmem:[#allocation4 + $0x194] sm:$0xf] }
 0x34d   :  { %3428 = vmatpush.bf16.msra.mxu0 %v5219_v9  ;;  %v5894_v9 = vld [vmem:[#allocation4 + $0x84] sm:$0xf]  ;;  %v5179_v12 = vor.u32 %v5928_v0, %v5176_v2  ;;  %v5328_v0 = vld [vmem:[#allocation4 + $0x2c8] sm:$0xf0] }
 0x34e   :  { %3390 = vmatpush.bf16.msrb.mxu1 %v5019_v61  ;;  %v5040_v61 = vld [vmem:[#allocation4 + $0x88] sm:$0xf0]  ;;  %v5998_v2 = vld [vmem:[#allocation4 + $0x3c4] sm:$0xf] }
 0x34f   :  { %3403 = vmatpush.bf16.msrb.mxu2 %v5083_v11  ;;  %v5956_v11 = vld [vmem:[#allocation4 + $0x274] sm:$0xf]  ;;  %v5043_v20 = vor.u32 %v5894_v9, %v5040_v61  ;;  %v5256_v9 = vld [vmem:[#allocation4 + $0x238] sm:$0xf0]  ;;  %v5459_v62 = vor.u32 %v5998_v2, %v5456_v3 }
 0x350   :  { %3416 = vmatpush.bf16.msrb.mxu3 %v5147_v51  ;;  %v5288_v51 = vld [vmem:[#allocation4 + $0x278] sm:$0xf0]  ;;  %v5964_v61 = vld [vmem:[#allocation4 + $0x2b4] sm:$0xf] }
 0x351   :  { %3429 = vmatpush.bf16.msra.mxu0 %v5211_v18  ;;  %v5926_v18 = vld [vmem:[#allocation4 + $0x184] sm:$0xf]  ;;  %v5291_v25 = vor.u32 %v5956_v11, %v5288_v51  ;;  %v5980_v11 = vld [vmem:[#allocation4 + $0x334] sm:$0xf]  ;;  %v5323_v14 = vor.u32 %v5964_v61, %v5320_v7  ;;  %v6008_v3 = vld [vmem:[#allocation12 + $0x10] sm:$0xff] }
 0x352   :  { %3391 = vmatpush.bf16.msrb.mxu1 %v5011_v19  ;;  %v5168_v19 = vld [vmem:[#allocation4 + $0x188] sm:$0xf0]  ;;  %v5996_v51 = vld [vmem:[#allocation4 + $0x3b4] sm:$0xf] }
 0x353   :  { %3404 = vmatpush.bf16.msrb.mxu2 %v5075_v23  ;;  %v6004_v23 = vld [vmem:[#allocation4 + $0x3f4] sm:$0xf]  ;;  %v5171_v29 = vor.u32 %v5926_v18, %v5168_v19  ;;  %v5962_v18 = vld [vmem:[#allocation4 + $0x2a4] sm:$0xf]  ;;  %v5312_v19 = vld [vmem:[#allocation4 + $0x2a8] sm:$0xf0] }
 0x354   :  { %3417 = vmatpush.bf16.msrb.mxu3 %v5139_v24  ;;  %v5480_v24 = vld [vmem:[#allocation4 + $0x3f8] sm:$0xf0]  ;;  %v5315_v27 = vor.u32 %v5962_v18, %v5312_v19  ;;  %v6021_v18 = vld [vmem:[#allocation12 + $0x78] sm:$0xff] }
 0x355   :  { %3430 = vmatpush.bf16.msra.mxu0 %v5203_v31  ;;  %v5970_v31 = vld [vmem:[#allocation4 + $0x2e4] sm:$0xf]  ;;  %v5483_v33 = vor.u32 %v6004_v23, %v5480_v24  ;;  %v5376_v23 = vld [vmem:[#allocation4 + $0x328] sm:$0xf0] }
 0x356   :  { %3392 = vmatpush.bf16.msrb.mxu1 %v5003_v32  ;;  %v5344_v32 = vld [vmem:[#allocation4 + $0x2e8] sm:$0xf0]  ;;  %v5994_v24 = vld [vmem:[#allocation4 + $0x3a4] sm:$0xf] }
 0x357   :  { %3405 = vmatpush.bf16.msrb.mxu2 %v5067_v35  ;;  %v5408_v35 = vld [vmem:[#allocation4 + $0x368] sm:$0xf0]  ;;  %v5347_v40 = vor.u32 %v5970_v31, %v5344_v32  ;;  %v5960_v31 = vld [vmem:[#allocation4 + $0x294] sm:$0xf]  ;;  %v5304_v32 = vld [vmem:[#allocation4 + $0x298] sm:$0xf0] }
 0x358   :  { %3418 = vmatpush.bf16.msrb.mxu3 %v5131_v36  ;;  %v6002_v36 = vld [vmem:[#allocation4 + $0x3e4] sm:$0xf]  ;;  %v5411_v42 = vor.u32 %v5986_v34, %v5408_v35  ;;  %v5976_v34 = vld [vmem:[#allocation4 + $0x314] sm:$0xf]  ;;  %v5368_v35 = vld [vmem:[#allocation4 + $0x318] sm:$0xf0] }
 0x359   :  { %3431 = vmatpush.bf16.msra.mxu0 %v5195_v44  ;;  %v5968_v44 = vld [vmem:[#allocation4 + $0x2d4] sm:$0xf]  ;;  %v5475_v46 = vor.u32 %v6002_v36, %v5472_v38  ;;  %v5432_v38 = vld [vmem:[#allocation4 + $0x398] sm:$0xf0] }
 0x35a   :  { %3393 = vmatpush.bf16.msrb.mxu1 %v4995_v45  ;;  %v5336_v45 = vld [vmem:[#allocation4 + $0x2d8] sm:$0xf0]  ;;  %v5992_v36 = vld [vmem:[#allocation4 + $0x394] sm:$0xf] }
 0x35b   :  { %3406 = vmatpush.bf16.msrb.mxu2 %v5059_v49  ;;  %v5400_v49 = vld [vmem:[#allocation4 + $0x358] sm:$0xf0]  ;;  %v5339_v56 = vor.u32 %v5968_v44, %v5336_v45  ;;  %v5958_v44 = vld [vmem:[#allocation4 + $0x284] sm:$0xf]  ;;  %v5296_v45 = vld [vmem:[#allocation4 + $0x288] sm:$0xf0] }
 0x35c   :  { %3419 = vmatpush.bf16.msrb.mxu3 %v5123_v50  ;;  %v6000_v50 = vld [vmem:[#allocation4 + $0x3d4] sm:$0xf]  ;;  %v5403_v58 = vor.u32 %v5984_v48, %v5400_v49  ;;  %v5974_v48 = vld [vmem:[#allocation4 + $0x304] sm:$0xf]  ;;  %v5360_v49 = vld [vmem:[#allocation4 + $0x308] sm:$0xf0] }
 0x35d   :  { %3432 = vmatpush.bf16.msra.mxu0 %v5187_v63  ;;  %v5966_v63 = vld [vmem:[#allocation4 + $0x2c4] sm:$0xf] }
 0x35e   :  { %3394 = vmatpush.bf16.msrb.mxu1 %v4987_v1  ;;  %v5982_v1 = vld [vmem:[#allocation4 + $0x344] sm:$0xf]  ;;  %v5331_v4 = vor.u32 %v5966_v63, %v5328_v0  ;;  %v6012_v63 = vld [vmem:[#allocation12 + $0x30] sm:$0xff]  ;;  %v6011_v0 = vld [vmem:[#allocation12 + $0x28] sm:$0xff] }
 0x35f   :  { %3407 = vmatpush.bf16.msrb.mxu2 %v5051_v5  ;;  %v5948_v5 = vld [vmem:[#allocation4 + $0x234] sm:$0xf] }
 0x360   :  { %3420 = vmatpush.bf16.msrb.mxu3 %v5115_v6  ;;  %v5259_v13 = vor.u32 %v5948_v5, %v5256_v9 }
 0x361   :  { %3433 = vmatpush.bf16.msra.mxu0 %v5179_v12  ;;  %v5448_v12 = vld [vmem:[#allocation4 + $0x3b8] sm:$0xf0] }
 0x362   :  { %3395 = vmatpush.bf16.msrb.mxu1 %v4979_v16 }
 0x363   :  { %3408 = vmatpush.bf16.msrb.mxu2 %v5043_v20  ;;  %v5451_v20 = vor.u32 %v5996_v51, %v5448_v12 }
 0x364   :  { %3421 = vmatpush.bf16.msrb.mxu3 %v5107_v21  ;;  %v5978_v21 = vld [vmem:[#allocation4 + $0x324] sm:$0xf] }
 0x365   :  { %3434 = vmatpush.bf16.msra.mxu0 %v5171_v29  ;;  %3396 = vmatmul.bf16.vlgmr.msrb.gmra.mxu1 %v6439_v60  ;;  %v5267_v60 = vor.u32 %v5950_v57, %v5264_v59  ;;  %v5379_v29 = vor.u32 %v5978_v21, %v5376_v23  ;;  %v5363_v57 = vor.u32 %v5974_v48, %v5360_v49  ;;  %v6020_v23 = vld [vmem:[#allocation12 + $0x70] sm:$0xff] }
 0x366   :  { %3440 = vmatpush.bf16.msra.mxu1 %v5291_v25  ;;  %3409 = vmatmul.bf16.vlgmr.msrb.gmra.mxu2 %v6446_v54  ;;  %v5467_v54 = vor.u32 %v6000_v50, %v5464_v52  ;;  %v5440_v25 = vld [vmem:[#allocation4 + $0x3a8] sm:$0xf0]  ;;  %v5990_v50 = vld [vmem:[#allocation4 + $0x384] sm:$0xf] }
 0x367   :  { %3453 = vmatpush.bf16.msra.mxu2 %v5355_v26  ;;  %3422 = vmatmul.bf16.vlgmr.msrb.gmra.mxu3 %v6453_v47  ;;  %v5392_v47 = vld [vmem:[#allocation4 + $0x348] sm:$0xf0]  ;;  %v5251_v26 = vor.u32 %v5946_v15, %v5248_v17 }
 0x368   :  { %3466 = vmatpush.bf16.msra.mxu3 %v5419_v28  ;;  %3435 = vmatmul.bf16.vlgmr.msra.gmra.mxu0 %v6460_v10  ;;  %v5395_v6 = vor.u32 %v5982_v1, %v5392_v47  ;;  %v5384_v10 = vld [vmem:[#allocation4 + $0x338] sm:$0xf0]  ;;  %v5944_v28 = vld [vmem:[#allocation4 + $0x214] sm:$0xf]  ;;  %v5424_v52 = vld [vmem:[#allocation4 + $0x388] sm:$0xf0] }
 0x369   :  { %3479 = vmatpush.bf16.msrb.mxu0 %v5483_v33  ;;  %v5387_v16 = vor.u32 %v5980_v11, %v5384_v10  ;;  %v5443_v33 = vor.u32 %v5994_v24, %v5440_v25  ;;  %v5427_v59 = vor.u32 %v5990_v50, %v5424_v52  ;;  %v6009_v1 = vld [vmem:[#allocation12 + $0x18] sm:$0xff] }
 0x36a   :  { %3441 = vmatpush.bf16.msra.mxu1 %v5283_v39  ;;  %v5243_v39 = vor.u32 %v5944_v28, %v5240_v30  ;;  %v6019_v28 = vld [vmem:[#allocation12 + $0x68] sm:$0xff]  ;;  %v6017_v30 = vld [vmem:[#allocation12 + $0x58] sm:$0xff] }
 0x36b   :  { %3454 = vmatpush.bf16.msra.mxu2 %v5347_v40  ;;  %v5307_v40 = vor.u32 %v5960_v31, %v5304_v32  ;;  %v6016_v32 = vld [vmem:[#allocation12 + $0x50] sm:$0xff] }
 0x36c   :  { %3467 = vmatpush.bf16.msra.mxu3 %v5411_v42  ;;  %v5371_v42 = vor.u32 %v5976_v34, %v5368_v35  ;;  %v6015_v35 = vld [vmem:[#allocation12 + $0x48] sm:$0xff] }
 0x36d   :  { %3480 = vmatpush.bf16.msrb.mxu0 %v5475_v46  ;;  %v5435_v46 = vor.u32 %v5992_v36, %v5432_v38 }
 0x36e   :  { %3442 = vmatpush.bf16.msra.mxu1 %v5275_v53  ;;  %v5235_v53 = vor.u32 %v5942_v41, %v5232_v43 }
 0x36f   :  { %3455 = vmatpush.bf16.msra.mxu2 %v5339_v56  ;;  %v5299_v56 = vor.u32 %v5958_v44, %v5296_v45 }
 0x370   :  { %3468 = vmatpush.bf16.msra.mxu3 %v5403_v58  ;;  %v6013_v58 = vld [vmem:[#allocation12 + $0x38] sm:$0xff] }
 0x371   :  { %3481 = vmatpush.bf16.msrb.mxu0 %v5467_v54  ;;  %v6010_v54 = vld [vmem:[#allocation12 + $0x20] sm:$0xff] }
 0x372   :  { %3443 = vmatpush.bf16.msra.mxu1 %v5267_v60 }
 0x373   :  { %3456 = vmatpush.bf16.msra.mxu2 %v5331_v4  ;;  %v6007_v4 = vld [vmem:[#allocation12 + $0x8] sm:$0xff] }
 0x374   :  { %3469 = vmatpush.bf16.msra.mxu3 %v5395_v6 }
 0x375   :  { %3482 = vmatpush.bf16.msrb.mxu0 %v5459_v62 }
 0x376   :  { %3444 = vmatpush.bf16.msra.mxu1 %v5259_v13 }
 0x377   :  { %3457 = vmatpush.bf16.msra.mxu2 %v5323_v14 }
 0x378   :  { %3470 = vmatpush.bf16.msra.mxu3 %v5387_v16 }
 0x379   :  { %3483 = vmatpush.bf16.msrb.mxu0 %v5451_v20 }
 0x37a   :  { %3445 = vmatpush.bf16.msra.mxu1 %v5251_v26 }
 0x37b   :  { %3458 = vmatpush.bf16.msra.mxu2 %v5315_v27 }
 0x37c   :  { %3471 = vmatpush.bf16.msra.mxu3 %v5379_v29  ;;  %v6018_v29 = vld [vmem:[#allocation12 + $0x60] sm:$0xff] }
 0x37d   :  { %3484 = vmatpush.bf16.msrb.mxu0 %v5443_v33 }
 0x37e   :  { %3446 = vmatpush.bf16.msra.mxu1 %v5243_v39  ;;  %v6014_v39 = vld [vmem:[#allocation12 + $0x40] sm:$0xff] }
 0x37f   :  { %3459 = vmatpush.bf16.msra.mxu2 %v5307_v40 }
 0x380   :  { %3472 = vmatpush.bf16.msra.mxu3 %v5371_v42 }
 0x381   :  { %3485 = vmatpush.bf16.msrb.mxu0 %v5435_v46 }
 0x382   :  { %3447 = vmatpush.bf16.msra.mxu1 %v5235_v53 }
 0x383   :  { %3460 = vmatpush.bf16.msra.mxu2 %v5299_v56 }
 0x384   :  { %3473 = vmatpush.bf16.msra.mxu3 %v5363_v57 }
 0x385   :  { %3486 = vmatpush.bf16.msrb.mxu0 %v5427_v59  ;;  %3448 = vmatmul.bf16.vlgmr.msra.gmra.mxu1 %v6463_v22 }
 0x386   :  { %3625 = vmatpush.bf16.msrb.mxu1 %v6013_v58  ;;  %3461 = vmatmul.bf16.vlgmr.msra.gmra.mxu2 %v6466_v37 }
 0x387   :  { %3474 = vmatmul.bf16.vlgmr.msra.gmra.mxu3 %v6469_v55  ;;  %v2638_v55 = vld [vmem:[#allocation17 + $0x3] ss:$8 sm:$0x3]  ;;  %3638 = vmatpush.bf16.msrb.mxu2 %v6021_v18 }
 0x388   :  { %3487 = vmatmul.bf16.vlgmr.msrb.gmra.mxu0 %v6472_v8  ;;  %v6006_v8 = vld [vmem:[#allocation12] sm:$0xff]  ;;  %v2640_v6 = vperm.slane %v2638_v55, 0  ;;  %v2641_v43 = vperm.slane %v2638_v55, 1  ;;  %v6024_v55 = vld [vmem:[#allocation14 + $0x10] sm:$0xff] }
 0x38a   :  { %3626 = vmatpush.bf16.msrb.mxu1 %v6012_v63 }
 0x38b   :  { %3639 = vmatpush.bf16.msrb.mxu2 %v6020_v23 }
 0x38e   :  { %3627 = vmatpush.bf16.msrb.mxu1 %v6011_v0 }
 0x38f   :  { %3640 = vmatpush.bf16.msrb.mxu2 %v6019_v28 }
 0x392   :  { %3628 = vmatpush.bf16.msrb.mxu1 %v6010_v54 }
 0x393   :  { %3641 = vmatpush.bf16.msrb.mxu2 %v6018_v29 }
 0x396   :  { %3629 = vmatpush.bf16.msrb.mxu1 %v6009_v1 }
 0x397   :  { %3642 = vmatpush.bf16.msrb.mxu2 %v6017_v30 }
 0x39a   :  { %3630 = vmatpush.bf16.msrb.mxu1 %v6008_v3  ;;  %v6029_v3 = vld [vmem:[#allocation14 + $0x38] sm:$0xff] }
 0x39b   :  { %3643 = vmatpush.bf16.msrb.mxu2 %v6016_v32  ;;  %3718 = vmatpush.bf16.msrb.mxu3 %v6029_v3 }
 0x39e   :  { %3631 = vmatpush.bf16.msrb.mxu1 %v6007_v4  ;;  %v6026_v4 = vld [vmem:[#allocation14 + $0x20] sm:$0xff] }
 0x39f   :  { %3644 = vmatpush.bf16.msrb.mxu2 %v6015_v35 }
 0x3a2   :  { %v3293_v47 = vpop.f32.mrf.mxu1  ;;  %3632 = vmatpush.bf16.msrb.mxu1 %v6006_v8 }
 0x3a3   :  { %v3294_v7 = vadd.f32 %v3293_v47, %v2640_v6  ;;  %3645 = vmatpush.bf16.msrb.mxu2 %v6014_v39  ;;  %v6023_v6 = vld [vmem:[#allocation14 + $0x8] sm:$0xff] }
 0x3a5   :  { %v3332_v2 = vpop.f32.mrf.mxu0 }
 0x3a9   :  { %v3306_v60 = vpop.f32.mrf.mxu2 }
 0x3aa   :  { %v3319_v22 = vpop.f32.mrf.mxu3  ;;  %v3295_v37 = vpop.f32.mrf.mxu1  ;;  %v3307_v62 = vadd.f32 %v3306_v60, %v3294_v7  ;;  %v6028_v60 = vld [vmem:[#allocation14 + $0x30] sm:$0xff] }
 0x3ab   :  { %3719 = vmatpush.bf16.msrb.mxu3 %v6028_v60  ;;  %v6025_v37 = vld [vmem:[#allocation14 + $0x18] sm:$0xff] }
 0x3ac   :  { %v3320_v11 = vadd.f32 %v3319_v22, %v3307_v62  ;;  %v6027_v22 = vld [vmem:[#allocation14 + $0x28] sm:$0xff] }
 0x3ad   :  { %v3334_v5 = vpop.f32.mrf.mxu0 }
 0x3ae   :  { %v3333_v10 = vadd.f32 %v3332_v2, %v3320_v11 }
 0x3af   :  { %3720 = vmatpush.bf16.msrb.mxu3 %v6027_v22 }
 0x3b1   :  { %v3308_v9 = vpop.f32.mrf.mxu2 }
 0x3b2   :  { %v3321_v61 = vpop.f32.mrf.mxu3  ;;  %v6022_v9 = vld [vmem:[#allocation14] sm:$0xff] }
 0x3b3   :  { %3721 = vmatpush.bf16.msrb.mxu3 %v6026_v4  ;;  %v3528_v61 = vld [vmem:[#allocation17 + $0x4] ss:$0 sm:$0xff] }
 0x3b7   :  { %3722 = vmatpush.bf16.msrb.mxu3 %v6025_v37 }
 0x3bb   :  { %3723 = vmatpush.bf16.msrb.mxu3 %v6024_v55 }
 0x3bf   :  { %3724 = vmatpush.bf16.msrb.mxu3 %v6023_v6 }
 0x3c2   :  { %v3345_v51 = vpop.f32.mrf.mxu1 }
 0x3c3   :  { %v3346_v13 = vadd.f32 %v3345_v51, %v3333_v10  ;;  %3725 = vmatpush.bf16.msrb.mxu3 %v6022_v9 }
 0x3c5   :  { %v3384_v12 = vpop.f32.mrf.mxu0 }
 0x3c9   :  { %v3358_v14 = vpop.f32.mrf.mxu2 }
 0x3ca   :  { %v3359_v15 = vadd.f32 %v3358_v14, %v3346_v13  ;;  %v3371_v16 = vpop.f32.mrf.mxu3  ;;  %v3347_v20 = vpop.f32.mrf.mxu1  ;;  %v3734_v13 = vld [vmem:[%s6505_s9] sm:$0xff]  ;;  %v6315_v14 = vmov 0  }
 0x3cb   :  { %6046 = vset.pattern.permute.xlu0 %v6315_v14 }
 0x3cc   :  { %v3372_v17 = vadd.f32 %v3371_v16, %v3359_v15  ;;  %3737 = vperm.xlu0 %6046, %v3734_v13   ;;  %v3669_v15 = vld [vmem:[#allocation17 + $0x5] ss:$0 sm:$0xff] }
 0x3cd   :  { %v3386_v21 = vpop.f32.mrf.mxu0 }
 0x3ce   :  { %v3385_v19 = vadd.f32 %v3384_v12, %v3372_v17  ;;  %v3733_v21 = vld [vmem:[#allocation15] sm:$0xf] }
 0x3d0   :  { %v3492_v24 = vmax.f32 %v3385_v19, 0.0 }
 0x3d1   :  { %v3360_v25 = vpop.f32.mrf.mxu2 }
 0x3d2   :  { %v3494_v26 = vpack.c.bf16 %v3492_v24, %v3492_v24  ;;  %v3373_v27 = vpop.f32.mrf.mxu3 }
 0x3d4   :  { %3633 = vmatmul.bf16.vlgmr.msrb.gmra.mxu1 %v3494_v26 }
 0x3e2   :  { %v3397_v31 = vpop.f32.mrf.mxu1 }
 0x3e3   :  { %v3398_v44 = vadd.f32 %v3397_v31, %v2641_v43 }
 0x3e5   :  { %v3436_v33 = vpop.f32.mrf.mxu0 }
 0x3e9   :  { %v3410_v34 = vpop.f32.mrf.mxu2 }
 0x3ea   :  { %v3423_v36 = vpop.f32.mrf.mxu3  ;;  %v3399_v38 = vpop.f32.mrf.mxu1  ;;  %v3411_v45 = vadd.f32 %v3410_v34, %v3398_v44 }
 0x3ec   :  { %v3424_v46 = vadd.f32 %v3423_v36, %v3411_v45 }
 0x3ed   :  { %v3438_v40 = vpop.f32.mrf.mxu0 }
 0x3ee   :  { %v3437_v50 = vadd.f32 %v3436_v33, %v3424_v46 }
 0x3f1   :  { %v3412_v41 = vpop.f32.mrf.mxu2 }
 0x3f2   :  { %v3425_v42 = vpop.f32.mrf.mxu3 }
 0x402   :  { %v3449_v48 = vpop.f32.mrf.mxu1 }
 0x403   :  { %v3450_v52 = vadd.f32 %v3449_v48, %v3437_v50 }
 0x405   :  { %v3488_v49 = vpop.f32.mrf.mxu0 }
 0x409   :  { %v3462_v53 = vpop.f32.mrf.mxu2 }
 0x40a   :  { %v3463_v56 = vadd.f32 %v3462_v53, %v3450_v52  ;;  %v3475_v57 = vpop.f32.mrf.mxu3  ;;  %v3451_v58 = vpop.f32.mrf.mxu1 }
 0x40c   :  { %v3476_v59 = vadd.f32 %v3475_v57, %v3463_v56 }
 0x40d   :  { %v3490_v63 = vpop.f32.mrf.mxu0 }
 0x40e   :  { %v3489_v0 = vadd.f32 %v3488_v49, %v3476_v59 }
 0x410   :  { %v3493_v54 = vmax.f32 %v3489_v0, 0.0 }
 0x411   :  { %v3464_v1 = vpop.f32.mrf.mxu2 }
 0x412   :  { %v3495_v47 = vpack.c.bf16 %v3493_v54, %v3493_v54  ;;  %v3477_v2 = vpop.f32.mrf.mxu3 }
 0x414   :  { %3646 = vmatmul.bf16.vlgmr.msrb.gmra.mxu2 %v3495_v47 }
 0x43e   :  { %v3738_v23 = vpop.permute.xlu0 %3737 }
 0x451   :  { %v3634_v5 = vpop.f32.mrf.mxu1 }
 0x452   :  { %v3635_v7 = vadd.f32 %v3634_v5, %v3528_v61 }
 0x459   :  { %v3636_v8 = vpop.f32.mrf.mxu1 }
 0x497   :  { %v3647_v62 = vpop.f32.mrf.mxu2 }
 0x498   :  { %v3648_v11 = vadd.f32 %v3647_v62, %v3635_v7 }
 0x49a   :  { %v3651_v10 = vmax.f32 %v3648_v11, 0.0 }
 0x49c   :  { %v3652_v51 = vpack.c.bf16 %v3651_v10, %v3651_v10 }
 0x49e   :  { %3726 = vmatmul.bf16.vlgmr.msrb.gmra.mxu3 %v3652_v51 }
 0x49f   :  { %v3649_v12 = vpop.f32.mrf.mxu2 }
 0x521   :  { %v3727_v16 = vpop.f32.mrf.mxu3 }
 0x522   :  { %v3728_v17 = vadd.f32 %v3727_v16, %v3669_v15 }
 0x524   :  { %v3731_v18 = vmax.f32 %v3728_v17, 0.0 }
 0x526   :  { %v3732_v19 = vpack.c.bf16 %v3731_v18, %v3731_v18 }
 0x528   :  { %3747 = vmatpush.bf16.xpose.msra.mxu0 %v3732_v19 }
 0x529   :  { %v3729_v20 = vpop.f32.mrf.mxu3 }
 0x52f   :  { %3748 = vmatmul.bf16.vlgmr.msra.gmra.mxu0 %v3733_v21 }
 0x5ac   :  { %v3749_v24 = vpop.f32.mrf.mxu0 }
 0x5ad   :  { %v3750_v25 = vadd.f32 %v3749_v24, %v3738_v23 }
 0x5af   :  { %3754 = vst.msk [vmem:[#allocation18] sm:$0xff] %vm3753_vm1, %v3750_v25 }
 0x5b0   :  { %3765 = dma.vmem_to_hbm [thread:$0]  %s3761_s14, 128, %s3763_s16, [#allocation8]  }
 0x5b4   :  { %v3751_v26 = vpop.f32.mrf.mxu0 }
 0x5b5   :  { %6299 = dma.done.wait [#allocation8], 128  }
 0x5b6   :  { %6300 = vsyncadd [#allocation8], 4294967168 }
 0x5b7   :  { %3770 = vsyncpa [#allocation7], 1 }
 0x5b8   :  { %3771 = vsyncpa [#allocation10], 1 }
 0x5b9   :  { %3772 = vsyncpa [#allocation13], 1 }
 0x5ba   :  { %3773 = vsyncpa [#allocation16], 1 }
 0x5bb   :  { %3774 = vsyncpa [#allocation8], 1 }
 0x5bc   :  { %3775 = vsyncmov [#allocation5] }
 0x5bf   :  { %s3776_s9 = vpop.sfrf %3775 }
 0x5c0   :  { %p5580_p0 = scmp.ne.s32.totalorder %s3776_s9, 0 }
 0x5c2   :  { %3780 = shalt.err (%p5580_p0)  }
 0x5c3   :  { %3782 = vsyncmov [#allocation5 + $0x1] }
 0x5c6   :  { %s3783_s10 = vpop.sfrf %3782 }
 0x5c7   :  { %p5581_p1 = scmp.ne.s32.totalorder %s3783_s10, 0 }
 0x5c9   :  { %3787 = shalt.err (%p5581_p1)  }

</bundles_post_ra>
